<compile_context>
chip_gen: v7x
topology: tpu7x:2x2x1
jax: 0.10.0
libtpu: 0.0.40
codegen_flags: <defaults>
</compile_context>

<pallas_src>
import functools

import jax
import jax.numpy as jnp
from jax.experimental import pallas as pl
from jax.experimental.pallas import tpu as pltpu


# ----------------------------------------------------------------------------
# Fused kernel: one image per grid step, all 9 layers in VMEM.
# ----------------------------------------------------------------------------
def _net_fused_kernel(p_ref, w1_ref, b1_ref, wm_ref, bm_ref, w6_ref, b6_ref,
                      o_ref, shift_ref, *, H, W, n_mid):
    """
    p_ref   : (1, H*W, 9)        im2col'd 1-channel input (taps t = dy*3 + dx)
    w1_ref  : (9, C)             first-conv weights (compute dtype); b1_ref (1, C) f32
    wm_ref  : (n_mid*3, 3*C, C)  K-packed weights: slice (3*l + dy) holds
                                 [W[dy,0]; W[dy,1]; W[dy,2]] stacked along K
    bm_ref  : (n_mid, 1, C)      biases (f32)
    w6_ref  : (C, 1) compute dtype; b6_ref (1, 1) f32
    o_ref   : (1, H*W, 1)        sigmoid output (f32)
    shift_ref : VMEM (H+2, W, 3*C) f32 scratch.  Lane section dx*C:(dx+1)*C of
                row r, column w holds zero_pad(act)[r, w + dx, :].
    """
    HW = H * W
    C = b1_ref.shape[-1]
    cdt = wm_ref.dtype                       # matmul operand dtype (bf16 on v6e/v7x)
    sdt = shift_ref.dtype                    # scratch dtype (f32)

    # Zero only the padding halo, per image (interior is rewritten each layer).
    zrow = jnp.zeros((1, W, 3 * C), sdt)
    shift_ref[0:1, :, :] = zrow                          # padded row above
    shift_ref[H + 1:H + 2, :, :] = zrow                  # padded row below
    zcol = jnp.zeros((H, 1, C), sdt)
    shift_ref[1:H + 1, 0:1, 0:C] = zcol                  # dx=0 section, col 0
    shift_ref[1:H + 1, W - 1:W, 2 * C:3 * C] = zcol      # dx=2 section, col W-1

    # ---- layer 1: conv3x3 (Cin=1) + ReLU as a single K=9 matmul, written
    # straight into the centre (dx=1) lane section of the scratch.
    acc = jnp.dot(p_ref[0], w1_ref[...], preferred_element_type=jnp.float32)
    shift_ref[1:H + 1, :, C:2 * C] = (
        jnp.maximum(acc + b1_ref[...], 0.0).reshape(H, W, C).astype(sdt))

    # ---- 7x conv3x3 (C -> C) + ReLU: 3 matmuls per layer with K = 3*C.
    def layer(l, carry):
        centre = shift_ref[1:H + 1, :, C:2 * C]          # act_l  (H, W, C)
        # dx-shifted copies of act_l (edge halo columns stay zero).
        # TODO(synk): these W-offset stores are sublane-misaligned (masked);
        # verify in the bundle dump, consider pltpu.roll+mask if they bind (v5e).
        shift_ref[1:H + 1, 1:W, 0:C] = centre[:, 0:W - 1, :]
        shift_ref[1:H + 1, 0:W - 1, 2 * C:3 * C] = centre[:, 1:W, :]

        # Bias folded into accumulator init; accumulate in f32.
        acc = jnp.broadcast_to(bm_ref[l], (HW, C))
        for dy in range(3):                              # static unroll of 3
            patch = shift_ref[dy:dy + H, :, :].reshape(HW, 3 * C).astype(cdt)
            acc = acc + jnp.dot(patch, wm_ref[3 * l + dy],
                                preferred_element_type=jnp.float32)
        # ReLU result written straight back into the centre slab.
        shift_ref[1:H + 1, :, C:2 * C] = (
            jnp.maximum(acc, 0.0).reshape(H, W, C).astype(sdt))
        return carry

    jax.lax.fori_loop(0, n_mid, layer, 0)

    # ---- head: conv1x1 (C -> 1) + sigmoid.  Only HBM write of the whole net.
    act = shift_ref[1:H + 1, :, C:2 * C].reshape(HW, C).astype(cdt)
    y = jnp.dot(act, w6_ref[...], preferred_element_type=jnp.float32)
    o_ref[...] = jax.nn.sigmoid(y + b6_ref[...]).reshape(1, HW, 1)


# ----------------------------------------------------------------------------
# VMEM budget derived from actual shapes (scratch + live temps + 2x buffered IO).
# ----------------------------------------------------------------------------
def _vmem_limit_bytes(H, W, C, n_mid, cbytes):
    HW = H * W
    scratch = (H + 2) * W * 3 * C * 4                      # f32 shifted slab
    weights = (9 * C + n_mid * 9 * C * C + C) * cbytes + (C + n_mid * C + 1) * 4
    io = HW * 9 * cbytes + HW * 4
    live = 4 * HW * C * 4                                  # acc / patch / relu temps
    need = scratch + live + 2 * (weights + io)             # double-buffered in/out
    # v5e/v6e have 128 MiB physical VMEM; cap lower (~56 MiB) if targeting v7x.
    return int(min(100 * 2**20, max(32 * 2**20, 1.5 * need)))


# ----------------------------------------------------------------------------
# Wrapper: NCHW in / NCHW out, params packed into kernel-friendly stacks.
# ----------------------------------------------------------------------------
def net_forward(x_nchw, params, *, compute_dtype=jnp.bfloat16):
    """x_nchw: (N, 1, H, W) float32.  Returns (N, 1, H, W) float32."""
    N, Cin, H, W = x_nchw.shape
    assert Cin == 1 and W % 8 == 0
    HW = H * W

    # Pack parameters (HWIO weights).
    blocks = params["blocks"]
    w1, b1 = blocks[0][0], blocks[0][1]                    # (3,3,1,C), (C,)
    mids = [(blocks[0][2], blocks[0][3])]
    for (wa, ba, wb, bb) in blocks[1:]:
        mids.append((wa, ba))
        mids.append((wb, bb))
    n_mid = len(mids)                                      # 7
    C = w1.shape[-1]

    w1_2d = w1.reshape(9, C).astype(compute_dtype)
    b1_2d = b1.reshape(1, C).astype(jnp.float32)
    # K-packing: HWIO (3,3,C,C) -> per dy a (3*C, C) block with rows dx*C + cin.
    wm = jnp.stack([w.reshape(3, 3 * C, C) for (w, _) in mids])
    wm = wm.reshape(n_mid * 3, 3 * C, C).astype(compute_dtype)
    bm = jnp.stack([b for (_, b) in mids]).reshape(n_mid, 1, C).astype(jnp.float32)
    w6, b6 = params["head"]                                # (C,1), (1,)
    w6_2d = w6.astype(compute_dtype)
    b6_2d = b6.reshape(1, 1).astype(jnp.float32)

    # im2col of the tiny 1-channel input (taps ordered t = dy*3 + dx).
    x = x_nchw[:, 0].astype(jnp.float32)                   # (N, H, W)
    xp = jnp.pad(x, ((0, 0), (1, 1), (1, 1)))
    patches = jnp.stack(
        [xp[:, dy:dy + H, dx:dx + W] for dy in range(3) for dx in range(3)],
        axis=-1,
    ).reshape(N, HW, 9).astype(compute_dtype)

    cbytes = jnp.dtype(compute_dtype).itemsize
    vmem_limit = _vmem_limit_bytes(H, W, C, n_mid, cbytes)

    out = pl.pallas_call(
        functools.partial(_net_fused_kernel, H=H, W=W, n_mid=n_mid),
        out_shape=jax.ShapeDtypeStruct((N, HW, 1), jnp.float32),
        grid=(N,),
        in_specs=[
            pl.BlockSpec((1, HW, 9), lambda n: (n, 0, 0)),
            pl.BlockSpec((9, C), lambda n: (0, 0)),
            pl.BlockSpec((1, C), lambda n: (0, 0)),
            pl.BlockSpec((n_mid * 3, 3 * C, C), lambda n: (0, 0, 0)),
            pl.BlockSpec((n_mid, 1, C), lambda n: (0, 0, 0)),
            pl.BlockSpec((C, 1), lambda n: (0, 0)),
            pl.BlockSpec((1, 1), lambda n: (0, 0)),
        ],
        out_specs=pl.BlockSpec((1, HW, 1), lambda n: (n, 0, 0)),
        scratch_shapes=[pltpu.VMEM((H + 2, W, 3 * C), jnp.float32)],
        compiler_params=pltpu.CompilerParams(
            dimension_semantics=("parallel",),
            vmem_limit_bytes=vmem_limit,
        ),
    )(patches, w1_2d, b1_2d, wm, bm, w6_2d, b6_2d)

    return out.reshape(N, 1, H, W)


# ----------------------------------------------------------------------------
# Parameter init (deterministic, mirrors PyTorch Conv2d default init bounds)
# ----------------------------------------------------------------------------
def _init_conv(key, kh, kw, cin, cout):
    kw_, kb_ = jax.random.split(key)
    fan_in = cin * kh * kw
    bound = 1.0 / jnp.sqrt(float(fan_in))
    w = jax.random.uniform(kw_, (kh, kw, cin, cout), jnp.float32, -bound, bound)
    b = jax.random.uniform(kb_, (cout,), jnp.float32, -bound, bound)
    return w, b


def init_net_params(key):
    keys = jax.random.split(key, 9)
    ch = [(1, 64), (64, 64), (64, 64), (64, 64)]
    blocks = []
    ki = 0
    for cin, cout in ch:
        w1, b1 = _init_conv(keys[ki], 3, 3, cin, cout); ki += 1
        w2, b2 = _init_conv(keys[ki], 3, 3, cout, cout); ki += 1
        blocks.append((w1, b1, w2, b2))
    w6_4d, b6 = _init_conv(keys[ki], 1, 1, 64, 1)
    w6 = w6_4d.reshape(64, 1)
    return {"blocks": blocks, "head": (w6, b6)}


# ----------------------------------------------------------------------------
# Pure-JAX reference (for correctness check)
# ----------------------------------------------------------------------------
def _ref_forward(x_nchw, params):
    x = jnp.transpose(x_nchw, (0, 2, 3, 1)).astype(jnp.float32)
    dn = ("NHWC", "HWIO", "NHWC")
    for (w1, b1, w2, b2) in params["blocks"]:
        x = jax.nn.relu(
            jax.lax.conv_general_dilated(x, w1, (1, 1), "SAME", dimension_numbers=dn) + b1
        )
        x = jax.nn.relu(
            jax.lax.conv_general_dilated(x, w2, (1, 1), "SAME", dimension_numbers=dn) + b2
        )
    w6, b6 = params["head"]
    x = jax.nn.sigmoid(jnp.einsum("nhwc,co->nhwo", x, w6) + b6)
    return jnp.transpose(x, (0, 3, 1, 2))


if __name__ == "__main__":
    key = jax.random.PRNGKey(0)
    kx, kp = jax.random.split(key)

    # Net.conv1 is TwoCon(1, 64) -> single-channel input, NCHW.
    N, C, H, W = 2, 1, 16, 16
    x = jax.random.normal(kx, (N, C, H, W), jnp.float32)
    params = init_net_params(kp)

    ref = jax.block_until_ready(_ref_forward(x, params))

    # f32 operands: tight check of the K-packing / halo / fori_loop logic.
    out_f32 = jax.block_until_ready(
        net_forward(x, params, compute_dtype=jnp.float32))
    assert out_f32.shape == (N, 1, H, W), out_f32.shape
    assert jnp.allclose(out_f32, ref, atol=1e-3, rtol=1e-3), \
        float(jnp.max(jnp.abs(out_f32 - ref)))

    # bf16 matmul operands (production path on v6e/v7x): looser tolerance.
    out_bf16 = jax.block_until_ready(
        net_forward(x, params, compute_dtype=jnp.bfloat16))
    assert out_bf16.shape == (N, 1, H, W), out_bf16.shape
    assert jnp.allclose(out_bf16, ref, atol=3e-2, rtol=3e-2), \
        float(jnp.max(jnp.abs(out_bf16 - ref)))

    print("KERNEL_OK")
</pallas_src>

<mosaic_0001>
module attributes {stable_mosaic.version = 11 : i64} {
  func.func @_net_fused_kernel(%arg0: i32, %arg1: memref<1x256x9xf32, #tpu.memory_space<vmem>>, %arg2: memref<9x64xf32, #tpu.memory_space<vmem>>, %arg3: memref<1x64xf32, #tpu.memory_space<vmem>>, %arg4: memref<21x192x64xf32, #tpu.memory_space<vmem>>, %arg5: memref<7x1x64xf32, #tpu.memory_space<vmem>>, %arg6: memref<64x1xf32, #tpu.memory_space<vmem>>, %arg7: memref<1x1xf32, #tpu.memory_space<vmem>>, %arg8: memref<1x256x1xf32, #tpu.memory_space<vmem>>, %arg9: memref<18x16x192xf32, #tpu.memory_space<vmem>>) attributes {dimension_semantics = [#tpu.dimension_semantics<parallel>], iteration_bounds = array<i64: 2>, scalar_prefetch = 0 : i64, scratch_operands = 1 : i64, tpu.core_type = #tpu.core_type<tc>, window_params = [{transform_indices = @transform_0, window_bounds = array<i64: 1, 256, 9>}, {pipeline_mode = #tpu.pipeline_mode<synchronous>, transform_indices = @transform_1, window_bounds = array<i64: 9, 64>}, {pipeline_mode = #tpu.pipeline_mode<synchronous>, transform_indices = @transform_2, window_bounds = array<i64: 1, 64>}, {pipeline_mode = #tpu.pipeline_mode<synchronous>, transform_indices = @transform_3, window_bounds = array<i64: 21, 192, 64>}, {pipeline_mode = #tpu.pipeline_mode<synchronous>, transform_indices = @transform_4, window_bounds = array<i64: 7, 1, 64>}, {pipeline_mode = #tpu.pipeline_mode<synchronous>, transform_indices = @transform_5, window_bounds = array<i64: 64, 1>}, {pipeline_mode = #tpu.pipeline_mode<synchronous>, transform_indices = @transform_6, window_bounds = array<i64: 1, 1>}, {transform_indices = @transform_7, window_bounds = array<i64: 1, 256, 1>}]} {
    %cst = arith.constant 0.000000e+00 : f32
    %0 = vector.broadcast %cst : f32 to vector<1x16x192xf32>
    %c0 = arith.constant 0 : index
    %c0_0 = arith.constant 0 : index
    %c0_1 = arith.constant 0 : index
    %1 = vector.load %arg9[%c0, %c0_0, %c0_1] : memref<18x16x192xf32, #tpu.memory_space<vmem>>, vector<1x16x192xf32>
    tpu.vector_store %arg9[%c0, %c0_0, %c0_1], %0 {strides = array<i32>} : memref<18x16x192xf32, #tpu.memory_space<vmem>>, vector<1x16x192xf32>,
    %c17 = arith.constant 17 : index
    %c0_2 = arith.constant 0 : index
    %c0_3 = arith.constant 0 : index
    %2 = vector.load %arg9[%c17, %c0_2, %c0_3] : memref<18x16x192xf32, #tpu.memory_space<vmem>>, vector<1x16x192xf32>
    tpu.vector_store %arg9[%c17, %c0_2, %c0_3], %0 {strides = array<i32>} : memref<18x16x192xf32, #tpu.memory_space<vmem>>, vector<1x16x192xf32>,
    %cst_4 = arith.constant 0.000000e+00 : f32
    %3 = vector.broadcast %cst_4 : f32 to vector<16x1x64xf32>
    %c1 = arith.constant 1 : index
    %c0_5 = arith.constant 0 : index
    %c0_6 = arith.constant 0 : index
    %4 = vector.load %arg9[%c1, %c0_5, %c0_6] : memref<18x16x192xf32, #tpu.memory_space<vmem>>, vector<16x1x64xf32>
    tpu.vector_store %arg9[%c1, %c0_5, %c0_6], %3 {strides = array<i32>} : memref<18x16x192xf32, #tpu.memory_space<vmem>>, vector<16x1x64xf32>,
    %c1_7 = arith.constant 1 : index
    %c15 = arith.constant 15 : index
    %c128 = arith.constant 128 : index
    %5 = vector.load %arg9[%c1_7, %c15, %c128] : memref<18x16x192xf32, #tpu.memory_space<vmem>>, vector<16x1x64xf32>
    tpu.vector_store %arg9[%c1_7, %c15, %c128], %3 {strides = array<i32>} : memref<18x16x192xf32, #tpu.memory_space<vmem>>, vector<16x1x64xf32>,
    %c0_8 = arith.constant 0 : index
    %c0_9 = arith.constant 0 : index
    %c0_10 = arith.constant 0 : index
    %6 = vector.load %arg1[%c0_8, %c0_9, %c0_10] : memref<1x256x9xf32, #tpu.memory_space<vmem>>, vector<1x256x9xf32>
    %7 = vector.shape_cast %6 : vector<1x256x9xf32> to vector<256x9xf32>
    %c0_11 = arith.constant 0 : index
    %c0_12 = arith.constant 0 : index
    %8 = vector.load %arg2[%c0_11, %c0_12] : memref<9x64xf32, #tpu.memory_space<vmem>>, vector<9x64xf32>
    %cst_13 = arith.constant dense<0.000000e+00> : vector<256x64xf32>
    %9 = tpu.matmul %7, %8, %cst_13 {dimension_numbers = #tpu.dot_dimension_numbers<[1], [0], [0], [1], [0, 0, 1, 1], [], []>} : vector<256x9xf32>, vector<9x64xf32>, vector<256x64xf32> -> vector<256x64xf32>
    %c0_14 = arith.constant 0 : index
    %c0_15 = arith.constant 0 : index
    %10 = vector.load %arg3[%c0_14, %c0_15] : memref<1x64xf32, #tpu.memory_space<vmem>>, vector<1x64xf32>
    %11 = vector.broadcast %10 : vector<1x64xf32> to vector<256x64xf32>
    %12 = arith.addf %9, %11 : vector<256x64xf32>
    %cst_16 = arith.constant 0.000000e+00 : f32
    %13 = vector.broadcast %cst_16 : f32 to vector<256x64xf32>
    %14 = arith.maximumf %12, %13 : vector<256x64xf32>
    %15 = vector.shape_cast %14 : vector<256x64xf32> to vector<16x16x64xf32>
    %c1_17 = arith.constant 1 : index
    %c0_18 = arith.constant 0 : index
    %c64 = arith.constant 64 : index
    %16 = vector.load %arg9[%c1_17, %c0_18, %c64] : memref<18x16x192xf32, #tpu.memory_space<vmem>>, vector<16x16x64xf32>
    tpu.vector_store %arg9[%c1_17, %c0_18, %c64], %15 {strides = array<i32>} : memref<18x16x192xf32, #tpu.memory_space<vmem>>, vector<16x16x64xf32>,
    %c0_i32 = arith.constant 0 : i32
    %c7_i32 = arith.constant 7 : i32
    %17 = arith.addi %c0_i32, %c7_i32 : i32
    %c1_i32 = arith.constant 1 : i32
    scf.for %arg10 = %c0_i32 to %17 step %c1_i32  : i32 {
      %c1_32 = arith.constant 1 : index
      %c0_33 = arith.constant 0 : index
      %c64_34 = arith.constant 64 : index
      %32 = vector.load %arg9[%c1_32, %c0_33, %c64_34] : memref<18x16x192xf32, #tpu.memory_space<vmem>>, vector<16x16x64xf32>
      %33 = vector.extract_strided_slice %32 {offsets = [0, 0, 0], sizes = [16, 15, 64], strides = [1, 1, 1]} : vector<16x16x64xf32> to vector<16x15x64xf32>
      %c1_35 = arith.constant 1 : index
      %c1_36 = arith.constant 1 : index
      %c0_37 = arith.constant 0 : index
      %34 = vector.load %arg9[%c1_35, %c1_36, %c0_37] : memref<18x16x192xf32, #tpu.memory_space<vmem>>, vector<16x15x64xf32>
      tpu.vector_store %arg9[%c1_35, %c1_36, %c0_37], %33 {strides = array<i32>} : memref<18x16x192xf32, #tpu.memory_space<vmem>>, vector<16x15x64xf32>,
      %35 = vector.extract_strided_slice %32 {offsets = [0, 1, 0], sizes = [16, 15, 64], strides = [1, 1, 1]} : vector<16x16x64xf32> to vector<16x15x64xf32>
      %c1_38 = arith.constant 1 : index
      %c0_39 = arith.constant 0 : index
      %c128_40 = arith.constant 128 : index
      %36 = vector.load %arg9[%c1_38, %c0_39, %c128_40] : memref<18x16x192xf32, #tpu.memory_space<vmem>>, vector<16x15x64xf32>
      tpu.vector_store %arg9[%c1_38, %c0_39, %c128_40], %35 {strides = array<i32>} : memref<18x16x192xf32, #tpu.memory_space<vmem>>, vector<16x15x64xf32>,
      %37 = arith.index_cast %arg10 : i32 to index
      %c0_41 = arith.constant 0 : index
      %c0_42 = arith.constant 0 : index
      %38 = vector.load %arg5[%37, %c0_41, %c0_42] : memref<7x1x64xf32, #tpu.memory_space<vmem>>, vector<1x1x64xf32>
      %39 = vector.shape_cast %38 : vector<1x1x64xf32> to vector<1x64xf32>
      %40 = vector.shape_cast %39 : vector<1x64xf32> to vector<1x64xf32>
      %41 = vector.broadcast %40 : vector<1x64xf32> to vector<256x64xf32>
      %c0_43 = arith.constant 0 : index
      %c0_44 = arith.constant 0 : index
      %c0_45 = arith.constant 0 : index
      %42 = vector.load %arg9[%c0_43, %c0_44, %c0_45] : memref<18x16x192xf32, #tpu.memory_space<vmem>>, vector<16x16x192xf32>
      %43 = vector.shape_cast %42 : vector<16x16x192xf32> to vector<256x192xf32>
      %c3_i32 = arith.constant 3 : i32
      %44 = arith.muli %c3_i32, %arg10 : i32
      %c0_i32_46 = arith.constant 0 : i32
      %45 = arith.addi %44, %c0_i32_46 : i32
      %46 = arith.index_cast %45 : i32 to index
      %c0_47 = arith.constant 0 : index
      %c0_48 = arith.constant 0 : index
      %47 = vector.load %arg4[%46, %c0_47, %c0_48] : memref<21x192x64xf32, #tpu.memory_space<vmem>>, vector<1x192x64xf32>
      %48 = vector.shape_cast %47 : vector<1x192x64xf32> to vector<192x64xf32>
      %cst_49 = arith.constant dense<0.000000e+00> : vector<256x64xf32>
      %49 = tpu.matmul %43, %48, %cst_49 {dimension_numbers = #tpu.dot_dimension_numbers<[1], [0], [0], [1], [0, 0, 1, 1], [], []>} : vector<256x192xf32>, vector<192x64xf32>, vector<256x64xf32> -> vector<256x64xf32>
      %50 = arith.addf %41, %49 : vector<256x64xf32>
      %c1_50 = arith.constant 1 : index
      %c0_51 = arith.constant 0 : index
      %c0_52 = arith.constant 0 : index
      %51 = vector.load %arg9[%c1_50, %c0_51, %c0_52] : memref<18x16x192xf32, #tpu.memory_space<vmem>>, vector<16x16x192xf32>
      %52 = vector.shape_cast %51 : vector<16x16x192xf32> to vector<256x192xf32>
      %c3_i32_53 = arith.constant 3 : i32
      %53 = arith.muli %c3_i32_53, %arg10 : i32
      %c1_i32_54 = arith.constant 1 : i32
      %54 = arith.addi %53, %c1_i32_54 : i32
      %55 = arith.index_cast %54 : i32 to index
      %c0_55 = arith.constant 0 : index
      %c0_56 = arith.constant 0 : index
      %56 = vector.load %arg4[%55, %c0_55, %c0_56] : memref<21x192x64xf32, #tpu.memory_space<vmem>>, vector<1x192x64xf32>
      %57 = vector.shape_cast %56 : vector<1x192x64xf32> to vector<192x64xf32>
      %cst_57 = arith.constant dense<0.000000e+00> : vector<256x64xf32>
      %58 = tpu.matmul %52, %57, %cst_57 {dimension_numbers = #tpu.dot_dimension_numbers<[1], [0], [0], [1], [0, 0, 1, 1], [], []>} : vector<256x192xf32>, vector<192x64xf32>, vector<256x64xf32> -> vector<256x64xf32>
      %59 = arith.addf %50, %58 : vector<256x64xf32>
      %c2 = arith.constant 2 : index
      %c0_58 = arith.constant 0 : index
      %c0_59 = arith.constant 0 : index
      %60 = vector.load %arg9[%c2, %c0_58, %c0_59] : memref<18x16x192xf32, #tpu.memory_space<vmem>>, vector<16x16x192xf32>
      %61 = vector.shape_cast %60 : vector<16x16x192xf32> to vector<256x192xf32>
      %c3_i32_60 = arith.constant 3 : i32
      %62 = arith.muli %c3_i32_60, %arg10 : i32
      %c2_i32 = arith.constant 2 : i32
      %63 = arith.addi %62, %c2_i32 : i32
      %64 = arith.index_cast %63 : i32 to index
      %c0_61 = arith.constant 0 : index
      %c0_62 = arith.constant 0 : index
      %65 = vector.load %arg4[%64, %c0_61, %c0_62] : memref<21x192x64xf32, #tpu.memory_space<vmem>>, vector<1x192x64xf32>
      %66 = vector.shape_cast %65 : vector<1x192x64xf32> to vector<192x64xf32>
      %cst_63 = arith.constant dense<0.000000e+00> : vector<256x64xf32>
      %67 = tpu.matmul %61, %66, %cst_63 {dimension_numbers = #tpu.dot_dimension_numbers<[1], [0], [0], [1], [0, 0, 1, 1], [], []>} : vector<256x192xf32>, vector<192x64xf32>, vector<256x64xf32> -> vector<256x64xf32>
      %68 = arith.addf %59, %67 : vector<256x64xf32>
      %cst_64 = arith.constant 0.000000e+00 : f32
      %69 = vector.broadcast %cst_64 : f32 to vector<256x64xf32>
      %70 = arith.maximumf %68, %69 : vector<256x64xf32>
      %71 = vector.shape_cast %70 : vector<256x64xf32> to vector<16x16x64xf32>
      %c1_65 = arith.constant 1 : index
      %c0_66 = arith.constant 0 : index
      %c64_67 = arith.constant 64 : index
      %72 = vector.load %arg9[%c1_65, %c0_66, %c64_67] : memref<18x16x192xf32, #tpu.memory_space<vmem>>, vector<16x16x64xf32>
      tpu.vector_store %arg9[%c1_65, %c0_66, %c64_67], %71 {strides = array<i32>} : memref<18x16x192xf32, #tpu.memory_space<vmem>>, vector<16x16x64xf32>,
    }
    %c7_i32_19 = arith.constant 7 : i32
    %c1_20 = arith.constant 1 : index
    %c0_21 = arith.constant 0 : index
    %c64_22 = arith.constant 64 : index
    %18 = vector.load %arg9[%c1_20, %c0_21, %c64_22] : memref<18x16x192xf32, #tpu.memory_space<vmem>>, vector<16x16x64xf32>
    %19 = vector.shape_cast %18 : vector<16x16x64xf32> to vector<256x64xf32>
    %c0_23 = arith.constant 0 : index
    %c0_24 = arith.constant 0 : index
    %20 = vector.load %arg6[%c0_23, %c0_24] : memref<64x1xf32, #tpu.memory_space<vmem>>, vector<64x1xf32>
    %cst_25 = arith.constant dense<0.000000e+00> : vector<256x1xf32>
    %21 = tpu.matmul %19, %20, %cst_25 {dimension_numbers = #tpu.dot_dimension_numbers<[1], [0], [0], [1], [0, 0, 1, 1], [], []>} : vector<256x64xf32>, vector<64x1xf32>, vector<256x1xf32> -> vector<256x1xf32>
    %c0_26 = arith.constant 0 : index
    %c0_27 = arith.constant 0 : index
    %22 = vector.load %arg7[%c0_26, %c0_27] : memref<1x1xf32, #tpu.memory_space<vmem>>, vector<1x1xf32>
    %23 = vector.broadcast %22 : vector<1x1xf32> to vector<256x1xf32>
    %24 = arith.addf %21, %23 : vector<256x1xf32>
    %25 = arith.negf %24 : vector<256x1xf32>
    %26 = math.exp %25 : vector<256x1xf32>
    %cst_28 = arith.constant 1.000000e+00 : f32
    %27 = vector.broadcast %cst_28 : f32 to vector<256x1xf32>
    %28 = arith.addf %27, %26 : vector<256x1xf32>
    %29 = arith.divf %27, %28 : vector<256x1xf32>
    %30 = vector.shape_cast %29 : vector<256x1xf32> to vector<1x256x1xf32>
    %c0_29 = arith.constant 0 : index
    %c0_30 = arith.constant 0 : index
    %c0_31 = arith.constant 0 : index
    %31 = vector.load %arg8[%c0_29, %c0_30, %c0_31] : memref<1x256x1xf32, #tpu.memory_space<vmem>>, vector<1x256x1xf32>
    tpu.vector_store %arg8[%c0_29, %c0_30, %c0_31], %30 {strides = array<i32>} : memref<1x256x1xf32, #tpu.memory_space<vmem>>, vector<1x256x1xf32>,
    return
  }
  func.func @transform_0(%arg0: i32) -> (i32, i32, i32) {
    %c0_i32 = arith.constant 0 : i32
    %c0_i32_0 = arith.constant 0 : i32
    %c0_i32_1 = arith.constant 0 : i32
    return %arg0, %c0_i32, %c0_i32_0 : i32, i32, i32
  }
  func.func @transform_1(%arg0: i32) -> (i32, i32) {
    %c0_i32 = arith.constant 0 : i32
    %c0_i32_0 = arith.constant 0 : i32
    %c0_i32_1 = arith.constant 0 : i32
    return %c0_i32, %c0_i32_0 : i32, i32
  }
  func.func @transform_2(%arg0: i32) -> (i32, i32) {
    %c0_i32 = arith.constant 0 : i32
    %c0_i32_0 = arith.constant 0 : i32
    %c0_i32_1 = arith.constant 0 : i32
    return %c0_i32, %c0_i32_0 : i32, i32
  }
  func.func @transform_3(%arg0: i32) -> (i32, i32, i32) {
    %c0_i32 = arith.constant 0 : i32
    %c0_i32_0 = arith.constant 0 : i32
    %c0_i32_1 = arith.constant 0 : i32
    %c0_i32_2 = arith.constant 0 : i32
    return %c0_i32, %c0_i32_0, %c0_i32_1 : i32, i32, i32
  }
  func.func @transform_4(%arg0: i32) -> (i32, i32, i32) {
    %c0_i32 = arith.constant 0 : i32
    %c0_i32_0 = arith.constant 0 : i32
    %c0_i32_1 = arith.constant 0 : i32
    %c0_i32_2 = arith.constant 0 : i32
    return %c0_i32, %c0_i32_0, %c0_i32_1 : i32, i32, i32
  }
  func.func @transform_5(%arg0: i32) -> (i32, i32) {
    %c0_i32 = arith.constant 0 : i32
    %c0_i32_0 = arith.constant 0 : i32
    %c0_i32_1 = arith.constant 0 : i32
    return %c0_i32, %c0_i32_0 : i32, i32
  }
  func.func @transform_6(%arg0: i32) -> (i32, i32) {
    %c0_i32 = arith.constant 0 : i32
    %c0_i32_0 = arith.constant 0 : i32
    %c0_i32_1 = arith.constant 0 : i32
    return %c0_i32, %c0_i32_0 : i32, i32
  }
  func.func @transform_7(%arg0: i32) -> (i32, i32, i32) {
    %c0_i32 = arith.constant 0 : i32
    %c0_i32_0 = arith.constant 0 : i32
    %c0_i32_1 = arith.constant 0 : i32
    return %arg0, %c0_i32, %c0_i32_0 : i32, i32, i32
  }
}

</mosaic_0001>

<bundles_post_ra>
// kernel: tpu_custom_call.1
= control target key start
LH: loop header
LB: loop body
LE: loop exit
PB: predicated region body
PF: predicated region fallthrough
CT: control target
= control target key end

     0   :  { %s4526_s26 = smov 0   ;;  %s5786_s0 = inlined_call_operand.vmem [shape: f32[2,256,9], index: 0, kind: input, shape index: {}]   ;;  %s5787_s1 = inlined_call_operand.vmem [shape: f32[9,64], index: 1, kind: input, shape index: {}]   ;;  %s5788_s2 = inlined_call_operand.vmem [shape: f32[1,64], index: 2, kind: input, shape index: {}]   ;;  %s5789_s3 = inlined_call_operand.vmem [shape: f32[21,192,64], index: 3, kind: input, shape index: {}]   ;;  %s5790_s4 = inlined_call_operand.vmem [shape: f32[7,1,64], index: 4, kind: input, shape index: {}]   ;;  %s5791_s5 = inlined_call_operand.vmem [shape: f32[64,1], index: 5, kind: input, shape index: {}]   ;;  %s5792_s6 = inlined_call_operand.<no memory space> [shape: f32[1,1], index: 6, kind: input, shape index: {}]   ;;  %s5793_s7 = inlined_call_operand.vmem [shape: f32[2,256,1], index: 7, kind: output, shape index: {}]  }
   0x1   :  { %v12_v0 = vstv %s5792_s6 }
   0x2   :  { %13 = vst [vmem:[#allocation3] sm:$0x1] %v12_v0 }
   0x3 LB: > { %s3571_s27 = sadd.s32 4294967295, %s4472_s26   ;;  %p3575_p0 = scmp.ge.s32.totalorder %s4472_s26, 1  ;;  %s4472_s26 = sphi %s4526_s26, %s19_s26  }
   0x4   : > { %p239_p1 = scmp.lt.s32.totalorder %s4472_s26, 3 }
   0x6   : > { %p240_p2 = pnand %p3575_p0, %p239_p1 }
   0x7   : > { %v357_v1 = vld [vmem:[%s5787_s1] sm:$0xff] (!%p240_p2)  ;;  %v358_v2 = vld [vmem:[%s5787_s1 + $0x8] sm:$0x1] (!%p240_p2)  ;;  %vm463_vm0 = vcmask (!%p240_p2), 1040384   ;;  %p271_p3 = scmp.lt.s32.totalorder (!%p240_p2), %s3571_s27, 1  ;;  %vm4478_vm1 = vmmov (!%p240_p2), 1  }
   0x8   : > { %243 = sbr.rel (%p240_p2) target bundleno = 1432 (0x598), region = 48  ;;  %v4021_v3 = vpack.c.bf16 (!%p240_p2), %v358_v2, %v357_v1  ;;  %vm4022_vm2 = vmpackc.low (!%p240_p2), %vm463_vm0, %vm4478_vm1  ;;  %vm366_vm3 = vcmask (!%p240_p2), 72704   ;;  %vm292_vm4 = vcmask (!%p240_p2), 516096   ;;  %v4479_v36 = vmov (!%p240_p2), 0.0   ;;  %v4654_v37 = vld [vmem:[%s5788_s2] ss:$0 sm:$0xff] (!%p240_p2) }
   0x9   : > { %281 = vst [vmem:[#allocation2] sm:$0xff] (!%p240_p2), %v4479_v36  ;;  %284 = vst [vmem:[#allocation2 + $0x10] sm:$0xff] (!%p240_p2), %v4479_v36  ;;  %vm282_vm5 = vcmask (!%p240_p2), 523264   ;;  %s4480_s17 = smov (!%p240_p2), 64   ;;  %vm852_vm6 = vcmask (!%p240_p2), 1048064   ;;  %s4752_s18 = smov (!%p240_p2), 0  }
   0xa   : > { %4023 = vmatprep.subr.msk.bf16.mxu0 (!%p240_p2), %vm4022_vm2, %v4021_v3  ;;  %4151 = vmatprep.subr.msk.bf16.mxu1 (!%p240_p2), %vm4022_vm2, %v4021_v3  ;;  %287 = vst [vmem:[#allocation2 + $0x220] sm:$0xff] (!%p240_p2), %v4479_v36  ;;  %289 = vst [vmem:[#allocation2 + $0x230] sm:$0xff] (!%p240_p2), %v4479_v36 }
   0xb   : > { %4026 = vmatpush3.bf16.msk.msra.mxu0 (!%p240_p2), %vm4022_vm2, %v4021_v3  ;;  %4152 = vmatpush3.bf16.msk.msra.mxu1 (!%p240_p2), %vm4022_vm2, %v4021_v3  ;;  %293 = vst.msk [vmem:[#allocation2 + $0x20] sm:$0x1] (!%p240_p2), %vm292_vm4, %v4479_v36  ;;  %309 = vst.msk [vmem:[#allocation2 + $0x3f] sm:$0x1] (!%p240_p2), %vm292_vm4, %v4479_v36 }
   0xc   : > { %310 = vst.msk [vmem:[#allocation2 + $0x5f] sm:$0x1] (!%p240_p2), %vm292_vm4, %v4479_v36  ;;  %311 = vst.msk [vmem:[#allocation2 + $0x7f] sm:$0x1] (!%p240_p2), %vm292_vm4, %v4479_v36 }
   0xd   : > { %312 = vst.msk [vmem:[#allocation2 + $0x9f] sm:$0x1] (!%p240_p2), %vm292_vm4, %v4479_v36  ;;  %313 = vst.msk [vmem:[#allocation2 + $0xbf] sm:$0x1] (!%p240_p2), %vm292_vm4, %v4479_v36 }
   0xe   : > { %314 = vst.msk [vmem:[#allocation2 + $0xdf] sm:$0x1] (!%p240_p2), %vm292_vm4, %v4479_v36  ;;  %315 = vst.msk [vmem:[#allocation2 + $0xff] sm:$0x1] (!%p240_p2), %vm292_vm4, %v4479_v36 }
   0xf   : > { %s5795_s27 = smov (!%p271_p3, %s3571_s27), 1  ;;  %316 = vst.msk [vmem:[#allocation2 + $0x11f] sm:$0x1] %vm292_vm4, %v4479_v36  ;;  %317 = vst.msk [vmem:[#allocation2 + $0x13f] sm:$0x1] %vm292_vm4, %v4479_v36 }
  0x10   : > { %s3829_s8 = sshll.u32 %s5795_s27, 8  ;;  %318 = vst.msk [vmem:[#allocation2 + $0x15f] sm:$0x1] %vm292_vm4, %v4479_v36  ;;  %319 = vst.msk [vmem:[#allocation2 + $0x17f] sm:$0x1] %vm292_vm4, %v4479_v36 }
  0x11   : > { %s4544_s11 = scalar_lea.vmem %s5786_s0, %s3829_s8  ;;  %s4549_s14 = scalar_lea.vmem %s5793_s7, %s3829_s8  ;;  %320 = vst.msk [vmem:[#allocation2 + $0x19f] sm:$0x1] %vm292_vm4, %v4479_v36  ;;  %321 = vst.msk [vmem:[#allocation2 + $0x1bf] sm:$0x1] %vm292_vm4, %v4479_v36 }
  0x12   : > { %v325_v4 = vld [vmem:[%s4544_s11] sm:$0xff]  ;;  %v326_v6 = vld [vmem:[%s4544_s11 + $0x8] sm:$0xff]  ;;  %v327_v8 = vld [vmem:[%s4544_s11 + $0x10] sm:$0xff]  ;;  %322 = vst.msk [vmem:[#allocation2 + $0x1df] sm:$0x1] %vm292_vm4, %v4479_v36 }
  0x13   : > { %v341_v5 = vld [vmem:[%s4544_s11 + $0x80] sm:$0xff]  ;;  %3909 = vmatprep.mubr.msk.f32.mxu0 %vm366_vm3, %v325_v4  ;;  %v342_v7 = vld [vmem:[%s4544_s11 + $0x88] sm:$0xff]  ;;  %v343_v9 = vld [vmem:[%s4544_s11 + $0x90] sm:$0xff]  ;;  %323 = vst.msk [vmem:[#allocation2 + $0x1ff] sm:$0x1] %vm292_vm4, %v4479_v36 }
  0x14   : > { %3933 = vmatprep.mubr.msk.f32.mxu1 %vm366_vm3, %v341_v5  ;;  %3910 = vmatmul.mubr.msk.f32.vlgmr.msra.gmra.mrb[0].mxu0 %vm366_vm3, %v326_v6  ;;  %v328_v10 = vld [vmem:[%s4544_s11 + $0x18] sm:$0xff]  ;;  %v329_v12 = vld [vmem:[%s4544_s11 + $0x20] sm:$0xff]  ;;  %v330_v14 = vld [vmem:[%s4544_s11 + $0x28] sm:$0xff]  ;;  %324 = vst.msk [vmem:[#allocation2 + $0x21f] sm:$0x1] %vm292_vm4, %v4479_v36 }
  0x15   : > { %3934 = vmatmul.mubr.msk.f32.vlgmr.msra.gmra.mrb[0].mxu1 %vm366_vm3, %v342_v7  ;;  %3912 = vmatprep.mubr.msk.f32.mxu0 %vm366_vm3, %v327_v8  ;;  %v344_v11 = vld [vmem:[%s4544_s11 + $0x98] sm:$0xff]  ;;  %v345_v13 = vld [vmem:[%s4544_s11 + $0xa0] sm:$0xff]  ;;  %v346_v15 = vld [vmem:[%s4544_s11 + $0xa8] sm:$0xff]  ;;  %294 = vst.msk [vmem:[#allocation2 + $0x40] sm:$0x1] %vm292_vm4, %v4479_v36 }
  0x16   : > { %3936 = vmatprep.mubr.msk.f32.mxu1 %vm366_vm3, %v343_v9  ;;  %v331_v16 = vld [vmem:[%s4544_s11 + $0x30] sm:$0xff]  ;;  %v332_v18 = vld [vmem:[%s4544_s11 + $0x38] sm:$0xff]  ;;  %v333_v20 = vld [vmem:[%s4544_s11 + $0x40] sm:$0xff]  ;;  %295 = vst.msk [vmem:[#allocation2 + $0x60] sm:$0x1] %vm292_vm4, %v4479_v36 }
  0x17   : > { %v347_v17 = vld [vmem:[%s4544_s11 + $0xb0] sm:$0xff]  ;;  %v348_v19 = vld [vmem:[%s4544_s11 + $0xb8] sm:$0xff]  ;;  %v349_v21 = vld [vmem:[%s4544_s11 + $0xc0] sm:$0xff]  ;;  %296 = vst.msk [vmem:[#allocation2 + $0x80] sm:$0x1] %vm292_vm4, %v4479_v36 }
  0x18   : > { %3913 = vmatmul.mubr.msk.f32.gmra.mrb[2].mxu0 %vm366_vm3, %v328_v10  ;;  %v334_v22 = vld [vmem:[%s4544_s11 + $0x48] sm:$0xff]  ;;  %v335_v24 = vld [vmem:[%s4544_s11 + $0x50] sm:$0xff]  ;;  %v336_v26 = vld [vmem:[%s4544_s11 + $0x58] sm:$0xff]  ;;  %297 = vst.msk [vmem:[#allocation2 + $0xa0] sm:$0x1] %vm292_vm4, %v4479_v36 }
  0x19   : > { %3937 = vmatmul.mubr.msk.f32.gmra.mrb[2].mxu1 %vm366_vm3, %v344_v11  ;;  %3915 = vmatprep.mubr.msk.f32.mxu0 %vm366_vm3, %v329_v12  ;;  %v350_v23 = vld [vmem:[%s4544_s11 + $0xc8] sm:$0xff]  ;;  %v351_v25 = vld [vmem:[%s4544_s11 + $0xd0] sm:$0xff]  ;;  %v352_v27 = vld [vmem:[%s4544_s11 + $0xd8] sm:$0xff]  ;;  %298 = vst.msk [vmem:[#allocation2 + $0xc0] sm:$0x1] %vm292_vm4, %v4479_v36 }
  0x1a   : > { %3939 = vmatprep.mubr.msk.f32.mxu1 %vm366_vm3, %v345_v13  ;;  %v337_v28 = vld [vmem:[%s4544_s11 + $0x60] sm:$0xff]  ;;  %v338_v30 = vld [vmem:[%s4544_s11 + $0x68] sm:$0xff]  ;;  %v339_v32 = vld [vmem:[%s4544_s11 + $0x70] sm:$0xff]  ;;  %299 = vst.msk [vmem:[#allocation2 + $0xe0] sm:$0x1] %vm292_vm4, %v4479_v36 }
  0x1b   : > { %v353_v29 = vld [vmem:[%s4544_s11 + $0xe0] sm:$0xff]  ;;  %v354_v31 = vld [vmem:[%s4544_s11 + $0xe8] sm:$0xff]  ;;  %v355_v33 = vld [vmem:[%s4544_s11 + $0xf0] sm:$0xff]  ;;  %300 = vst.msk [vmem:[#allocation2 + $0x100] sm:$0x1] %vm292_vm4, %v4479_v36 }
  0x1c   : > { %3916 = vmatmul.mubr.msk.f32.gmra.mrb[4].mxu0 %vm366_vm3, %v330_v14  ;;  %v340_v34 = vld [vmem:[%s4544_s11 + $0x78] sm:$0xff]  ;;  %301 = vst.msk [vmem:[#allocation2 + $0x120] sm:$0x1] %vm292_vm4, %v4479_v36  ;;  %302 = vst.msk [vmem:[#allocation2 + $0x140] sm:$0x1] %vm292_vm4, %v4479_v36 }
  0x1d   : > { %3940 = vmatmul.mubr.msk.f32.gmra.mrb[4].mxu1 %vm366_vm3, %v346_v15  ;;  %3918 = vmatprep.mubr.msk.f32.mxu0 %vm366_vm3, %v331_v16  ;;  %v356_v35 = vld [vmem:[%s4544_s11 + $0xf8] sm:$0xff]  ;;  %303 = vst.msk [vmem:[#allocation2 + $0x160] sm:$0x1] %vm292_vm4, %v4479_v36  ;;  %304 = vst.msk [vmem:[#allocation2 + $0x180] sm:$0x1] %vm292_vm4, %v4479_v36 }
  0x1e   : > { %3942 = vmatprep.mubr.msk.f32.mxu1 %vm366_vm3, %v347_v17  ;;  %305 = vst.msk [vmem:[#allocation2 + $0x1a0] sm:$0x1] %vm292_vm4, %v4479_v36  ;;  %306 = vst.msk [vmem:[#allocation2 + $0x1c0] sm:$0x1] %vm292_vm4, %v4479_v36 }
  0x1f   : > { %307 = vst.msk [vmem:[#allocation2 + $0x1e0] sm:$0x1] %vm292_vm4, %v4479_v36  ;;  %308 = vst.msk [vmem:[#allocation2 + $0x200] sm:$0x1] %vm292_vm4, %v4479_v36 }
  0x20   : > { %3919 = vmatmul.mubr.msk.f32.gmra.mrb[6].mxu0 %vm366_vm3, %v332_v18  ;;  %283 = vst.msk [vmem:[#allocation2 + $0x8] sm:$0xff] %vm282_vm5, %v4479_v36  ;;  %285 = vst.msk [vmem:[#allocation2 + $0x18] sm:$0xff] %vm282_vm5, %v4479_v36 }
  0x21   : > { %3943 = vmatmul.mubr.msk.f32.gmra.mrb[6].mxu1 %vm366_vm3, %v348_v19  ;;  %3921 = vmatprep.mubr.msk.f32.mxu0 %vm366_vm3, %v333_v20  ;;  %288 = vst.msk [vmem:[#allocation2 + $0x228] sm:$0xff] %vm282_vm5, %v4479_v36  ;;  %290 = vst.msk [vmem:[#allocation2 + $0x238] sm:$0xff] %vm282_vm5, %v4479_v36 }
  0x22   : > { %3945 = vmatprep.mubr.msk.f32.mxu1 %vm366_vm3, %v349_v21 }
  0x24   : > { %3922 = vmatmul.mubr.msk.f32.gmra.mrb[8].mxu0 %vm366_vm3, %v334_v22 }
  0x25   : > { %3946 = vmatmul.mubr.msk.f32.gmra.mrb[8].mxu1 %vm366_vm3, %v350_v23  ;;  %3924 = vmatprep.mubr.msk.f32.mxu0 %vm366_vm3, %v335_v24 }
  0x26   : > { %3948 = vmatprep.mubr.msk.f32.mxu1 %vm366_vm3, %v351_v25 }
  0x28   : > { %3925 = vmatmul.mubr.msk.f32.gmra.mrb[10].mxu0 %vm366_vm3, %v336_v26 }
  0x29   : > { %3949 = vmatmul.mubr.msk.f32.gmra.mrb[10].mxu1 %vm366_vm3, %v352_v27  ;;  %3927 = vmatprep.mubr.msk.f32.mxu0 %vm366_vm3, %v337_v28 }
  0x2a   : > { %3951 = vmatprep.mubr.msk.f32.mxu1 %vm366_vm3, %v353_v29 }
  0x2c   : > { %3928 = vmatmul.mubr.msk.f32.gmra.mrb[12].mxu0 %vm366_vm3, %v338_v30 }
  0x2d   : > { %3952 = vmatmul.mubr.msk.f32.gmra.mrb[12].mxu1 %vm366_vm3, %v354_v31  ;;  %3930 = vmatprep.mubr.msk.f32.mxu0 %vm366_vm3, %v339_v32 }
  0x2e   : > { %3954 = vmatprep.mubr.msk.f32.mxu1 %vm366_vm3, %v355_v33 }
  0x30   : > { %3931 = vmatmul.mubr.msk.f32.gmra.mrb[14].mxu0 %vm366_vm3, %v340_v34 }
  0x31   : > { %3955 = vmatmul.mubr.msk.f32.gmra.mrb[14].mxu1 %vm366_vm3, %v356_v35 }
  0xe7   : > { %v3911_v38 = vpop.f32.mrb[0].mxu0 }
  0xe8   : > { %v3935_v39 = vpop.f32.mrb[0].mxu1  ;;  %v539_v40 = vadd.f32 %v3911_v38, %v4654_v37  ;;  %v533_v42 = vpop.f32.mrb[1].mxu0 }
  0xe9   : > { %v619_v41 = vadd.f32 %v3935_v39, %v4654_v37  ;;  %v613_v43 = vpop.f32.mrb[1].mxu1  ;;  %v534_v46 = vadd.f32 %v4654_v37, %v533_v42 }
  0xea   : > { %v693_v44 = vmax.f32 %v539_v40, 0.0  ;;  %v614_v54 = vadd.f32 %v4654_v37, %v613_v43 }
  0xeb   : > { %v709_v45 = vmax.f32 %v619_v41, 0.0  ;;  %v3914_v47 = vpop.f32.mrb[2].mxu0  ;;  %v692_v53 = vmax.f32 %v534_v46, 0.0 }
  0xec   : > { %v3938_v48 = vpop.f32.mrb[2].mxu1  ;;  %v549_v49 = vadd.f32 %v3914_v47, %v4654_v37  ;;  %758 = vrot.lane.b32.xlu0 %v693_v44, %s4480_s17  ;;  %v543_v50 = vpop.f32.mrb[3].mxu0  ;;  %v708_v61 = vmax.f32 %v614_v54, 0.0 }
  0xed   : > { %790 = vrot.lane.b32.xlu1 %v709_v45, %s4480_s17  ;;  %v629_v51 = vadd.f32 %v3938_v48, %v4654_v37  ;;  %v623_v52 = vpop.f32.mrb[3].mxu1  ;;  %v544_v62 = vadd.f32 %v4654_v37, %v543_v50 }
  0xee   : > { %v695_v55 = vmax.f32 %v549_v49, 0.0  ;;  %v624_v63 = vadd.f32 %v4654_v37, %v623_v52 }
  0xef   : > { %v3917_v56 = vpop.f32.mrb[4].mxu0  ;;  %v711_v58 = vmax.f32 %v629_v51, 0.0  ;;  %v694_v6 = vmax.f32 %v544_v62, 0.0 }
  0xf0   : > { %v3941_v57 = vpop.f32.mrb[4].mxu1  ;;  %756 = vrot.lane.b32.xlu0 %v692_v53, %s4480_s17  ;;  %v553_v59 = vpop.f32.mrb[5].mxu0  ;;  %v559_v2 = vadd.f32 %v3917_v56, %v4654_v37  ;;  %v710_v7 = vmax.f32 %v624_v63, 0.0 }
  0xf1   : > { %762 = vrot.lane.b32.xlu1 %v695_v55, %s4480_s17  ;;  %v633_v60 = vpop.f32.mrb[5].mxu1  ;;  %v554_v3 = vadd.f32 %v4654_v37, %v553_v59  ;;  %v639_v12 = vadd.f32 %v3941_v57, %v4654_v37 }
  0xf2   : > { %v697_v10 = vmax.f32 %v559_v2, 0.0  ;;  %v634_v13 = vadd.f32 %v4654_v37, %v633_v60 }
  0xf3   : > { %v3920_v0 = vpop.f32.mrb[6].mxu0  ;;  %v696_v11 = vmax.f32 %v554_v3, 0.0  ;;  %v713_v18 = vmax.f32 %v639_v12, 0.0 }
  0xf4   : > { %v3944_v1 = vpop.f32.mrb[6].mxu1  ;;  %788 = vrot.lane.b32.xlu0 %v708_v61, %s4480_s17  ;;  %v563_v4 = vpop.f32.mrb[7].mxu0  ;;  %v712_v19 = vmax.f32 %v634_v13, 0.0  ;;  %v569_v20 = vadd.f32 %v3920_v0, %v4654_v37 }
  0xf5   : > { %794 = vrot.lane.b32.xlu1 %v711_v58, %s4480_s17  ;;  %v643_v5 = vpop.f32.mrb[7].mxu1  ;;  %v564_v21 = vadd.f32 %v4654_v37, %v563_v4  ;;  %v649_v28 = vadd.f32 %v3944_v1, %v4654_v37 }
  0xf6   : > { %v699_v26 = vmax.f32 %v569_v20, 0.0  ;;  %v644_v29 = vadd.f32 %v4654_v37, %v643_v5 }
  0xf7   : > { %v3923_v8 = vpop.f32.mrb[8].mxu0  ;;  %v698_v27 = vmax.f32 %v564_v21, 0.0  ;;  %v715_v34 = vmax.f32 %v649_v28, 0.0 }
  0xf8   : > { %v3947_v9 = vpop.f32.mrb[8].mxu1  ;;  %792 = vrot.lane.b32.xlu0 %v710_v7, %s4480_s17  ;;  %v573_v14 = vpop.f32.mrb[9].mxu0  ;;  %v714_v35 = vmax.f32 %v644_v29, 0.0  ;;  %v579_v36 = vadd.f32 %v3923_v8, %v4654_v37 }
  0xf9   : > { %760 = vrot.lane.b32.xlu1 %v694_v6, %s4480_s17  ;;  %v653_v15 = vpop.f32.mrb[9].mxu1  ;;  %v574_v38 = vadd.f32 %v4654_v37, %v573_v14  ;;  %v659_v43 = vadd.f32 %v3947_v9, %v4654_v37 }
  0xfa   : > { %v701_v41 = vmax.f32 %v579_v36, 0.0  ;;  %v654_v44 = vadd.f32 %v4654_v37, %v653_v15 }
  0xfb   : > { %v3926_v16 = vpop.f32.mrb[10].mxu0  ;;  %v700_v42 = vmax.f32 %v574_v38, 0.0  ;;  %v717_v45 = vmax.f32 %v659_v43, 0.0 }
  0xfc   : > { %v3950_v17 = vpop.f32.mrb[10].mxu1  ;;  %764 = vrot.lane.b32.xlu0 %v696_v11, %s4480_s17  ;;  %v583_v22 = vpop.f32.mrb[11].mxu0  ;;  %v716_v46 = vmax.f32 %v654_v44, 0.0  ;;  %v589_v47 = vadd.f32 %v3926_v16, %v4654_v37 }
  0xfd   : > { %766 = vrot.lane.b32.xlu1 %v697_v10, %s4480_s17  ;;  %v663_v23 = vpop.f32.mrb[11].mxu1  ;;  %v584_v48 = vadd.f32 %v4654_v37, %v583_v22  ;;  %v669_v51 = vadd.f32 %v3950_v17, %v4654_v37 }
  0xfe   : > { %v703_v49 = vmax.f32 %v589_v47, 0.0  ;;  %v664_v52 = vadd.f32 %v4654_v37, %v663_v23 }
  0xff   : > { %v3929_v24 = vpop.f32.mrb[12].mxu0  ;;  %v702_v50 = vmax.f32 %v584_v48, 0.0  ;;  %v719_v53 = vmax.f32 %v669_v51, 0.0 }
 0x100   : > { %v3953_v25 = vpop.f32.mrb[12].mxu1  ;;  %796 = vrot.lane.b32.xlu0 %v712_v19, %s4480_s17  ;;  %v593_v30 = vpop.f32.mrb[13].mxu0  ;;  %v718_v54 = vmax.f32 %v664_v52, 0.0  ;;  %v599_v55 = vadd.f32 %v3929_v24, %v4654_v37 }
 0x101   : > { %798 = vrot.lane.b32.xlu1 %v713_v18, %s4480_s17  ;;  %v673_v31 = vpop.f32.mrb[13].mxu1  ;;  %v594_v56 = vadd.f32 %v4654_v37, %v593_v30  ;;  %v679_v59 = vadd.f32 %v3953_v25, %v4654_v37 }
 0x102   : > { %v705_v57 = vmax.f32 %v599_v55, 0.0  ;;  %v674_v60 = vadd.f32 %v4654_v37, %v673_v31 }
 0x103   : > { %v3932_v32 = vpop.f32.mrb[14].mxu0  ;;  %v704_v58 = vmax.f32 %v594_v56, 0.0  ;;  %v721_v61 = vmax.f32 %v679_v59, 0.0 }
 0x104   : > { %v3956_v33 = vpop.f32.mrb[14].mxu1  ;;  %768 = vrot.lane.b32.xlu0 %v698_v27, %s4480_s17  ;;  %v603_v39 = vpop.f32.mrb[15].mxu0  ;;  %v720_v62 = vmax.f32 %v674_v60, 0.0  ;;  %v609_v63 = vadd.f32 %v3932_v32, %v4654_v37 }
 0x105   : > { %770 = vrot.lane.b32.xlu1 %v699_v26, %s4480_s17  ;;  %v683_v40 = vpop.f32.mrb[15].mxu1  ;;  %v604_v0 = vadd.f32 %v4654_v37, %v603_v39  ;;  %v689_v3 = vadd.f32 %v3956_v33, %v4654_v37 }
 0x106   : > { %v707_v1 = vmax.f32 %v609_v63, 0.0  ;;  %v684_v4 = vadd.f32 %v4654_v37, %v683_v40 }
 0x107   : > { %v706_v2 = vmax.f32 %v604_v0, 0.0  ;;  %v723_v5 = vmax.f32 %v689_v3, 0.0 }
 0x108   : > { %800 = vrot.lane.b32.xlu0 %v714_v35, %s4480_s17  ;;  %v722_v6 = vmax.f32 %v684_v4, 0.0 }
 0x109   : > { %802 = vrot.lane.b32.xlu1 %v715_v34, %s4480_s17 }
 0x10c   : > { %772 = vrot.lane.b32.xlu0 %v700_v42, %s4480_s17 }
 0x10d   : > { %774 = vrot.lane.b32.xlu1 %v701_v41, %s4480_s17 }
 0x110   : > { %804 = vrot.lane.b32.xlu0 %v716_v46, %s4480_s17 }
 0x111   : > { %806 = vrot.lane.b32.xlu1 %v717_v45, %s4480_s17 }
 0x114   : > { %776 = vrot.lane.b32.xlu0 %v702_v50, %s4480_s17 }
 0x115   : > { %778 = vrot.lane.b32.xlu1 %v703_v49, %s4480_s17 }
 0x118   : > { %808 = vrot.lane.b32.xlu0 %v718_v54, %s4480_s17 }
 0x119   : > { %810 = vrot.lane.b32.xlu1 %v719_v53, %s4480_s17 }
 0x11c   : > { %780 = vrot.lane.b32.xlu0 %v704_v58, %s4480_s17 }
 0x11d   : > { %782 = vrot.lane.b32.xlu1 %v705_v57, %s4480_s17 }
 0x120   : > { %812 = vrot.lane.b32.xlu0 %v720_v62, %s4480_s17 }
 0x121   : > { %814 = vrot.lane.b32.xlu1 %v721_v61, %s4480_s17 }
 0x124   : > { %784 = vrot.lane.b32.xlu0 %v706_v2, %s4480_s17 }
 0x125   : > { %786 = vrot.lane.b32.xlu1 %v707_v1, %s4480_s17 }
 0x128   : > { %816 = vrot.lane.b32.xlu0 %v722_v6, %s4480_s17 }
 0x129   : > { %818 = vrot.lane.b32.xlu1 %v723_v5, %s4480_s17 }
 0x15e   : > { %v759_v8 = vpop.permute.xlu0 %758 }
 0x15f   : > { %v791_v7 = vpop.permute.xlu1 %790  ;;  %854 = vst.msk [vmem:[#allocation2 + $0x30] sm:$0xff] %vm852_vm6, %v759_v8 }
 0x160   : > { %870 = vst.msk [vmem:[#allocation2 + $0x130] sm:$0xff] %vm852_vm6, %v791_v7 }
 0x162   : > { %v757_v10 = vpop.permute.xlu0 %756 }
 0x163   : > { %v763_v9 = vpop.permute.xlu1 %762  ;;  %853 = vst.msk [vmem:[#allocation2 + $0x20] sm:$0xff] %vm852_vm6, %v757_v10 }
 0x164   : > { %856 = vst.msk [vmem:[#allocation2 + $0x50] sm:$0xff] %vm852_vm6, %v763_v9 }
 0x166   : > { %v789_v11 = vpop.permute.xlu0 %788 }
 0x167   : > { %v795_v37 = vpop.permute.xlu1 %794  ;;  %869 = vst.msk [vmem:[#allocation2 + $0x120] sm:$0xff] %vm852_vm6, %v789_v11 }
 0x168   : > { %872 = vst.msk [vmem:[#allocation2 + $0x150] sm:$0xff] %vm852_vm6, %v795_v37 }
 0x16a   : > { %v793_v13 = vpop.permute.xlu0 %792 }
 0x16b   : > { %v761_v12 = vpop.permute.xlu1 %760  ;;  %871 = vst.msk [vmem:[#allocation2 + $0x140] sm:$0xff] %vm852_vm6, %v793_v13 }
 0x16c   : > { %855 = vst.msk [vmem:[#allocation2 + $0x40] sm:$0xff] %vm852_vm6, %v761_v12 }
 0x16e   : > { %v765_v15 = vpop.permute.xlu0 %764 }
 0x16f   : > { %v767_v14 = vpop.permute.xlu1 %766  ;;  %857 = vst.msk [vmem:[#allocation2 + $0x60] sm:$0xff] %vm852_vm6, %v765_v15 }
 0x170   : > { %858 = vst.msk [vmem:[#allocation2 + $0x70] sm:$0xff] %vm852_vm6, %v767_v14 }
 0x172   : > { %v797_v17 = vpop.permute.xlu0 %796 }
 0x173   : > { %v799_v16 = vpop.permute.xlu1 %798  ;;  %873 = vst.msk [vmem:[#allocation2 + $0x160] sm:$0xff] %vm852_vm6, %v797_v17 }
 0x174   : > { %874 = vst.msk [vmem:[#allocation2 + $0x170] sm:$0xff] %vm852_vm6, %v799_v16 }
 0x176   : > { %v769_v19 = vpop.permute.xlu0 %768 }
 0x177   : > { %v771_v18 = vpop.permute.xlu1 %770  ;;  %859 = vst.msk [vmem:[#allocation2 + $0x80] sm:$0xff] %vm852_vm6, %v769_v19 }
 0x178   : > { %860 = vst.msk [vmem:[#allocation2 + $0x90] sm:$0xff] %vm852_vm6, %v771_v18 }
 0x17a   : > { %v801_v21 = vpop.permute.xlu0 %800 }
 0x17b   : > { %v803_v20 = vpop.permute.xlu1 %802  ;;  %875 = vst.msk [vmem:[#allocation2 + $0x180] sm:$0xff] %vm852_vm6, %v801_v21 }
 0x17c   : > { %876 = vst.msk [vmem:[#allocation2 + $0x190] sm:$0xff] %vm852_vm6, %v803_v20 }
 0x17e   : > { %v773_v23 = vpop.permute.xlu0 %772 }
 0x17f   : > { %v775_v22 = vpop.permute.xlu1 %774  ;;  %861 = vst.msk [vmem:[#allocation2 + $0xa0] sm:$0xff] %vm852_vm6, %v773_v23 }
 0x180   : > { %862 = vst.msk [vmem:[#allocation2 + $0xb0] sm:$0xff] %vm852_vm6, %v775_v22 }
 0x182   : > { %v805_v25 = vpop.permute.xlu0 %804 }
 0x183   : > { %v807_v24 = vpop.permute.xlu1 %806  ;;  %877 = vst.msk [vmem:[#allocation2 + $0x1a0] sm:$0xff] %vm852_vm6, %v805_v25 }
 0x184   : > { %878 = vst.msk [vmem:[#allocation2 + $0x1b0] sm:$0xff] %vm852_vm6, %v807_v24 }
 0x186   : > { %v777_v27 = vpop.permute.xlu0 %776 }
 0x187   : > { %v779_v26 = vpop.permute.xlu1 %778  ;;  %863 = vst.msk [vmem:[#allocation2 + $0xc0] sm:$0xff] %vm852_vm6, %v777_v27 }
 0x188   : > { %864 = vst.msk [vmem:[#allocation2 + $0xd0] sm:$0xff] %vm852_vm6, %v779_v26 }
 0x18a   : > { %v809_v29 = vpop.permute.xlu0 %808 }
 0x18b   : > { %v811_v28 = vpop.permute.xlu1 %810  ;;  %879 = vst.msk [vmem:[#allocation2 + $0x1c0] sm:$0xff] %vm852_vm6, %v809_v29 }
 0x18c   : > { %880 = vst.msk [vmem:[#allocation2 + $0x1d0] sm:$0xff] %vm852_vm6, %v811_v28 }
 0x18e   : > { %v781_v31 = vpop.permute.xlu0 %780 }
 0x18f   : > { %v783_v30 = vpop.permute.xlu1 %782  ;;  %865 = vst.msk [vmem:[#allocation2 + $0xe0] sm:$0xff] %vm852_vm6, %v781_v31 }
 0x190   : > { %866 = vst.msk [vmem:[#allocation2 + $0xf0] sm:$0xff] %vm852_vm6, %v783_v30 }
 0x192   : > { %v813_v33 = vpop.permute.xlu0 %812 }
 0x193   : > { %v815_v32 = vpop.permute.xlu1 %814  ;;  %881 = vst.msk [vmem:[#allocation2 + $0x1e0] sm:$0xff] %vm852_vm6, %v813_v33 }
 0x194   : > { %882 = vst.msk [vmem:[#allocation2 + $0x1f0] sm:$0xff] %vm852_vm6, %v815_v32 }
 0x196   : > { %v785_v35 = vpop.permute.xlu0 %784 }
 0x197   : > { %v787_v34 = vpop.permute.xlu1 %786  ;;  %867 = vst.msk [vmem:[#allocation2 + $0x100] sm:$0xff] %vm852_vm6, %v785_v35 }
 0x198   : > { %868 = vst.msk [vmem:[#allocation2 + $0x110] sm:$0xff] %vm852_vm6, %v787_v34 }
 0x19a   : > { %v817_v38 = vpop.permute.xlu0 %816 }
 0x19b   : > { %v819_v36 = vpop.permute.xlu1 %818  ;;  %883 = vst.msk [vmem:[#allocation2 + $0x200] sm:$0xff] %vm852_vm6, %v817_v38 }
 0x19c   : > { %884 = vst.msk [vmem:[#allocation2 + $0x210] sm:$0xff] %vm852_vm6, %v819_v36 }
 0x19d LB: >> { %v891_v39 = vld [vmem:[#allocation2 + $0x20] sm:$0xff]  ;;  %v892_v40 = vld [vmem:[#allocation2 + $0x30] sm:$0xff]  ;;  %vm1132_vm7 = vcmask 1046528   ;;  %v4481_v44 = vmov 0.0|0.0   ;;  %s4482_s19 = smov 64   ;;  %s3615_s20 = smul.u32 576, %s4476_s18  ;;  %s4476_s18 = sphi %s4752_s18, %s890_s18  }
 0x19e   : >> { %v1133_v41 = vrot.slane %v891_v39, 1  ;;  %v1134_v42 = vrot.slane %v892_v40, 1  ;;  %v956_v43 = vrot.slane %v892_v40, 7  ;;  %4027 = vmatprep.subr.bf16.mxu1 %v4481_v44  ;;  %4063 = vmatprep.subr.bf16.mxu0 %v4481_v44  ;;  %v955_v45 = vrot.slane %v891_v39, 7  ;;  %v893_v46 = vld [vmem:[#allocation2 + $0x40] sm:$0xff]  ;;  %v894_v47 = vld [vmem:[#allocation2 + $0x50] sm:$0xff]  ;;  %s1310_s27 = scalar_lea.vmem %s5790_s4, %s4476_s18 }
 0x19f   : >> { %v1136_v50 = vrot.slane %v893_v46, 1  ;;  %v1137_v51 = vrot.slane %v894_v47, 1  ;;  %v958_v52 = vrot.slane %v893_v46, 7  ;;  %s4768_s23 = scalar_lea.vmem %s5789_s3, %s3615_s20  ;;  %v959_v53 = vrot.slane %v894_v47, 7  ;;  %v895_v55 = vld [vmem:[#allocation2 + $0x60] sm:$0xff]  ;;  %v896_v56 = vld [vmem:[#allocation2 + $0x70] sm:$0xff] }
 0x1a0   : >> { %v1135_v48 = vsel %vm1132_vm7, %v1133_v41, %v1134_v42  ;;  %1183 = vrot.lane.b32.xlu1 %v1134_v42, %s4482_s19  ;;  %v957_v49 = vsel %vm463_vm0, %v955_v45, %v956_v43  ;;  %v1385_v57 = vld [vmem:[%s4768_s23] sm:$0xff]  ;;  %v1386_v58 = vld [vmem:[%s4768_s23 + $0x8] sm:$0xff]  ;;  %v1387_v60 = vld [vmem:[%s4768_s23 + $0x10] sm:$0xff]  ;;  %v1139_v62 = vrot.slane %v895_v55, 1  ;;  %v1140_v63 = vrot.slane %v896_v56, 1  ;;  %s890_s18 = sadd.s32 1, %s4476_s18  }
 0x1a1   : >> { %1181 = vrot.lane.b32.xlu0 %v1135_v48, %s4482_s19  ;;  %v1138_v54 = vsel %vm1132_vm7, %v1136_v50, %v1137_v51  ;;  %v960_v59 = vsel %vm463_vm0, %v958_v52, %v959_v53  ;;  %v1388_v61 = vld [vmem:[%s4768_s23 + $0x18] sm:$0xff]  ;;  %v4028_v0 = vpack.c.bf16 %v1386_v58, %v1385_v57  ;;  %v3649_v1 = vld [vmem:[%s4768_s23 + $0xc0] sm:$0xff]  ;;  %v3650_v2 = vld [vmem:[%s4768_s23 + $0xc8] sm:$0xff]  ;;  %v961_v3 = vrot.slane %v895_v55, 7  ;;  %p887_p4 = scmp.ge.s32.totalorder %s890_s18, 7  }
 0x1a2   : >> { %v4031_v4 = vpack.c.bf16 %v1388_v61, %v1387_v60  ;;  %v3651_v5 = vld [vmem:[%s4768_s23 + $0xd0] sm:$0xff]  ;;  %v3652_v6 = vld [vmem:[%s4768_s23 + $0xd8] sm:$0xff]  ;;  %v962_v7 = vrot.slane %v896_v56, 7  ;;  %v1389_v8 = vld [vmem:[%s4768_s23 + $0x20] sm:$0xff]  ;;  %v4788_v10 = vpack.c.bf16 %v3650_v2, %v3649_v1  ;;  %v1141_v37 = vsel %vm1132_vm7, %v1139_v62, %v1140_v63 }
 0x1a3   : >> { %4029 = vmatpush1.bf16.msra.mxu1 %v4028_v0  ;;  %v1390_v9 = vld [vmem:[%s4768_s23 + $0x28] sm:$0xff]  ;;  %v897_v11 = vld [vmem:[#allocation2 + $0x80] sm:$0xff]  ;;  %v898_v12 = vld [vmem:[#allocation2 + $0x90] sm:$0xff]  ;;  %v4792_v13 = vpack.c.bf16 %v3652_v6, %v3651_v5  ;;  %vm1278_vm8 = vcmask 522240   ;;  %vm1099_vm9 = vcmask 523265   ;;  %vm3467_vm10 = vcmask (%p887_p4), 7168  }
 0x1a4   : >> { %1005 = vrot.lane.b32.xlu1 %v957_v49, %s4482_s19  ;;  %4030 = vmatprep.subr.bf16.mxu1 %v4481_v44  ;;  %v4034_v14 = vpack.c.bf16 %v1390_v9, %v1389_v8  ;;  %v3653_v15 = vld [vmem:[%s4768_s23 + $0xe0] sm:$0xff]  ;;  %v3654_v16 = vld [vmem:[%s4768_s23 + $0xe8] sm:$0xff]  ;;  %v963_v17 = vsel %vm463_vm0, %v961_v3, %v962_v7  ;;  %v1391_v18 = vld [vmem:[%s4768_s23 + $0x30] sm:$0xff]  ;;  %v1142_v20 = vrot.slane %v897_v11, 1  ;;  %v1143_v21 = vrot.slane %v898_v12, 1 }
 0x1a5   : >> { %1003 = vrot.lane.b32.xlu0 %v955_v45, %s4482_s19  ;;  %4065 = vmatpush1.bf16.msra.mxu0 %v4788_v10  ;;  %v1392_v19 = vld [vmem:[%s4768_s23 + $0x38] sm:$0xff]  ;;  %v4804_v22 = vpack.c.bf16 %v3654_v16, %v3653_v15  ;;  %v964_v23 = vrot.slane %v897_v11, 7  ;;  %v3655_v25 = vld [vmem:[%s4768_s23 + $0xf0] sm:$0xff]  ;;  %v965_v27 = vrot.slane %v898_v12, 7  ;;  %v1393_v28 = vld [vmem:[%s4768_s23 + $0x40] sm:$0xff] }
 0x1a6   : >> { %4066 = vmatprep.subr.bf16.mxu0 %v4481_v44  ;;  %v4037_v24 = vpack.c.bf16 %v1392_v19, %v1391_v18  ;;  %v3656_v26 = vld [vmem:[%s4768_s23 + $0xf8] sm:$0xff]  ;;  %v1394_v29 = vld [vmem:[%s4768_s23 + $0x48] sm:$0xff]  ;;  %v1144_v30 = vsel %vm1132_vm7, %v1142_v20, %v1143_v21  ;;  %v899_v32 = vld [vmem:[#allocation2 + $0xa0] sm:$0xff] }
 0x1a7   : >> { %4032 = vmatpush1.bf16.msra.mxu1 %v4031_v4  ;;  %v1319_v31 = vld [vmem:[#allocation2 + $0x8] sm:$0xff]  ;;  %v900_v33 = vld [vmem:[#allocation2 + $0xb0] sm:$0xff]  ;;  %v4816_v34 = vpack.c.bf16 %v3656_v26, %v3655_v25  ;;  %v4040_v35 = vpack.c.bf16 %v1394_v29, %v1393_v28  ;;  %v3657_v36 = vld [vmem:[%s4768_s23 + $0x100] sm:$0xff]  ;;  %v966_v39 = vsel %vm463_vm0, %v964_v23, %v965_v27  ;;  %v1145_v42 = vrot.slane %v899_v32, 1 }
 0x1a8   : >> { %1007 = vrot.lane.b32.xlu1 %v958_v52, %s4482_s19  ;;  %4033 = vmatprep.subr.bf16.mxu1 %v4481_v44  ;;  %v3658_v38 = vld [vmem:[%s4768_s23 + $0x108] sm:$0xff]  ;;  %v1395_v40 = vld [vmem:[%s4768_s23 + $0x50] sm:$0xff]  ;;  %v1396_v41 = vld [vmem:[%s4768_s23 + $0x58] sm:$0xff]  ;;  %v1146_v43 = vrot.slane %v900_v33, 1  ;;  %v967_v46 = vrot.slane %v899_v32, 7  ;;  %v968_v50 = vrot.slane %v900_v33, 7 }
 0x1a9   : >> { %1185 = vrot.lane.b32.xlu0 %v1138_v54, %s4482_s19  ;;  %4068 = vmatpush1.bf16.msra.mxu0 %v4792_v13  ;;  %v4829_v45 = vpack.c.bf16 %v3658_v38, %v3657_v36  ;;  %v4043_v47 = vpack.c.bf16 %v1396_v41, %v1395_v40  ;;  %v3659_v48 = vld [vmem:[%s4768_s23 + $0x110] sm:$0xff]  ;;  %v3660_v49 = vld [vmem:[%s4768_s23 + $0x118] sm:$0xff]  ;;  %v1398_v52 = vld [vmem:[%s4768_s23 + $0x68] sm:$0xff] }
 0x1aa   : >> { %4069 = vmatprep.subr.bf16.mxu0 %v4481_v44  ;;  %3616 = vmatprep.mubr.msk.f32.mxu1 %vm282_vm5, %v1319_v31  ;;  %v1147_v53 = vsel %vm1132_vm7, %v1145_v42, %v1146_v43  ;;  %v901_v54 = vld [vmem:[#allocation2 + $0xc0] sm:$0xff]  ;;  %v902_v55 = vld [vmem:[#allocation2 + $0xd0] sm:$0xff]  ;;  %v4841_v56 = vpack.c.bf16 %v3660_v49, %v3659_v48  ;;  %v969_v60 = vsel %vm463_vm0, %v967_v46, %v968_v50  ;;  %v1400_v62 = vld [vmem:[%s4768_s23 + $0x78] sm:$0xff] }
 0x1ab   : >> { %4035 = vmatpush1.bf16.msra.mxu1 %v4034_v14  ;;  %v3661_v58 = vld [vmem:[%s4768_s23 + $0x120] sm:$0xff]  ;;  %v1399_v61 = vld [vmem:[%s4768_s23 + $0x70] sm:$0xff]  ;;  %v1149_v0 = vrot.slane %v902_v55, 1  ;;  %v970_v2 = vrot.slane %v901_v54, 7  ;;  %v3664_v5 = vld [vmem:[%s4768_s23 + $0x138] sm:$0xff]  ;;  %v971_v6 = vrot.slane %v902_v55, 7 }
 0x1ac   : >> { %1009 = vrot.lane.b32.xlu1 %v960_v59, %s4482_s19  ;;  %4036 = vmatprep.subr.bf16.mxu1 %v4481_v44  ;;  %v3662_v59 = vld [vmem:[%s4768_s23 + $0x128] sm:$0xff]  ;;  %v3663_v4 = vld [vmem:[%s4768_s23 + $0x130] sm:$0xff]  ;;  %v1401_v7 = vld [vmem:[%s4768_s23 + $0x80] sm:$0xff] }
 0x1ad   : >> { %1187 = vrot.lane.b32.xlu0 %v1137_v51, %s4482_s19  ;;  %4071 = vmatpush1.bf16.msra.mxu0 %v4804_v22  ;;  %v1397_v51 = vld [vmem:[%s4768_s23 + $0x60] sm:$0xff]  ;;  %v4853_v1 = vpack.c.bf16 %v3662_v59, %v3661_v58  ;;  %v1402_v8 = vld [vmem:[%s4768_s23 + $0x88] sm:$0xff]  ;;  %v904_v11 = vld [vmem:[#allocation2 + $0xf0] sm:$0xff]  ;;  %v4865_v12 = vpack.c.bf16 %v3664_v5, %v3663_v4 }
 0x1ae   : >> { %4072 = vmatprep.subr.bf16.mxu0 %v4481_v44  ;;  %v4046_v57 = vpack.c.bf16 %v1398_v52, %v1397_v51  ;;  %v4052_v14 = vpack.c.bf16 %v1402_v8, %v1401_v7  ;;  %v3665_v15 = vld [vmem:[%s4768_s23 + $0x140] sm:$0xff]  ;;  %v3666_v16 = vld [vmem:[%s4768_s23 + $0x148] sm:$0xff]  ;;  %v1403_v18 = vld [vmem:[%s4768_s23 + $0x90] sm:$0xff]  ;;  %v974_v28 = vrot.slane %v904_v11, 7 }
 0x1af   : >> { %4038 = vmatpush1.bf16.msra.mxu1 %v4037_v24  ;;  %v1404_v19 = vld [vmem:[%s4768_s23 + $0x98] sm:$0xff]  ;;  %v3667_v26 = vld [vmem:[%s4768_s23 + $0x150] sm:$0xff]  ;;  %v1405_v29 = vld [vmem:[%s4768_s23 + $0xa0] sm:$0xff] }
 0x1b0   : >> { %1011 = vrot.lane.b32.xlu1 %v961_v3, %s4482_s19  ;;  %4039 = vmatprep.subr.bf16.mxu1 %v4481_v44  ;;  %v4049_v3 = vpack.c.bf16 %v1400_v62, %v1399_v61  ;;  %v4055_v25 = vpack.c.bf16 %v1404_v19, %v1403_v18  ;;  %v3668_v27 = vld [vmem:[%s4768_s23 + $0x158] sm:$0xff]  ;;  %v905_v32 = vld [vmem:[#allocation2 + $0x100] sm:$0xff]  ;;  %v906_v33 = vld [vmem:[#allocation2 + $0x110] sm:$0xff] }
 0x1b1   : >> { %1189 = vrot.lane.b32.xlu0 %v1141_v37, %s4482_s19  ;;  %4074 = vmatpush1.bf16.msra.mxu0 %v4816_v34  ;;  %v903_v37 = vld [vmem:[#allocation2 + $0xe0] sm:$0xff]  ;;  %v1407_v41 = vld [vmem:[%s4768_s23 + $0xb0] sm:$0xff]  ;;  %v1408_v42 = vld [vmem:[%s4768_s23 + $0xb8] sm:$0xff]  ;;  %v976_v48 = vrot.slane %v905_v32, 7  ;;  %v977_v52 = vrot.slane %v906_v33, 7 }
 0x1b2   : >> { %4075 = vmatprep.subr.bf16.mxu0 %v4481_v44  ;;  %v1151_v20 = vrot.slane %v903_v37, 1  ;;  %v973_v24 = vrot.slane %v903_v37, 7  ;;  %v3669_v38 = vld [vmem:[%s4768_s23 + $0x160] sm:$0xff]  ;;  %v4061_v49 = vpack.c.bf16 %v1408_v42, %v1407_v41  ;;  %v3671_v50 = vld [vmem:[%s4768_s23 + $0x170] sm:$0xff]  ;;  %v3672_v51 = vld [vmem:[%s4768_s23 + $0x178] sm:$0xff] }
 0x1b3   : >> { %4041 = vmatpush1.bf16.msra.mxu1 %v4040_v35  ;;  %v4889_v35 = vpack.c.bf16 %v3668_v27, %v3667_v26  ;;  %v908_v55 = vld [vmem:[#allocation2 + $0x130] sm:$0xff]  ;;  %v1318_v58 = vld [vmem:[#allocation2] sm:$0xff]  ;;  %v978_v59 = vsel %vm463_vm0, %v976_v48, %v977_v52 }
 0x1b4   : >> { %1013 = vrot.lane.b32.xlu1 %v963_v17, %s4482_s19  ;;  %4042 = vmatprep.subr.bf16.mxu1 %v4481_v44  ;;  %v972_v17 = vsel %vm463_vm0, %v970_v2, %v971_v6  ;;  %v975_v40 = vsel %vm463_vm0, %v973_v24, %v974_v28  ;;  %v1158_v62 = vrot.slane %v908_v55, 1  ;;  %v909_v4 = vld [vmem:[#allocation2 + $0x140] sm:$0xff]  ;;  %v910_v5 = vld [vmem:[#allocation2 + $0x150] sm:$0xff] }
 0x1b5   : >> { %1191 = vrot.lane.b32.xlu0 %v1140_v63, %s4482_s19  ;;  %4077 = vmatpush1.bf16.msra.mxu0 %v4829_v45  ;;  %v1148_v63 = vrot.slane %v901_v54, 1  ;;  %v907_v54 = vld [vmem:[#allocation2 + $0x120] sm:$0xff]  ;;  %v1160_v7 = vrot.slane %v909_v4, 1  ;;  %v1161_v8 = vrot.slane %v910_v5, 1  ;;  %v916_v28 = vld [vmem:[#allocation2 + $0x1b0] sm:$0xff] }
 0x1b6   : >> { %4078 = vmatprep.subr.bf16.mxu0 %v4481_v44  ;;  %v1157_v61 = vrot.slane %v907_v54, 1  ;;  %v913_v19 = vld [vmem:[#allocation2 + $0x180] sm:$0xff]  ;;  %v922_v52 = vld [vmem:[#allocation2 + $0x210] sm:$0xff] }
 0x1b7   : >> { %4044 = vmatpush1.bf16.msra.mxu1 %v4043_v47  ;;  %v1150_v9 = vsel %vm1132_vm7, %v1148_v63, %v1149_v0  ;;  %v979_v63 = vrot.slane %v907_v54, 7  ;;  %v1162_v37 = vsel %vm1132_vm7, %v1160_v7, %v1161_v8  ;;  %v915_v27 = vld [vmem:[#allocation2 + $0x1a0] sm:$0xff] }
 0x1b8   : >> { %1015 = vrot.lane.b32.xlu1 %v964_v23, %s4482_s19  ;;  %4045 = vmatprep.subr.bf16.mxu1 %v4481_v44  ;;  %v4877_v23 = vpack.c.bf16 %v3666_v16, %v3665_v15  ;;  %v919_v42 = vld [vmem:[#allocation2 + $0x1e0] sm:$0xff] }
 0x1b9   : >> { %1193 = vrot.lane.b32.xlu0 %v1144_v30, %s4482_s19  ;;  %4080 = vmatpush1.bf16.msra.mxu0 %v4841_v56  ;;  %v1406_v30 = vld [vmem:[%s4768_s23 + $0xa8] sm:$0xff] }
 0x1ba   : >> { %4081 = vmatprep.subr.bf16.mxu0 %v4481_v44  ;;  %v4058_v36 = vpack.c.bf16 %v1406_v30, %v1405_v29  ;;  %v1169_v29 = vrot.slane %v915_v27, 1  ;;  %v1170_v30 = vrot.slane %v916_v28, 1 }
 0x1bb   : >> { %4047 = vmatpush1.bf16.msra.mxu1 %v4046_v57  ;;  %v4911_v57 = vpack.c.bf16 %v3672_v51, %v3671_v50  ;;  %v921_v51 = vld [vmem:[#allocation2 + $0x200] sm:$0xff] }
 0x1bc   : >> { %1017 = vrot.lane.b32.xlu1 %v966_v39, %s4482_s19  ;;  %4048 = vmatprep.subr.bf16.mxu1 %v4481_v44  ;;  %v3670_v39 = vld [vmem:[%s4768_s23 + $0x168] sm:$0xff] }
 0x1bd   : >> { %1195 = vrot.lane.b32.xlu0 %v1143_v21, %s4482_s19  ;;  %4083 = vmatpush1.bf16.msra.mxu0 %v4853_v1  ;;  %v1152_v21 = vrot.slane %v904_v11, 1  ;;  %v4901_v47 = vpack.c.bf16 %v3670_v39, %v3669_v38  ;;  %v911_v11 = vld [vmem:[#allocation2 + $0x160] sm:$0xff] }
 0x1be   : >> { %4084 = vmatprep.subr.bf16.mxu0 %v4481_v44  ;;  %v1163_v15 = vrot.slane %v911_v11, 1 }
 0x1bf   : >> { %4050 = vmatpush1.bf16.msra.mxu1 %v4049_v3  ;;  %v1153_v31 = vsel %vm1132_vm7, %v1151_v20, %v1152_v21  ;;  %v1159_v3 = vsel %vm1132_vm7, %v1157_v61, %v1158_v62  ;;  %v914_v20 = vld [vmem:[#allocation2 + $0x190] sm:$0xff] }
 0x1c0   : >> { %1019 = vrot.lane.b32.xlu1 %v967_v46, %s4482_s19  ;;  %4051 = vmatprep.subr.bf16.mxu1 %v4481_v44  ;;  %v1155_v46 = vrot.slane %v906_v33, 1  ;;  %v917_v33 = vld [vmem:[#allocation2 + $0x1c0] sm:$0xff] }
 0x1c1   : >> { %1197 = vrot.lane.b32.xlu0 %v1147_v53, %s4482_s19  ;;  %4086 = vmatpush1.bf16.msra.mxu0 %v4865_v12  ;;  %v1172_v38 = vrot.slane %v917_v33, 1 }
 0x1c2   : >> { %4087 = vmatprep.subr.bf16.mxu0 %v4481_v44 }
 0x1c3   : >> { %4053 = vmatpush1.bf16.msra.mxu1 %v4052_v14  ;;  %v912_v14 = vld [vmem:[#allocation2 + $0x170] sm:$0xff] }
 0x1c4   : >> { %1021 = vrot.lane.b32.xlu1 %v969_v60, %s4482_s19  ;;  %4054 = vmatprep.subr.bf16.mxu1 %v4481_v44  ;;  %v1321_v60 = vld [vmem:[#allocation2 + $0x18] sm:$0xff]  ;;  %v1164_v16 = vrot.slane %v912_v14, 1 }
 0x1c5   : >> { %1199 = vrot.lane.b32.xlu0 %v1146_v43, %s4482_s19  ;;  %4089 = vmatpush1.bf16.msra.mxu0 %v4877_v23  ;;  %v1154_v43 = vrot.slane %v905_v32, 1  ;;  %v1171_v32 = vsel %vm1132_vm7, %v1169_v29, %v1170_v30 }
 0x1c6   : >> { %4090 = vmatprep.subr.bf16.mxu0 %v4481_v44  ;;  %v1165_v18 = vsel %vm1132_vm7, %v1163_v15, %v1164_v16 }
 0x1c7   : >> { %4056 = vmatpush1.bf16.msra.mxu1 %v4055_v25  ;;  %v1156_v53 = vsel %vm1132_vm7, %v1154_v43, %v1155_v46  ;;  %v989_v25 = vrot.slane %v914_v20, 7  ;;  %v920_v43 = vld [vmem:[#allocation2 + $0x1f0] sm:$0xff] }
 0x1c8   : >> { %1023 = vrot.lane.b32.xlu1 %v970_v2, %s4482_s19  ;;  %4057 = vmatprep.subr.bf16.mxu1 %v4481_v44  ;;  %v980_v2 = vrot.slane %v908_v55, 7  ;;  %v1178_v55 = vrot.slane %v921_v51, 1 }
 0x1c9   : >> { %1201 = vrot.lane.b32.xlu0 %v1150_v9, %s4482_s19  ;;  %4092 = vmatpush1.bf16.msra.mxu0 %v4889_v35  ;;  %v983_v9 = vrot.slane %v910_v5, 7 }
 0x1ca   : >> { %4093 = vmatprep.subr.bf16.mxu0 %v4481_v44  ;;  %v981_v6 = vsel %vm463_vm0, %v979_v63, %v980_v2  ;;  %v3706_v2 = vld [vmem:[%s4768_s23 + $0x180] sm:$0xff] }
 0x1cb   : >> { %4059 = vmatpush1.bf16.msra.mxu1 %v4058_v36  ;;  %v918_v36 = vld [vmem:[#allocation2 + $0x1d0] sm:$0xff] }
 0x1cc   : >> { %1025 = vrot.lane.b32.xlu1 %v972_v17, %s4482_s19  ;;  %4060 = vmatprep.subr.bf16.mxu1 %v4481_v44  ;;  %v986_v17 = vrot.slane %v912_v14, 7  ;;  %v1173_v39 = vrot.slane %v918_v36, 1 }
 0x1cd   : >> { %1203 = vrot.lane.b32.xlu0 %v1149_v0, %s4482_s19  ;;  %4095 = vmatpush1.bf16.msra.mxu0 %v4901_v47  ;;  %v1320_v0 = vld [vmem:[#allocation2 + $0x10] sm:$0xff] }
 0x1ce   : >> { %4096 = vmatprep.subr.bf16.mxu0 %v4481_v44  ;;  %v1174_v41 = vsel %vm1132_vm7, %v1172_v38, %v1173_v39 }
 0x1cf   : >> { %4062 = vmatpush1.bf16.msra.mxu1 %v4061_v49  ;;  %v997_v49 = vrot.slane %v919_v42, 7 }
 0x1d0   : >> { %1027 = vrot.lane.b32.xlu1 %v973_v24, %s4482_s19  ;;  %4153 = vmatprep.subr.bf16.mxu1 %v4481_v44  ;;  %v1167_v24 = vrot.slane %v914_v20, 1 }
 0x1d1   : >> { %1205 = vrot.lane.b32.xlu0 %v1153_v31, %s4482_s19  ;;  %4098 = vmatpush1.bf16.msra.mxu0 %v4911_v57  ;;  %v992_v31 = vrot.slane %v916_v28, 7 }
 0x1d2   : >> { %1570 = vmatmul.mubr.f32.vlgmr.msra.gmra.mrb[0].mxu1 %v1318_v58  ;;  %4099 = vmatprep.subr.bf16.mxu0 %v4481_v44 }
 0x1d3   : >> { %3617 = vmatprep.mubr.msk.f32.mxu1 %vm282_vm5, %v1321_v60  ;;  %4165 = vmatpush1.bf16.msra.mxu1 %v4788_v10  ;;  %v982_v10 = vrot.slane %v909_v4, 7 }
 0x1d4   : >> { %1029 = vrot.lane.b32.xlu1 %v975_v40, %s4482_s19  ;;  %4154 = vmatprep.subr.bf16.mxu1 %v4481_v44  ;;  %v995_v40 = vrot.slane %v918_v36, 7 }
 0x1d5   : >> { %1207 = vrot.lane.b32.xlu0 %v1152_v21, %s4482_s19  ;;  %v1166_v21 = vrot.slane %v913_v19, 1 }
 0x1d6   : >> { %1575 = vmatmul.mubr.f32.gmra.mrb[2].mxu1 %v1320_v0 }
 0x1d7   : >> { %4166 = vmatpush1.bf16.msra.mxu1 %v4792_v13  ;;  %v984_v13 = vsel %vm463_vm0, %v982_v10, %v983_v9  ;;  %v1168_v26 = vsel %vm1132_vm7, %v1166_v21, %v1167_v24  ;;  %v3708_v9 = vld [vmem:[%s4768_s23 + $0x190] sm:$0xff] }
 0x1d8   : >> { %1031 = vrot.lane.b32.xlu1 %v976_v48, %s4482_s19  ;;  %4155 = vmatprep.subr.bf16.mxu1 %v4481_v44  ;;  %v1176_v48 = vrot.slane %v920_v43, 1 }
 0x1d9   : >> { %1209 = vrot.lane.b32.xlu0 %v1156_v53, %s4482_s19 }
 0x1db   : >> { %4167 = vmatpush1.bf16.msra.mxu1 %v4804_v22  ;;  %v985_v22 = vrot.slane %v911_v11, 7 }
 0x1dc   : >> { %1033 = vrot.lane.b32.xlu1 %v978_v59, %s4482_s19  ;;  %4156 = vmatprep.subr.bf16.mxu1 %v4481_v44  ;;  %v1000_v59 = vrot.slane %v921_v51, 7 }
 0x1dd   : >> { %1211 = vrot.lane.b32.xlu0 %v1155_v46, %s4482_s19  ;;  %v1175_v46 = vrot.slane %v919_v42, 1 }
 0x1df   : >> { %4168 = vmatpush1.bf16.msra.mxu1 %v4816_v34  ;;  %v987_v34 = vsel %vm463_vm0, %v985_v22, %v986_v17  ;;  %v1177_v50 = vsel %vm1132_vm7, %v1175_v46, %v1176_v48  ;;  %v3718_v46 = vld [vmem:[%s4768_s23 + $0x1e0] sm:$0xff] }
 0x1e0   : >> { %1035 = vrot.lane.b32.xlu1 %v979_v63, %s4482_s19  ;;  %4157 = vmatprep.subr.bf16.mxu1 %v4481_v44 }
 0x1e1   : >> { %1213 = vrot.lane.b32.xlu0 %v1159_v3, %s4482_s19  ;;  %v3707_v3 = vld [vmem:[%s4768_s23 + $0x188] sm:$0xff] }
 0x1e2   : >> { %v4100_v7 = vpack.c.bf16 %v3707_v3, %v3706_v2 }
 0x1e3   : >> { %4169 = vmatpush1.bf16.msra.mxu1 %v4829_v45  ;;  %v988_v45 = vrot.slane %v913_v19, 7  ;;  %v3711_v19 = vld [vmem:[%s4768_s23 + $0x1a8] sm:$0xff] }
 0x1e4   : >> { %1037 = vrot.lane.b32.xlu1 %v981_v6, %s4482_s19  ;;  %4158 = vmatprep.subr.bf16.mxu1 %v4481_v44 }
 0x1e5   : >> { %1215 = vrot.lane.b32.xlu0 %v1158_v62, %s4482_s19  ;;  %v1001_v62 = vrot.slane %v922_v52, 7 }
 0x1e7   : >> { %4170 = vmatpush1.bf16.msra.mxu1 %v4841_v56  ;;  %v990_v56 = vsel %vm463_vm0, %v988_v45, %v989_v25  ;;  %v1002_v4 = vsel %vm463_vm0, %v1000_v59, %v1001_v62  ;;  %v3712_v25 = vld [vmem:[%s4768_s23 + $0x1b0] sm:$0xff]  ;;  %v3723_v62 = vld [vmem:[%s4768_s23 + $0x208] sm:$0xff] }
 0x1e8   : >> { %1039 = vrot.lane.b32.xlu1 %v982_v10, %s4482_s19  ;;  %4159 = vmatprep.subr.bf16.mxu1 %v4481_v44 }
 0x1e9   : >> { %1217 = vrot.lane.b32.xlu0 %v1162_v37, %s4482_s19  ;;  %v3709_v37 = vld [vmem:[%s4768_s23 + $0x198] sm:$0xff] }
 0x1ea   : >> { %v4103_v15 = vpack.c.bf16 %v3709_v37, %v3708_v9 }
 0x1eb   : >> { %4171 = vmatpush1.bf16.msra.mxu1 %v4853_v1  ;;  %v991_v1 = vrot.slane %v915_v27, 7 }
 0x1ec   : >> { %1041 = vrot.lane.b32.xlu1 %v984_v13, %s4482_s19  ;;  %4160 = vmatprep.subr.bf16.mxu1 %v4481_v44 }
 0x1ed   : >> { %1219 = vrot.lane.b32.xlu0 %v1161_v8, %s4482_s19 }
 0x1ef   : >> { %4172 = vmatpush1.bf16.msra.mxu1 %v4865_v12  ;;  %v993_v12 = vsel %vm463_vm0, %v991_v1, %v992_v31  ;;  %v3715_v31 = vld [vmem:[%s4768_s23 + $0x1c8] sm:$0xff] }
 0x1f0   : >> { %1043 = vrot.lane.b32.xlu1 %v985_v22, %s4482_s19  ;;  %4161 = vmatprep.subr.bf16.mxu1 %v4481_v44 }
 0x1f1   : >> { %1221 = vrot.lane.b32.xlu0 %v1165_v18, %s4482_s19  ;;  %v3710_v18 = vld [vmem:[%s4768_s23 + $0x1a0] sm:$0xff] }
 0x1f2   : >> { %v4106_v21 = vpack.c.bf16 %v3711_v19, %v3710_v18  ;;  %v3728_v19 = vld [vmem:[%s4768_s23 + $0x230] sm:$0xff] }
 0x1f3   : >> { %4173 = vmatpush1.bf16.msra.mxu1 %v4877_v23  ;;  %v994_v23 = vrot.slane %v917_v33, 7 }
 0x1f4   : >> { %1045 = vrot.lane.b32.xlu1 %v987_v34, %s4482_s19  ;;  %4162 = vmatprep.subr.bf16.mxu1 %v4481_v44 }
 0x1f5   : >> { %1223 = vrot.lane.b32.xlu0 %v1164_v16, %s4482_s19 }
 0x1f7   : >> { %4174 = vmatpush1.bf16.msra.mxu1 %v4889_v35  ;;  %v996_v35 = vsel %vm463_vm0, %v994_v23, %v995_v40 }
 0x1f8   : >> { %1047 = vrot.lane.b32.xlu1 %v988_v45, %s4482_s19  ;;  %4163 = vmatprep.subr.bf16.mxu1 %v4481_v44 }
 0x1f9   : >> { %1225 = vrot.lane.b32.xlu0 %v1168_v26, %s4482_s19  ;;  %v3713_v26 = vld [vmem:[%s4768_s23 + $0x1b8] sm:$0xff] }
 0x1fb   : >> { %4175 = vmatpush1.bf16.msra.mxu1 %v4901_v47  ;;  %v998_v47 = vrot.slane %v920_v43, 7 }
 0x1fc   : >> { %1049 = vrot.lane.b32.xlu1 %v990_v56, %s4482_s19  ;;  %4164 = vmatprep.subr.bf16.mxu1 %v4481_v44  ;;  %v4109_v56 = vpack.c.bf16 %v3713_v26, %v3712_v25 }
 0x1fd   : >> { %1227 = vrot.lane.b32.xlu0 %v1167_v24, %s4482_s19  ;;  %v999_v53 = vsel %vm463_vm0, %v997_v49, %v998_v47 }
 0x1ff   : >> { %4176 = vmatpush1.bf16.msra.mxu1 %v4911_v57  ;;  %v1179_v57 = vrot.slane %v922_v52, 1 }
 0x200   : >> { %1051 = vrot.lane.b32.xlu1 %v991_v1, %s4482_s19  ;;  %v3714_v1 = vld [vmem:[%s4768_s23 + $0x1c0] sm:$0xff] }
 0x201   : >> { %1229 = vrot.lane.b32.xlu0 %v1171_v32, %s4482_s19  ;;  %v1180_v61 = vsel %vm1132_vm7, %v1178_v55, %v1179_v57  ;;  %v4112_v36 = vpack.c.bf16 %v3715_v31, %v3714_v1 }
 0x204   : >> { %1053 = vrot.lane.b32.xlu1 %v993_v12, %s4482_s19 }
 0x205   : >> { %1231 = vrot.lane.b32.xlu0 %v1170_v30, %s4482_s19 }
 0x208   : >> { %1055 = vrot.lane.b32.xlu1 %v994_v23, %s4482_s19  ;;  %v3717_v23 = vld [vmem:[%s4768_s23 + $0x1d8] sm:$0xff] }
 0x209   : >> { %1233 = vrot.lane.b32.xlu0 %v1174_v41, %s4482_s19 }
 0x20c   : >> { %1057 = vrot.lane.b32.xlu1 %v996_v35, %s4482_s19 }
 0x20d   : >> { %1235 = vrot.lane.b32.xlu0 %v1173_v39, %s4482_s19  ;;  %v3716_v39 = vld [vmem:[%s4768_s23 + $0x1d0] sm:$0xff] }
 0x20e   : >> { %v4115_v42 = vpack.c.bf16 %v3717_v23, %v3716_v39 }
 0x210   : >> { %1059 = vrot.lane.b32.xlu1 %v997_v49, %s4482_s19 }
 0x211   : >> { %1237 = vrot.lane.b32.xlu0 %v1177_v50, %s4482_s19 }
 0x212   : >> { %v1184_v54 = vpop.permute.xlu1 %1183 }
 0x213   : >> { %v1182_v58 = vpop.permute.xlu0 %1181  ;;  %1279 = vst.msk [vmem:[#allocation2 + $0x38] sm:$0x7f] %vm1278_vm8, %v1184_v54  ;;  %v3721_v54 = vld [vmem:[%s4768_s23 + $0x1f8] sm:$0xff] }
 0x214   : >> { %1277 = vst.msk [vmem:[#allocation2 + $0x28] sm:$0xff] %vm282_vm5, %v1182_v58  ;;  %1061 = vrot.lane.b32.xlu1 %v999_v53, %s4482_s19  ;;  %v3720_v53 = vld [vmem:[%s4768_s23 + $0x1f0] sm:$0xff] }
 0x215   : >> { %1239 = vrot.lane.b32.xlu0 %v1176_v48, %s4482_s19  ;;  %v3719_v48 = vld [vmem:[%s4768_s23 + $0x1e8] sm:$0xff]  ;;  %v4121_v58 = vpack.c.bf16 %v3721_v54, %v3720_v53 }
 0x216   : >> { %v1006_v60 = vpop.permute.xlu1 %1005  ;;  %v4118_v50 = vpack.c.bf16 %v3719_v48, %v3718_v46 }
 0x217   : >> { %v1004_v63 = vpop.permute.xlu0 %1003  ;;  %1101 = vst.msk [vmem:[#allocation2 + $0x30] sm:$0xff] %vm282_vm5, %v1006_v60 }
 0x218   : >> { %1100 = vst.msk [vmem:[#allocation2 + $0x20] sm:$0xfe] %vm1099_vm9, %v1004_v63  ;;  %1063 = vrot.lane.b32.xlu1 %v1000_v59, %s4482_s19 }
 0x219   : >> { %1241 = vrot.lane.b32.xlu0 %v1180_v61, %s4482_s19  ;;  %v3722_v61 = vld [vmem:[%s4768_s23 + $0x200] sm:$0xff] }
 0x21a   : >> { %v1008_v0 = vpop.permute.xlu1 %1007  ;;  %v1325_v8 = vld [vmem:[#allocation2 + $0x38] sm:$0xff]  ;;  %v4124_v2 = vpack.c.bf16 %v3723_v62, %v3722_v61 }
 0x21b   : >> { %v1323_v5 = vld [vmem:[#allocation2 + $0x28] sm:$0xff]  ;;  %v1186_v6 = vpop.permute.xlu0 %1185  ;;  %1102 = vst.msk [vmem:[#allocation2 + $0x40] sm:$0xfe] %vm1099_vm9, %v1008_v0 }
 0x21c   : >> { %3618 = vmatprep.mubr.msk.f32.mxu1 %vm282_vm5, %v1323_v5  ;;  %3673 = vmatprep.mubr.msk.f32.mxu0 %vm282_vm5, %v1323_v5  ;;  %1280 = vst.msk [vmem:[#allocation2 + $0x48] sm:$0xff] %vm282_vm5, %v1186_v6  ;;  %v3724_v5 = vld [vmem:[%s4768_s23 + $0x210] sm:$0xff]  ;;  %v3725_v6 = vld [vmem:[%s4768_s23 + $0x218] sm:$0xff] }
 0x21d   : >> { %1243 = vrot.lane.b32.xlu0 %v1179_v57, %s4482_s19  ;;  %1065 = vrot.lane.b32.xlu1 %v1002_v4, %s4482_s19 }
 0x21e   : >> { %v1010_v10 = vpop.permute.xlu1 %1009  ;;  %v1324_v13 = vld [vmem:[#allocation2 + $0x30] sm:$0xff] }
 0x21f   : >> { %v1322_v11 = vld [vmem:[#allocation2 + $0x20] sm:$0xff]  ;;  %v1188_v14 = vpop.permute.xlu0 %1187  ;;  %1103 = vst.msk [vmem:[#allocation2 + $0x50] sm:$0xff] %vm282_vm5, %v1010_v10  ;;  %v4127_v10 = vpack.c.bf16 %v3725_v6, %v3724_v5 }
 0x220   : >> { %1580 = vmatmul.mubr.f32.gmra.mrb[4].mxu1 %v1322_v11  ;;  %2014 = vmatmul.mubr.f32.vlgmr.msra.gmra.mrb[0].mxu0 %v1322_v11  ;;  %1281 = vst.msk [vmem:[#allocation2 + $0x58] sm:$0x7f] %vm1278_vm8, %v1188_v14  ;;  %v3726_v11 = vld [vmem:[%s4768_s23 + $0x220] sm:$0xff]  ;;  %v3727_v14 = vld [vmem:[%s4768_s23 + $0x228] sm:$0xff] }
 0x221   : >> { %4101 = vmatpush1.bf16.msra.mxu0 %v4100_v7  ;;  %3619 = vmatprep.mubr.msk.f32.mxu1 %vm282_vm5, %v1325_v8 }
 0x222   : >> { %3674 = vmatprep.mubr.msk.f32.mxu0 %vm282_vm5, %v1325_v8  ;;  %4102 = vmatprep.subr.bf16.mxu0 %v4481_v44  ;;  %v1012_v16 = vpop.permute.xlu1 %1011  ;;  %v5019_v20 = vld [vmem:[#allocation2 + $0x40] sm:$0xff] }
 0x223   : >> { %v1190_v22 = vpop.permute.xlu0 %1189  ;;  %1104 = vst.msk [vmem:[#allocation2 + $0x60] sm:$0xfe] %vm1099_vm9, %v1012_v16  ;;  %v5012_v17 = vld [vmem:[#allocation2 + $0x48] sm:$0xff]  ;;  %v4130_v16 = vpack.c.bf16 %v3727_v14, %v3726_v11 }
 0x224   : >> { %1585 = vmatmul.mubr.f32.gmra.mrb[6].mxu1 %v1324_v13  ;;  %2019 = vmatmul.mubr.f32.gmra.mrb[2].mxu0 %v1324_v13  ;;  %1282 = vst.msk [vmem:[#allocation2 + $0x68] sm:$0xff] %vm282_vm5, %v1190_v22 }
 0x225   : >> { %4104 = vmatpush1.bf16.msra.mxu0 %v4103_v15  ;;  %3620 = vmatprep.mubr.msk.f32.mxu1 %vm282_vm5, %v5012_v17 }
 0x226   : >> { %3675 = vmatprep.mubr.msk.f32.mxu0 %vm282_vm5, %v5012_v17  ;;  %4105 = vmatprep.subr.bf16.mxu0 %v4481_v44  ;;  %v1014_v34 = vpop.permute.xlu1 %1013  ;;  %v5036_v27 = vld [vmem:[#allocation2 + $0x50] sm:$0xff] }
 0x227   : >> { %v1192_v24 = vpop.permute.xlu0 %1191  ;;  %1105 = vst.msk [vmem:[#allocation2 + $0x70] sm:$0xff] %vm282_vm5, %v1014_v34  ;;  %v5025_v45 = vld [vmem:[#allocation2 + $0x58] sm:$0xff] }
 0x228   : >> { %1590 = vmatmul.mubr.f32.gmra.mrb[8].mxu1 %v5019_v20  ;;  %2024 = vmatmul.mubr.f32.gmra.mrb[4].mxu0 %v5019_v20  ;;  %1283 = vst.msk [vmem:[#allocation2 + $0x78] sm:$0x7f] %vm1278_vm8, %v1192_v24  ;;  %v3729_v34 = vld [vmem:[%s4768_s23 + $0x238] sm:$0xff] }
 0x229   : >> { %3621 = vmatprep.mubr.msk.f32.mxu1 %vm282_vm5, %v5025_v45  ;;  %3676 = vmatprep.mubr.msk.f32.mxu0 %vm282_vm5, %v5025_v45  ;;  %v4133_v25 = vpack.c.bf16 %v3729_v34, %v3728_v19 }
 0x22a   : >> { %4107 = vmatpush1.bf16.msra.mxu0 %v4106_v21  ;;  %v1016_v28 = vpop.permute.xlu1 %1015  ;;  %v5051_v32 = vld [vmem:[#allocation2 + $0x60] sm:$0xff] }
 0x22b   : >> { %v1194_v29 = vpop.permute.xlu0 %1193  ;;  %1106 = vst.msk [vmem:[#allocation2 + $0x80] sm:$0xfe] %vm1099_vm9, %v1016_v28  ;;  %v5039_v30 = vld [vmem:[#allocation2 + $0x68] sm:$0xff]  ;;  %4108 = vmatprep.subr.bf16.mxu0 %v4481_v44 }
 0x22c   : >> { %1595 = vmatmul.mubr.f32.gmra.mrb[10].mxu1 %v5036_v27  ;;  %2029 = vmatmul.mubr.f32.gmra.mrb[6].mxu0 %v5036_v27  ;;  %1284 = vst.msk [vmem:[#allocation2 + $0x88] sm:$0xff] %vm282_vm5, %v1194_v29 }
 0x22d   : >> { %3622 = vmatprep.mubr.msk.f32.mxu1 %vm282_vm5, %v5039_v30  ;;  %3677 = vmatprep.mubr.msk.f32.mxu0 %vm282_vm5, %v5039_v30 }
 0x22e   : >> { %4110 = vmatpush1.bf16.msra.mxu0 %v4109_v56  ;;  %v1018_v33 = vpop.permute.xlu1 %1017  ;;  %v5066_v40 = vld [vmem:[#allocation2 + $0x70] sm:$0xff] }
 0x22f   : >> { %v1196_v12 = vpop.permute.xlu0 %1195  ;;  %1107 = vst.msk [vmem:[#allocation2 + $0x90] sm:$0xff] %vm282_vm5, %v1018_v33  ;;  %v5054_v38 = vld [vmem:[#allocation2 + $0x78] sm:$0xff]  ;;  %4111 = vmatprep.subr.bf16.mxu0 %v4481_v44 }
 0x230   : >> { %1600 = vmatmul.mubr.f32.gmra.mrb[12].mxu1 %v5051_v32  ;;  %2034 = vmatmul.mubr.f32.gmra.mrb[8].mxu0 %v5051_v32  ;;  %1285 = vst.msk [vmem:[#allocation2 + $0x98] sm:$0x7f] %vm1278_vm8, %v1196_v12 }
 0x231   : >> { %3623 = vmatprep.mubr.msk.f32.mxu1 %vm282_vm5, %v5054_v38  ;;  %3678 = vmatprep.mubr.msk.f32.mxu0 %vm282_vm5, %v5054_v38 }
 0x232   : >> { %4113 = vmatpush1.bf16.msra.mxu0 %v4112_v36  ;;  %v1020_v41 = vpop.permute.xlu1 %1019  ;;  %v5081_v49 = vld [vmem:[#allocation2 + $0x80] sm:$0xff] }
 0x233   : >> { %v1198_v43 = vpop.permute.xlu0 %1197  ;;  %1108 = vst.msk [vmem:[#allocation2 + $0xa0] sm:$0xfe] %vm1099_vm9, %v1020_v41  ;;  %v5069_v35 = vld [vmem:[#allocation2 + $0x88] sm:$0xff]  ;;  %4114 = vmatprep.subr.bf16.mxu0 %v4481_v44 }
 0x234   : >> { %1605 = vmatmul.mubr.f32.gmra.mrb[14].mxu1 %v5066_v40  ;;  %2039 = vmatmul.mubr.f32.gmra.mrb[10].mxu0 %v5066_v40  ;;  %1286 = vst.msk [vmem:[#allocation2 + $0xa8] sm:$0xff] %vm282_vm5, %v1198_v43 }
 0x235   : >> { %3624 = vmatprep.mubr.msk.f32.mxu1 %vm282_vm5, %v5069_v35  ;;  %3679 = vmatprep.mubr.msk.f32.mxu0 %vm282_vm5, %v5069_v35 }
 0x236   : >> { %v1022_v47 = vpop.permute.xlu1 %1021  ;;  %4116 = vmatpush1.bf16.msra.mxu0 %v4115_v42  ;;  %v5096_v55 = vld [vmem:[#allocation2 + $0x90] sm:$0xff] }
 0x237   : >> { %v1200_v51 = vpop.permute.xlu0 %1199  ;;  %1109 = vst.msk [vmem:[#allocation2 + $0xb0] sm:$0xff] %vm282_vm5, %v1022_v47  ;;  %v5084_v52 = vld [vmem:[#allocation2 + $0x98] sm:$0xff]  ;;  %4117 = vmatprep.subr.bf16.mxu0 %v4481_v44 }
 0x238   : >> { %1610 = vmatmul.mubr.f32.gmra.mrb[16].mxu1 %v5081_v49  ;;  %2044 = vmatmul.mubr.f32.gmra.mrb[12].mxu0 %v5081_v49  ;;  %1287 = vst.msk [vmem:[#allocation2 + $0xb8] sm:$0x7f] %vm1278_vm8, %v1200_v51 }
 0x239   : >> { %3625 = vmatprep.mubr.msk.f32.mxu1 %vm282_vm5, %v5084_v52  ;;  %3680 = vmatprep.mubr.msk.f32.mxu0 %vm282_vm5, %v5084_v52 }
 0x23a   : >> { %v1024_v57 = vpop.permute.xlu1 %1023  ;;  %4119 = vmatpush1.bf16.msra.mxu0 %v4118_v50  ;;  %v5111_v63 = vld [vmem:[#allocation2 + $0xa0] sm:$0xff] }
 0x23b   : >> { %v1202_v59 = vpop.permute.xlu0 %1201  ;;  %1110 = vst.msk [vmem:[#allocation2 + $0xc0] sm:$0xfe] %vm1099_vm9, %v1024_v57  ;;  %v5099_v60 = vld [vmem:[#allocation2 + $0xa8] sm:$0xff]  ;;  %4120 = vmatprep.subr.bf16.mxu0 %v4481_v44 }
 0x23c   : >> { %1615 = vmatmul.mubr.f32.gmra.mrb[18].mxu1 %v5096_v55  ;;  %2049 = vmatmul.mubr.f32.gmra.mrb[14].mxu0 %v5096_v55  ;;  %1288 = vst.msk [vmem:[#allocation2 + $0xc8] sm:$0xff] %vm282_vm5, %v1202_v59 }
 0x23d   : >> { %3626 = vmatprep.mubr.msk.f32.mxu1 %vm282_vm5, %v5099_v60  ;;  %3681 = vmatprep.mubr.msk.f32.mxu0 %vm282_vm5, %v5099_v60 }
 0x23e   : >> { %v1026_v0 = vpop.permute.xlu1 %1025  ;;  %4122 = vmatpush1.bf16.msra.mxu0 %v4121_v58  ;;  %v5126_v7 = vld [vmem:[#allocation2 + $0xb0] sm:$0xff] }
 0x23f   : >> { %v1204_v3 = vpop.permute.xlu0 %1203  ;;  %1111 = vst.msk [vmem:[#allocation2 + $0xd0] sm:$0xff] %vm282_vm5, %v1026_v0  ;;  %v5114_v4 = vld [vmem:[#allocation2 + $0xb8] sm:$0xff]  ;;  %4123 = vmatprep.subr.bf16.mxu0 %v4481_v44 }
 0x240   : >> { %1620 = vmatmul.mubr.f32.gmra.mrb[20].mxu1 %v5111_v63  ;;  %2054 = vmatmul.mubr.f32.gmra.mrb[16].mxu0 %v5111_v63  ;;  %1289 = vst.msk [vmem:[#allocation2 + $0xd8] sm:$0x7f] %vm1278_vm8, %v1204_v3 }
 0x241   : >> { %3627 = vmatprep.mubr.msk.f32.mxu1 %vm282_vm5, %v5114_v4  ;;  %3682 = vmatprep.mubr.msk.f32.mxu0 %vm282_vm5, %v5114_v4 }
 0x242   : >> { %v1028_v8 = vpop.permute.xlu1 %1027  ;;  %4125 = vmatpush1.bf16.msra.mxu0 %v4124_v2  ;;  %v5141_v13 = vld [vmem:[#allocation2 + $0xc0] sm:$0xff] }
 0x243   : >> { %v1206_v9 = vpop.permute.xlu0 %1205  ;;  %1112 = vst.msk [vmem:[#allocation2 + $0xe0] sm:$0xfe] %vm1099_vm9, %v1028_v8  ;;  %v5129_v37 = vld [vmem:[#allocation2 + $0xc8] sm:$0xff]  ;;  %4126 = vmatprep.subr.bf16.mxu0 %v4481_v44 }
 0x244   : >> { %1625 = vmatmul.mubr.f32.gmra.mrb[22].mxu1 %v5126_v7  ;;  %2059 = vmatmul.mubr.f32.gmra.mrb[18].mxu0 %v5126_v7  ;;  %1290 = vst.msk [vmem:[#allocation2 + $0xe8] sm:$0xff] %vm282_vm5, %v1206_v9 }
 0x245   : >> { %3628 = vmatprep.mubr.msk.f32.mxu1 %vm282_vm5, %v5129_v37  ;;  %3683 = vmatprep.mubr.msk.f32.mxu0 %vm282_vm5, %v5129_v37 }
 0x246   : >> { %v1030_v15 = vpop.permute.xlu1 %1029  ;;  %4128 = vmatpush1.bf16.msra.mxu0 %v4127_v10  ;;  %v5156_v21 = vld [vmem:[#allocation2 + $0xd0] sm:$0xff] }
 0x247   : >> { %v1208_v22 = vpop.permute.xlu0 %1207  ;;  %1113 = vst.msk [vmem:[#allocation2 + $0xf0] sm:$0xff] %vm282_vm5, %v1030_v15  ;;  %v5144_v18 = vld [vmem:[#allocation2 + $0xd8] sm:$0xff]  ;;  %4129 = vmatprep.subr.bf16.mxu0 %v4481_v44 }
 0x248   : >> { %1630 = vmatmul.mubr.f32.gmra.mrb[24].mxu1 %v5141_v13  ;;  %2064 = vmatmul.mubr.f32.gmra.mrb[20].mxu0 %v5141_v13  ;;  %1291 = vst.msk [vmem:[#allocation2 + $0xf8] sm:$0x7f] %vm1278_vm8, %v1208_v22 }
 0x249   : >> { %3629 = vmatprep.mubr.msk.f32.mxu1 %vm282_vm5, %v5144_v18  ;;  %3684 = vmatprep.mubr.msk.f32.mxu0 %vm282_vm5, %v5144_v18 }
 0x24a   : >> { %v1032_v24 = vpop.permute.xlu1 %1031  ;;  %4131 = vmatpush1.bf16.msra.mxu0 %v4130_v16  ;;  %v5169_v56 = vld [vmem:[#allocation2 + $0xe0] sm:$0xff] }
 0x24b   : >> { %v1210_v26 = vpop.permute.xlu0 %1209  ;;  %1114 = vst.msk [vmem:[#allocation2 + $0x100] sm:$0xfe] %vm1099_vm9, %v1032_v24  ;;  %v5159_v28 = vld [vmem:[#allocation2 + $0xe8] sm:$0xff]  ;;  %4132 = vmatprep.subr.bf16.mxu0 %v4481_v44 }
 0x24c   : >> { %1635 = vmatmul.mubr.f32.gmra.mrb[26].mxu1 %v5156_v21  ;;  %2069 = vmatmul.mubr.f32.gmra.mrb[22].mxu0 %v5156_v21  ;;  %1292 = vst.msk [vmem:[#allocation2 + $0x108] sm:$0xff] %vm282_vm5, %v1210_v26 }
 0x24d   : >> { %3630 = vmatprep.mubr.msk.f32.mxu1 %vm282_vm5, %v5159_v28  ;;  %3685 = vmatprep.mubr.msk.f32.mxu0 %vm282_vm5, %v5159_v28 }
 0x24e   : >> { %v1034_v29 = vpop.permute.xlu1 %1033  ;;  %4134 = vmatpush1.bf16.msra.mxu0 %v4133_v25  ;;  %v5181_v31 = vld [vmem:[#allocation2 + $0xf0] sm:$0xff] }
 0x24f   : >> { %v1212_v1 = vpop.permute.xlu0 %1211  ;;  %1115 = vst.msk [vmem:[#allocation2 + $0x110] sm:$0xff] %vm282_vm5, %v1034_v29  ;;  %v5172_v44 = vld [vmem:[#allocation2 + $0xf8] sm:$0xff] }
 0x250   : >> { %1640 = vmatmul.mubr.f32.gmra.mrb[28].mxu1 %v5169_v56  ;;  %2074 = vmatmul.mubr.f32.gmra.mrb[24].mxu0 %v5169_v56  ;;  %1293 = vst.msk [vmem:[#allocation2 + $0x118] sm:$0x7f] %vm1278_vm8, %v1212_v1 }
 0x251   : >> { %3631 = vmatprep.mubr.msk.f32.mxu1 %vm282_vm5, %v5172_v44  ;;  %3686 = vmatprep.mubr.msk.f32.mxu0 %vm282_vm5, %v5172_v44 }
 0x252   : >> { %v1036_v33 = vpop.permute.xlu1 %1035  ;;  %v5193_v39 = vld [vmem:[#allocation2 + $0x100] sm:$0xff] }
 0x253   : >> { %v1214_v36 = vpop.permute.xlu0 %1213  ;;  %1116 = vst.msk [vmem:[#allocation2 + $0x120] sm:$0xfe] %vm1099_vm9, %v1036_v33  ;;  %v5184_v12 = vld [vmem:[#allocation2 + $0x108] sm:$0xff] }
 0x254   : >> { %1645 = vmatmul.mubr.f32.gmra.mrb[30].mxu1 %v5181_v31  ;;  %2079 = vmatmul.mubr.f32.gmra.mrb[26].mxu0 %v5181_v31  ;;  %1294 = vst.msk [vmem:[#allocation2 + $0x128] sm:$0xff] %vm282_vm5, %v1214_v36 }
 0x255   : >> { %3632 = vmatprep.mubr.msk.f32.mxu1 %vm282_vm5, %v5184_v12  ;;  %3687 = vmatprep.mubr.msk.f32.mxu0 %vm282_vm5, %v5184_v12 }
 0x256   : >> { %v1038_v23 = vpop.permute.xlu1 %1037  ;;  %v5205_v43 = vld [vmem:[#allocation2 + $0x110] sm:$0xff] }
 0x257   : >> { %v1216_v41 = vpop.permute.xlu0 %1215  ;;  %1117 = vst.msk [vmem:[#allocation2 + $0x130] sm:$0xff] %vm282_vm5, %v1038_v23  ;;  %v5196_v42 = vld [vmem:[#allocation2 + $0x118] sm:$0xff] }
 0x258   : >> { %1650 = vmatmul.mubr.f32.gmra.mrb[32].mxu1 %v5193_v39  ;;  %2084 = vmatmul.mubr.f32.gmra.mrb[28].mxu0 %v5193_v39  ;;  %1295 = vst.msk [vmem:[#allocation2 + $0x138] sm:$0x7f] %vm1278_vm8, %v1216_v41 }
 0x259   : >> { %3633 = vmatprep.mubr.msk.f32.mxu1 %vm282_vm5, %v5196_v42  ;;  %3688 = vmatprep.mubr.msk.f32.mxu0 %vm282_vm5, %v5196_v42 }
 0x25a   : >> { %v1040_v46 = vpop.permute.xlu1 %1039  ;;  %v5217_v50 = vld [vmem:[#allocation2 + $0x120] sm:$0xff] }
 0x25b   : >> { %v1218_v48 = vpop.permute.xlu0 %1217  ;;  %1118 = vst.msk [vmem:[#allocation2 + $0x140] sm:$0xfe] %vm1099_vm9, %v1040_v46  ;;  %v5208_v47 = vld [vmem:[#allocation2 + $0x128] sm:$0xff] }
 0x25c   : >> { %1655 = vmatmul.mubr.f32.gmra.mrb[34].mxu1 %v5205_v43  ;;  %2089 = vmatmul.mubr.f32.gmra.mrb[30].mxu0 %v5205_v43  ;;  %1296 = vst.msk [vmem:[#allocation2 + $0x148] sm:$0xff] %vm282_vm5, %v1218_v48  ;;  %v2268_v46 = vld [vmem:[#allocation2 + $0x228] sm:$0xff]  ;;  %v2267_v48 = vld [vmem:[#allocation2 + $0x220] sm:$0xff] }
 0x25d   : >> { %3730 = vmatprep.mubr.msk.f32.mxu0 %vm282_vm5, %v5012_v17  ;;  %3634 = vmatprep.mubr.msk.f32.mxu1 %vm282_vm5, %v5208_v47 }
 0x25e   : >> { %v1042_v51 = vpop.permute.xlu1 %1041  ;;  %v5229_v17 = vld [vmem:[#allocation2 + $0x130] sm:$0xff] }
 0x25f   : >> { %v1220_v53 = vpop.permute.xlu0 %1219  ;;  %1119 = vst.msk [vmem:[#allocation2 + $0x150] sm:$0xff] %vm282_vm5, %v1042_v51  ;;  %v5220_v54 = vld [vmem:[#allocation2 + $0x138] sm:$0xff] }
 0x260   : >> { %1660 = vmatmul.mubr.f32.gmra.mrb[36].mxu1 %v5217_v50  ;;  %2459 = vmatmul.mubr.f32.vlgmr.msra.gmra.mrb[0].mxu0 %v5019_v20  ;;  %1297 = vst.msk [vmem:[#allocation2 + $0x158] sm:$0x7f] %vm1278_vm8, %v1220_v53 }
 0x261   : >> { %3731 = vmatprep.mubr.msk.f32.mxu0 %vm282_vm5, %v5025_v45  ;;  %3635 = vmatprep.mubr.msk.f32.mxu1 %vm282_vm5, %v5220_v54 }
 0x262   : >> { %v1044_v57 = vpop.permute.xlu1 %1043  ;;  %v5241_v20 = vld [vmem:[#allocation2 + $0x140] sm:$0xff] }
 0x263   : >> { %v1222_v58 = vpop.permute.xlu0 %1221  ;;  %1120 = vst.msk [vmem:[#allocation2 + $0x160] sm:$0xfe] %vm1099_vm9, %v1044_v57  ;;  %v5232_v59 = vld [vmem:[#allocation2 + $0x148] sm:$0xff] }
 0x264   : >> { %1665 = vmatmul.mubr.f32.gmra.mrb[38].mxu1 %v5229_v17  ;;  %2464 = vmatmul.mubr.f32.gmra.mrb[2].mxu0 %v5036_v27  ;;  %1298 = vst.msk [vmem:[#allocation2 + $0x168] sm:$0xff] %vm282_vm5, %v1222_v58 }
 0x265   : >> { %3732 = vmatprep.mubr.msk.f32.mxu0 %vm282_vm5, %v5039_v30  ;;  %3636 = vmatprep.mubr.msk.f32.mxu1 %vm282_vm5, %v5232_v59 }
 0x266   : >> { %v1046_v45 = vpop.permute.xlu1 %1045  ;;  %v5253_v27 = vld [vmem:[#allocation2 + $0x150] sm:$0xff] }
 0x267   : >> { %v1224_v61 = vpop.permute.xlu0 %1223  ;;  %1121 = vst.msk [vmem:[#allocation2 + $0x170] sm:$0xff] %vm282_vm5, %v1046_v45  ;;  %v5244_v62 = vld [vmem:[#allocation2 + $0x158] sm:$0xff] }
 0x268   : >> { %1670 = vmatmul.mubr.f32.gmra.mrb[40].mxu1 %v5241_v20  ;;  %2469 = vmatmul.mubr.f32.gmra.mrb[4].mxu0 %v5051_v32  ;;  %1299 = vst.msk [vmem:[#allocation2 + $0x178] sm:$0x7f] %vm1278_vm8, %v1224_v61 }
 0x269   : >> { %3733 = vmatprep.mubr.msk.f32.mxu0 %vm282_vm5, %v5054_v38  ;;  %3637 = vmatprep.mubr.msk.f32.mxu1 %vm282_vm5, %v5244_v62 }
 0x26a   : >> { %v1048_v30 = vpop.permute.xlu1 %1047  ;;  %v5265_v32 = vld [vmem:[#allocation2 + $0x160] sm:$0xff] }
 0x26b   : >> { %v1226_v0 = vpop.permute.xlu0 %1225  ;;  %1122 = vst.msk [vmem:[#allocation2 + $0x180] sm:$0xfe] %vm1099_vm9, %v1048_v30  ;;  %v5256_v2 = vld [vmem:[#allocation2 + $0x168] sm:$0xff] }
 0x26c   : >> { %1675 = vmatmul.mubr.f32.gmra.mrb[42].mxu1 %v5253_v27  ;;  %2474 = vmatmul.mubr.f32.gmra.mrb[6].mxu0 %v5066_v40  ;;  %1300 = vst.msk [vmem:[#allocation2 + $0x188] sm:$0xff] %vm282_vm5, %v1226_v0 }
 0x26d   : >> { %3734 = vmatprep.mubr.msk.f32.mxu0 %vm282_vm5, %v5069_v35  ;;  %3638 = vmatprep.mubr.msk.f32.mxu1 %vm282_vm5, %v5256_v2 }
 0x26e   : >> { %v1050_v38 = vpop.permute.xlu1 %1049  ;;  %v5277_v40 = vld [vmem:[#allocation2 + $0x170] sm:$0xff] }
 0x26f   : >> { %v1228_v3 = vpop.permute.xlu0 %1227  ;;  %1123 = vst.msk [vmem:[#allocation2 + $0x190] sm:$0xff] %vm282_vm5, %v1050_v38  ;;  %v5268_v5 = vld [vmem:[#allocation2 + $0x178] sm:$0xff] }
 0x270   : >> { %1680 = vmatmul.mubr.f32.gmra.mrb[44].mxu1 %v5265_v32  ;;  %2479 = vmatmul.mubr.f32.gmra.mrb[8].mxu0 %v5081_v49  ;;  %1301 = vst.msk [vmem:[#allocation2 + $0x198] sm:$0x7f] %vm1278_vm8, %v1228_v3 }
 0x271   : >> { %3735 = vmatprep.mubr.msk.f32.mxu0 %vm282_vm5, %v5084_v52  ;;  %3639 = vmatprep.mubr.msk.f32.mxu1 %vm282_vm5, %v5268_v5 }
 0x272   : >> { %v1052_v35 = vpop.permute.xlu1 %1051  ;;  %v5289_v49 = vld [vmem:[#allocation2 + $0x180] sm:$0xff] }
 0x273   : >> { %v1230_v6 = vpop.permute.xlu0 %1229  ;;  %1124 = vst.msk [vmem:[#allocation2 + $0x1a0] sm:$0xfe] %vm1099_vm9, %v1052_v35  ;;  %v5280_v8 = vld [vmem:[#allocation2 + $0x188] sm:$0xff] }
 0x274   : >> { %1685 = vmatmul.mubr.f32.gmra.mrb[46].mxu1 %v5277_v40  ;;  %2484 = vmatmul.mubr.f32.gmra.mrb[10].mxu0 %v5096_v55  ;;  %1302 = vst.msk [vmem:[#allocation2 + $0x1a8] sm:$0xff] %vm282_vm5, %v1230_v6 }
 0x275   : >> { %3736 = vmatprep.mubr.msk.f32.mxu0 %vm282_vm5, %v5099_v60  ;;  %3640 = vmatprep.mubr.msk.f32.mxu1 %vm282_vm5, %v5280_v8 }
 0x276   : >> { %v1054_v52 = vpop.permute.xlu1 %1053  ;;  %v5301_v55 = vld [vmem:[#allocation2 + $0x190] sm:$0xff] }
 0x277   : >> { %v1232_v10 = vpop.permute.xlu0 %1231  ;;  %1125 = vst.msk [vmem:[#allocation2 + $0x1b0] sm:$0xff] %vm282_vm5, %v1054_v52  ;;  %v5292_v9 = vld [vmem:[#allocation2 + $0x198] sm:$0xff] }
 0x278   : >> { %1690 = vmatmul.mubr.f32.gmra.mrb[48].mxu1 %v5289_v49  ;;  %2489 = vmatmul.mubr.f32.gmra.mrb[12].mxu0 %v5111_v63  ;;  %1303 = vst.msk [vmem:[#allocation2 + $0x1b8] sm:$0x7f] %vm1278_vm8, %v1232_v10 }
 0x279   : >> { %3737 = vmatprep.mubr.msk.f32.mxu0 %vm282_vm5, %v5114_v4  ;;  %3641 = vmatprep.mubr.msk.f32.mxu1 %vm282_vm5, %v5292_v9 }
 0x27a   : >> { %v1056_v60 = vpop.permute.xlu1 %1055  ;;  %v5313_v63 = vld [vmem:[#allocation2 + $0x1a0] sm:$0xff] }
 0x27b   : >> { %v1234_v11 = vpop.permute.xlu0 %1233  ;;  %1126 = vst.msk [vmem:[#allocation2 + $0x1c0] sm:$0xfe] %vm1099_vm9, %v1056_v60  ;;  %v5304_v14 = vld [vmem:[#allocation2 + $0x1a8] sm:$0xff]  ;;  %v5486_v60 = vld [vmem:[%s1310_s27] ss:$0 sm:$0xff] }
 0x27c   : >> { %1695 = vmatmul.mubr.f32.gmra.mrb[50].mxu1 %v5301_v55  ;;  %2494 = vmatmul.mubr.f32.gmra.mrb[14].mxu0 %v5126_v7  ;;  %1304 = vst.msk [vmem:[#allocation2 + $0x1c8] sm:$0xff] %vm282_vm5, %v1234_v11 }
 0x27d   : >> { %3738 = vmatprep.mubr.msk.f32.mxu0 %vm282_vm5, %v5129_v37  ;;  %3642 = vmatprep.mubr.msk.f32.mxu1 %vm282_vm5, %v5304_v14 }
 0x27e   : >> { %v1058_v4 = vpop.permute.xlu1 %1057  ;;  %v5325_v7 = vld [vmem:[#allocation2 + $0x1b0] sm:$0xff] }
 0x27f   : >> { %v1236_v15 = vpop.permute.xlu0 %1235  ;;  %1127 = vst.msk [vmem:[#allocation2 + $0x1d0] sm:$0xff] %vm282_vm5, %v1058_v4  ;;  %v5316_v16 = vld [vmem:[#allocation2 + $0x1b8] sm:$0xff] }
 0x280   : >> { %1700 = vmatmul.mubr.f32.gmra.mrb[52].mxu1 %v5313_v63  ;;  %2499 = vmatmul.mubr.f32.gmra.mrb[16].mxu0 %v5141_v13  ;;  %1305 = vst.msk [vmem:[#allocation2 + $0x1d8] sm:$0x7f] %vm1278_vm8, %v1236_v15 }
 0x281   : >> { %3739 = vmatprep.mubr.msk.f32.mxu0 %vm282_vm5, %v5144_v18  ;;  %3643 = vmatprep.mubr.msk.f32.mxu1 %vm282_vm5, %v5316_v16 }
 0x282   : >> { %v1060_v37 = vpop.permute.xlu1 %1059  ;;  %v5337_v13 = vld [vmem:[#allocation2 + $0x1c0] sm:$0xff] }
 0x283   : >> { %v1238_v22 = vpop.permute.xlu0 %1237  ;;  %1128 = vst.msk [vmem:[#allocation2 + $0x1e0] sm:$0xfe] %vm1099_vm9, %v1060_v37  ;;  %v5328_v19 = vld [vmem:[#allocation2 + $0x1c8] sm:$0xff] }
 0x284   : >> { %1705 = vmatmul.mubr.f32.gmra.mrb[54].mxu1 %v5325_v7  ;;  %2504 = vmatmul.mubr.f32.gmra.mrb[18].mxu0 %v5156_v21  ;;  %1306 = vst.msk [vmem:[#allocation2 + $0x1e8] sm:$0xff] %vm282_vm5, %v1238_v22 }
 0x285   : >> { %3740 = vmatprep.mubr.msk.f32.mxu0 %vm282_vm5, %v5159_v28  ;;  %3644 = vmatprep.mubr.msk.f32.mxu1 %vm282_vm5, %v5328_v19 }
 0x286   : >> { %v1062_v18 = vpop.permute.xlu1 %1061  ;;  %v5349_v21 = vld [vmem:[#allocation2 + $0x1d0] sm:$0xff] }
 0x287   : >> { %v1240_v34 = vpop.permute.xlu0 %1239  ;;  %1129 = vst.msk [vmem:[#allocation2 + $0x1f0] sm:$0xff] %vm282_vm5, %v1062_v18  ;;  %v5340_v24 = vld [vmem:[#allocation2 + $0x1d8] sm:$0xff] }
 0x288   : >> { %1710 = vmatmul.mubr.f32.gmra.mrb[56].mxu1 %v5337_v13  ;;  %2509 = vmatmul.mubr.f32.gmra.mrb[20].mxu0 %v5169_v56  ;;  %1307 = vst.msk [vmem:[#allocation2 + $0x1f8] sm:$0x7f] %vm1278_vm8, %v1240_v34 }
 0x289   : >> { %3741 = vmatprep.mubr.msk.f32.mxu0 %vm282_vm5, %v5172_v44  ;;  %3645 = vmatprep.mubr.msk.f32.mxu1 %vm282_vm5, %v5340_v24 }
 0x28a   : >> { %v1064_v25 = vpop.permute.xlu1 %1063  ;;  %v5361_v56 = vld [vmem:[#allocation2 + $0x1e0] sm:$0xff] }
 0x28b   : >> { %v5351_v26 = vld [vmem:[#allocation2 + $0x1e8] sm:$0xff]  ;;  %v1242_v28 = vpop.permute.xlu0 %1241  ;;  %1130 = vst.msk [vmem:[#allocation2 + $0x200] sm:$0xfe] %vm1099_vm9, %v1064_v25 }
 0x28c   : >> { %1715 = vmatmul.mubr.f32.gmra.mrb[58].mxu1 %v5349_v21  ;;  %2514 = vmatmul.mubr.f32.gmra.mrb[22].mxu0 %v5181_v31  ;;  %1308 = vst.msk [vmem:[#allocation2 + $0x208] sm:$0xff] %vm282_vm5, %v1242_v28 }
 0x28d   : >> { %3742 = vmatprep.mubr.msk.f32.mxu0 %vm282_vm5, %v5184_v12  ;;  %3646 = vmatprep.mubr.msk.f32.mxu1 %vm282_vm5, %v5351_v26 }
 0x28e   : >> { %v1380_v31 = vld [vmem:[#allocation2 + $0x1f0] sm:$0xff] }
 0x28f   : >> { %v5363_v29 = vld [vmem:[#allocation2 + $0x1f8] sm:$0xff]  ;;  %v1244_v1 = vpop.permute.xlu0 %1243  ;;  %v1066_v44 = vpop.permute.xlu1 %1065 }
 0x290   : >> { %1720 = vmatmul.mubr.f32.gmra.mrb[60].mxu1 %v5361_v56  ;;  %2519 = vmatmul.mubr.f32.gmra.mrb[24].mxu0 %v5193_v39  ;;  %1309 = vst.msk [vmem:[#allocation2 + $0x218] sm:$0x7f] %vm1278_vm8, %v1244_v1 }
 0x291   : >> { %1131 = vst.msk [vmem:[#allocation2 + $0x210] sm:$0xff] %vm282_vm5, %v1066_v44  ;;  %3743 = vmatprep.mubr.msk.f32.mxu0 %vm282_vm5, %v5196_v42  ;;  %3647 = vmatprep.mubr.msk.f32.mxu1 %vm282_vm5, %v5363_v29 }
 0x292   : >> { %v1822_v41 = vld [vmem:[#allocation2 + $0x200] sm:$0xff] }
 0x293   : >> { %v1823_v23 = vld [vmem:[#allocation2 + $0x208] sm:$0xff] }
 0x294   : >> { %1725 = vmatmul.mubr.f32.gmra.mrb[62].mxu1 %v1380_v31  ;;  %2524 = vmatmul.mubr.f32.gmra.mrb[26].mxu0 %v5205_v43 }
 0x295   : >> { %3689 = vmatprep.mubr.msk.f32.mxu1 %vm282_vm5, %v5208_v47  ;;  %3744 = vmatprep.mubr.msk.f32.mxu0 %vm282_vm5, %v5208_v47  ;;  %v2270_v47 = vld [vmem:[#allocation2 + $0x238] sm:$0xff] }
 0x297   : >> { %v1825_v42 = vld [vmem:[#allocation2 + $0x218] sm:$0xff] }
 0x298   : >> { %2094 = vmatmul.mubr.f32.vlgmr.msra.gmra.mrb[32].mxu1 %v5217_v50  ;;  %2529 = vmatmul.mubr.f32.gmra.mrb[28].mxu0 %v5217_v50  ;;  %v1824_v43 = vld [vmem:[#allocation2 + $0x210] sm:$0xff] }
 0x299   : >> { %3690 = vmatprep.mubr.msk.f32.mxu1 %vm282_vm5, %v5220_v54  ;;  %3745 = vmatprep.mubr.msk.f32.mxu0 %vm282_vm5, %v5220_v54  ;;  %v2269_v50 = vld [vmem:[#allocation2 + $0x230] sm:$0xff] }
 0x29c   : >> { %2099 = vmatmul.mubr.f32.gmra.mrb[34].mxu1 %v5229_v17  ;;  %2534 = vmatmul.mubr.f32.gmra.mrb[30].mxu0 %v5229_v17 }
 0x29d   : >> { %3691 = vmatprep.mubr.msk.f32.mxu1 %vm282_vm5, %v5232_v59  ;;  %3746 = vmatprep.mubr.msk.f32.mxu0 %vm282_vm5, %v5232_v59 }
 0x2a0   : >> { %2104 = vmatmul.mubr.f32.gmra.mrb[36].mxu1 %v5241_v20  ;;  %2539 = vmatmul.mubr.f32.gmra.mrb[32].mxu0 %v5241_v20 }
 0x2a1   : >> { %3692 = vmatprep.mubr.msk.f32.mxu1 %vm282_vm5, %v5244_v62  ;;  %3747 = vmatprep.mubr.msk.f32.mxu0 %vm282_vm5, %v5244_v62 }
 0x2a4   : >> { %2109 = vmatmul.mubr.f32.gmra.mrb[38].mxu1 %v5253_v27  ;;  %2544 = vmatmul.mubr.f32.gmra.mrb[34].mxu0 %v5253_v27 }
 0x2a5   : >> { %3693 = vmatprep.mubr.msk.f32.mxu1 %vm282_vm5, %v5256_v2  ;;  %3748 = vmatprep.mubr.msk.f32.mxu0 %vm282_vm5, %v5256_v2  ;;  %v5414_v33 = vpop.f32.mrb[0].mxu1 }
 0x2a6   : >> { %v1573_v36 = vpop.f32.mrb[1].mxu1  ;;  %v1730_v11 = vadd.f32 %v5486_v60, %v5414_v33 }
 0x2a8   : >> { %2114 = vmatmul.mubr.f32.gmra.mrb[40].mxu1 %v5265_v32  ;;  %2549 = vmatmul.mubr.f32.gmra.mrb[36].mxu0 %v5265_v32 }
 0x2a9   : >> { %3694 = vmatprep.mubr.msk.f32.mxu1 %vm282_vm5, %v5268_v5  ;;  %3749 = vmatprep.mubr.msk.f32.mxu0 %vm282_vm5, %v5268_v5  ;;  %v5422_v12 = vpop.f32.mrb[2].mxu1 }
 0x2aa   : >> { %v1578_v39 = vpop.f32.mrb[3].mxu1  ;;  %v1731_v15 = vadd.f32 %v5486_v60, %v5422_v12 }
 0x2ac   : >> { %2119 = vmatmul.mubr.f32.gmra.mrb[42].mxu1 %v5277_v40  ;;  %2554 = vmatmul.mubr.f32.gmra.mrb[38].mxu0 %v5277_v40 }
 0x2ad   : >> { %3695 = vmatprep.mubr.msk.f32.mxu1 %vm282_vm5, %v5280_v8  ;;  %3750 = vmatprep.mubr.msk.f32.mxu0 %vm282_vm5, %v5280_v8 }
 0x2b0   : >> { %2124 = vmatmul.mubr.f32.gmra.mrb[44].mxu1 %v5289_v49  ;;  %2559 = vmatmul.mubr.f32.gmra.mrb[40].mxu0 %v5289_v49 }
 0x2b1   : >> { %3696 = vmatprep.mubr.msk.f32.mxu1 %vm282_vm5, %v5292_v9  ;;  %3751 = vmatprep.mubr.msk.f32.mxu0 %vm282_vm5, %v5292_v9 }
 0x2b4   : >> { %2129 = vmatmul.mubr.f32.gmra.mrb[46].mxu1 %v5301_v55  ;;  %2564 = vmatmul.mubr.f32.gmra.mrb[42].mxu0 %v5301_v55 }
 0x2b5   : >> { %3697 = vmatprep.mubr.msk.f32.mxu1 %vm282_vm5, %v5304_v14  ;;  %3752 = vmatprep.mubr.msk.f32.mxu0 %vm282_vm5, %v5304_v14 }
 0x2b8   : >> { %2134 = vmatmul.mubr.f32.gmra.mrb[48].mxu1 %v5313_v63  ;;  %2569 = vmatmul.mubr.f32.gmra.mrb[44].mxu0 %v5313_v63 }
 0x2b9   : >> { %3698 = vmatprep.mubr.msk.f32.mxu1 %vm282_vm5, %v5316_v16  ;;  %3753 = vmatprep.mubr.msk.f32.mxu0 %vm282_vm5, %v5316_v16 }
 0x2bc   : >> { %2139 = vmatmul.mubr.f32.gmra.mrb[50].mxu1 %v5325_v7  ;;  %2574 = vmatmul.mubr.f32.gmra.mrb[46].mxu0 %v5325_v7 }
 0x2bd   : >> { %3699 = vmatprep.mubr.msk.f32.mxu1 %vm282_vm5, %v5328_v19  ;;  %3754 = vmatprep.mubr.msk.f32.mxu0 %vm282_vm5, %v5328_v19 }
 0x2c0   : >> { %2144 = vmatmul.mubr.f32.gmra.mrb[52].mxu1 %v5337_v13  ;;  %2579 = vmatmul.mubr.f32.gmra.mrb[48].mxu0 %v5337_v13 }
 0x2c1   : >> { %3700 = vmatprep.mubr.msk.f32.mxu1 %vm282_vm5, %v5340_v24  ;;  %3755 = vmatprep.mubr.msk.f32.mxu0 %vm282_vm5, %v5340_v24 }
 0x2c4   : >> { %2149 = vmatmul.mubr.f32.gmra.mrb[54].mxu1 %v5349_v21  ;;  %2584 = vmatmul.mubr.f32.gmra.mrb[50].mxu0 %v5349_v21 }
 0x2c5   : >> { %3701 = vmatprep.mubr.msk.f32.mxu1 %vm282_vm5, %v5351_v26  ;;  %3756 = vmatprep.mubr.msk.f32.mxu0 %vm282_vm5, %v5351_v26 }
 0x2c8   : >> { %2154 = vmatmul.mubr.f32.gmra.mrb[56].mxu1 %v5361_v56  ;;  %2589 = vmatmul.mubr.f32.gmra.mrb[52].mxu0 %v5361_v56 }
 0x2c9   : >> { %3702 = vmatprep.mubr.msk.f32.mxu1 %vm282_vm5, %v5363_v29  ;;  %3757 = vmatprep.mubr.msk.f32.mxu0 %vm282_vm5, %v5363_v29 }
 0x2cc   : >> { %2159 = vmatmul.mubr.f32.gmra.mrb[58].mxu1 %v1380_v31  ;;  %2594 = vmatmul.mubr.f32.gmra.mrb[54].mxu0 %v1380_v31 }
 0x2cd   : >> { %3703 = vmatprep.mubr.msk.f32.mxu1 %vm282_vm5, %v1823_v23  ;;  %3758 = vmatprep.mubr.msk.f32.mxu0 %vm282_vm5, %v1823_v23 }
 0x2d0   : >> { %2164 = vmatmul.mubr.f32.gmra.mrb[60].mxu1 %v1822_v41  ;;  %2599 = vmatmul.mubr.f32.gmra.mrb[56].mxu0 %v1822_v41 }
 0x2d1   : >> { %3704 = vmatprep.mubr.msk.f32.mxu1 %vm282_vm5, %v1825_v42  ;;  %3759 = vmatprep.mubr.msk.f32.mxu0 %vm282_vm5, %v1825_v42 }
 0x2d4   : >> { %2169 = vmatmul.mubr.f32.gmra.mrb[62].mxu1 %v1824_v43  ;;  %2604 = vmatmul.mubr.f32.gmra.mrb[58].mxu0 %v1824_v43 }
 0x2d5   : >> { %3760 = vmatprep.mubr.msk.f32.mxu0 %vm282_vm5, %v2268_v46 }
 0x2d8   : >> { %2609 = vmatmul.mubr.f32.gmra.mrb[60].mxu0 %v2267_v48 }
 0x2d9   : >> { %3761 = vmatprep.mubr.msk.f32.mxu0 %vm282_vm5, %v2270_v47 }
 0x2dc   : >> { %2614 = vmatmul.mubr.f32.gmra.mrb[62].mxu0 %v2269_v50 }
 0x2f3   : >> { %v1581_v51 = vpop.f32.mrb[4].mxu1 }
 0x2f4   : >> { %v1583_v53 = vpop.f32.mrb[5].mxu1  ;;  %v1732_v19 = vadd.f32 %v5486_v60, %v1581_v51 }
 0x2f7   : >> { %v1586_v54 = vpop.f32.mrb[6].mxu1 }
 0x2f8   : >> { %v1588_v17 = vpop.f32.mrb[7].mxu1  ;;  %v1733_v21 = vadd.f32 %v5486_v60, %v1586_v54 }
 0x2fb   : >> { %v1591_v57 = vpop.f32.mrb[8].mxu1 }
 0x2fc   : >> { %v1593_v58 = vpop.f32.mrb[9].mxu1  ;;  %v1734_v29 = vadd.f32 %v5486_v60, %v1591_v57 }
 0x2ff   : >> { %v1596_v59 = vpop.f32.mrb[10].mxu1 }
 0x300   : >> { %v1598_v20 = vpop.f32.mrb[11].mxu1  ;;  %v1735_v36 = vadd.f32 %v5486_v60, %v1596_v59 }
 0x303   : >> { %v1601_v45 = vpop.f32.mrb[12].mxu1 }
 0x304   : >> { %v1603_v61 = vpop.f32.mrb[13].mxu1  ;;  %v1736_v42 = vadd.f32 %v5486_v60, %v1601_v45 }
 0x307   : >> { %v1606_v62 = vpop.f32.mrb[14].mxu1 }
 0x308   : >> { %v1608_v27 = vpop.f32.mrb[15].mxu1  ;;  %v1737_v50 = vadd.f32 %v5486_v60, %v1606_v62 }
 0x30b   : >> { %v5466_v30 = vpop.f32.mrb[16].mxu1 }
 0x30c   : >> { %v1613_v0 = vpop.f32.mrb[17].mxu1  ;;  %v1738_v57 = vadd.f32 %v5486_v60, %v5466_v30 }
 0x30f   : >> { %v5468_v2 = vpop.f32.mrb[18].mxu1 }
 0x310   : >> { %v1618_v32 = vpop.f32.mrb[19].mxu1  ;;  %v1739_v61 = vadd.f32 %v5486_v60, %v5468_v2 }
 0x313   : >> { %v5470_v38 = vpop.f32.mrb[20].mxu1 }
 0x314   : >> { %v1623_v3 = vpop.f32.mrb[21].mxu1 }
 0x315   : >> { %v1740_v3 = vadd.f32 %v5486_v60, %v5470_v38 }
 0x317   : >> { %v5472_v5 = vpop.f32.mrb[22].mxu1 }
 0x318   : >> { %v1628_v40 = vpop.f32.mrb[23].mxu1 }
 0x31b   : >> { %v5474_v35 = vpop.f32.mrb[24].mxu1 }
 0x31c   : >> { %v1633_v6 = vpop.f32.mrb[25].mxu1 }
 0x31f   : >> { %v5476_v8 = vpop.f32.mrb[26].mxu1 }
 0x320   : >> { %v1638_v49 = vpop.f32.mrb[27].mxu1 }
 0x323   : >> { %v5478_v52 = vpop.f32.mrb[28].mxu1 }
 0x324   : >> { %v1643_v10 = vpop.f32.mrb[29].mxu1 }
 0x325   : >> { %v1741_v10 = vadd.f32 %v5486_v60, %v5472_v5 }
 0x327   : >> { %v5480_v9 = vpop.f32.mrb[30].mxu1 }
 0x328   : >> { %v1648_v55 = vpop.f32.mrb[31].mxu1 }
 0x333   : >> { %v2460_v14 = vpop.f32.mrb[0].mxu0 }
 0x334   : >> { %v4178_v63 = vadd.f32 %v2460_v14, %v1730_v11  ;;  %v2462_v4 = vpop.f32.mrb[1].mxu0 }
 0x336   : >> { %v2651_v16 = vmax.f32 %v4178_v63, 0.0  ;;  %v1742_v63 = vadd.f32 %v5486_v60, %v5474_v35 }
 0x337   : >> { %v2465_v7 = vpop.f32.mrb[2].mxu0 }
 0x338   : >> { %v4180_v37 = vadd.f32 %v2465_v7, %v1731_v15  ;;  %v2467_v22 = vpop.f32.mrb[3].mxu0  ;;  %2715 = vrot.lane.b32.xlu0 %v2651_v16, %s4482_s19  ;;  %v1743_v7 = vadd.f32 %v5486_v60, %v5476_v8  ;;  %v1745_v8 = vadd.f32 %v5486_v60, %v5480_v9 }
 0x33a   : >> { %v2652_v13 = vmax.f32 %v4180_v37, 0.0 }
 0x33b   : >> { %v2470_v18 = vpop.f32.mrb[4].mxu0 }
 0x33c   : >> { %v4182_v34 = vadd.f32 %v2470_v18, %v1732_v19  ;;  %v2472_v24 = vpop.f32.mrb[5].mxu0  ;;  %2717 = vrot.lane.b32.xlu1 %v2652_v13, %s4482_s19  ;;  %v1744_v13 = vadd.f32 %v5486_v60, %v5478_v52 }
 0x33e   : >> { %v2653_v25 = vmax.f32 %v4182_v34, 0.0 }
 0x33f   : >> { %v2475_v26 = vpop.f32.mrb[6].mxu0 }
 0x340   : >> { %v4184_v28 = vadd.f32 %v2475_v26, %v1733_v21  ;;  %v2477_v56 = vpop.f32.mrb[7].mxu0  ;;  %2719 = vrot.lane.b32.xlu0 %v2653_v25, %s4482_s19 }
 0x342   : >> { %v2654_v1 = vmax.f32 %v4184_v28, 0.0 }
 0x343   : >> { %v2480_v44 = vpop.f32.mrb[8].mxu0 }
 0x344   : >> { %v4186_v31 = vadd.f32 %v2480_v44, %v1734_v29  ;;  %v2482_v33 = vpop.f32.mrb[9].mxu0  ;;  %2721 = vrot.lane.b32.xlu1 %v2654_v1, %s4482_s19 }
 0x346   : >> { %v2655_v12 = vmax.f32 %v4186_v31, 0.0 }
 0x347   : >> { %v2485_v39 = vpop.f32.mrb[10].mxu0 }
 0x348   : >> { %v4188_v23 = vadd.f32 %v2485_v39, %v1735_v36  ;;  %v2487_v41 = vpop.f32.mrb[11].mxu0  ;;  %2723 = vrot.lane.b32.xlu0 %v2655_v12, %s4482_s19 }
 0x34a   : >> { %v2656_v43 = vmax.f32 %v4188_v23, 0.0 }
 0x34b   : >> { %v2490_v46 = vpop.f32.mrb[12].mxu0 }
 0x34c   : >> { %v4190_v48 = vadd.f32 %v2490_v46, %v1736_v42  ;;  %v2492_v47 = vpop.f32.mrb[13].mxu0  ;;  %2725 = vrot.lane.b32.xlu1 %v2656_v43, %s4482_s19 }
 0x34e   : >> { %v2657_v51 = vmax.f32 %v4190_v48, 0.0 }
 0x34f   : >> { %v2495_v53 = vpop.f32.mrb[14].mxu0 }
 0x350   : >> { %v4192_v54 = vadd.f32 %v2495_v53, %v1737_v50  ;;  %v2497_v17 = vpop.f32.mrb[15].mxu0  ;;  %2727 = vrot.lane.b32.xlu0 %v2657_v51, %s4482_s19 }
 0x352   : >> { %v2658_v58 = vmax.f32 %v4192_v54, 0.0 }
 0x353   : >> { %v2500_v59 = vpop.f32.mrb[16].mxu0 }
 0x354   : >> { %v4194_v20 = vadd.f32 %v2500_v59, %v1738_v57  ;;  %v2502_v45 = vpop.f32.mrb[17].mxu0  ;;  %2729 = vrot.lane.b32.xlu1 %v2658_v58, %s4482_s19 }
 0x356   : >> { %v2659_v27 = vmax.f32 %v4194_v20, 0.0 }
 0x357   : >> { %v2505_v62 = vpop.f32.mrb[18].mxu0 }
 0x358   : >> { %v4196_v0 = vadd.f32 %v2505_v62, %v1739_v61  ;;  %v2507_v32 = vpop.f32.mrb[19].mxu0  ;;  %2731 = vrot.lane.b32.xlu0 %v2659_v27, %s4482_s19 }
 0x35a   : >> { %v2660_v40 = vmax.f32 %v4196_v0, 0.0 }
 0x35b   : >> { %v2510_v30 = vpop.f32.mrb[20].mxu0 }
 0x35c   : >> { %v4198_v6 = vadd.f32 %v2510_v30, %v1740_v3  ;;  %v2512_v49 = vpop.f32.mrb[21].mxu0  ;;  %2733 = vrot.lane.b32.xlu1 %v2660_v40, %s4482_s19 }
 0x35e   : >> { %v2661_v55 = vmax.f32 %v4198_v6, 0.0 }
 0x35f   : >> { %v2515_v2 = vpop.f32.mrb[22].mxu0 }
 0x360   : >> { %v4200_v11 = vadd.f32 %v2515_v2, %v1741_v10  ;;  %v2517_v14 = vpop.f32.mrb[23].mxu0  ;;  %2735 = vrot.lane.b32.xlu0 %v2661_v55, %s4482_s19 }
 0x362   : >> { %v2662_v4 = vmax.f32 %v4200_v11, 0.0 }
 0x363   : >> { %v2520_v38 = vpop.f32.mrb[24].mxu0 }
 0x364   : >> { %v4202_v15 = vadd.f32 %v2520_v38, %v1742_v63  ;;  %v2522_v16 = vpop.f32.mrb[25].mxu0  ;;  %2737 = vrot.lane.b32.xlu1 %v2662_v4, %s4482_s19 }
 0x366   : >> { %v2663_v37 = vmax.f32 %v4202_v15, 0.0 }
 0x367   : >> { %v2525_v5 = vpop.f32.mrb[26].mxu0 }
 0x368   : >> { %v4204_v22 = vadd.f32 %v2525_v5, %v1743_v7  ;;  %v2527_v19 = vpop.f32.mrb[27].mxu0  ;;  %2739 = vrot.lane.b32.xlu0 %v2663_v37, %s4482_s19 }
 0x36a   : >> { %v2664_v18 = vmax.f32 %v4204_v22, 0.0 }
 0x36b   : >> { %v2095_v35 = vpop.f32.mrb[32].mxu1  ;;  %v2530_v34 = vpop.f32.mrb[28].mxu0 }
 0x36c   : >> { %v4206_v24 = vadd.f32 %v2530_v34, %v1744_v13  ;;  %v2097_v21 = vpop.f32.mrb[33].mxu1  ;;  %v2532_v25 = vpop.f32.mrb[29].mxu0  ;;  %2741 = vrot.lane.b32.xlu1 %v2664_v18, %s4482_s19  ;;  %v4209_v52 = vadd.f32 %v5486_v60, %v2095_v35 }
 0x36e   : >> { %v2665_v26 = vmax.f32 %v4206_v24, 0.0 }
 0x36f   : >> { %v2100_v28 = vpop.f32.mrb[34].mxu1  ;;  %v2535_v56 = vpop.f32.mrb[30].mxu0 }
 0x370   : >> { %v4208_v29 = vadd.f32 %v2535_v56, %v1745_v8  ;;  %v2102_v1 = vpop.f32.mrb[35].mxu1  ;;  %v2537_v44 = vpop.f32.mrb[31].mxu0  ;;  %2743 = vrot.lane.b32.xlu0 %v2665_v26, %s4482_s19  ;;  %v4211_v9 = vadd.f32 %v5486_v60, %v2100_v28 }
 0x372   : >> { %v2666_v31 = vmax.f32 %v4208_v29, 0.0 }
 0x373   : >> { %v2105_v33 = vpop.f32.mrb[36].mxu1  ;;  %v2540_v36 = vpop.f32.mrb[32].mxu0 }
 0x374   : >> { %v4210_v12 = vadd.f32 %v4209_v52, %v2540_v36  ;;  %v2107_v39 = vpop.f32.mrb[37].mxu1  ;;  %v2542_v23 = vpop.f32.mrb[33].mxu0  ;;  %2745 = vrot.lane.b32.xlu1 %v2666_v31, %s4482_s19  ;;  %v4213_v50 = vadd.f32 %v5486_v60, %v2105_v33 }
 0x376   : >> { %v2667_v41 = vmax.f32 %v4210_v12, 0.0 }
 0x377   : >> { %v2110_v42 = vpop.f32.mrb[38].mxu1  ;;  %v2545_v43 = vpop.f32.mrb[34].mxu0 }
 0x378   : >> { %v4212_v46 = vadd.f32 %v4211_v9, %v2545_v43  ;;  %v2112_v48 = vpop.f32.mrb[39].mxu1  ;;  %v2547_v47 = vpop.f32.mrb[35].mxu0  ;;  %2747 = vrot.lane.b32.xlu0 %v2667_v41, %s4482_s19  ;;  %v4215_v59 = vadd.f32 %v5486_v60, %v2110_v42 }
 0x37a   : >> { %v2668_v51 = vmax.f32 %v4212_v46, 0.0 }
 0x37b   : >> { %v2115_v53 = vpop.f32.mrb[40].mxu1  ;;  %v2550_v54 = vpop.f32.mrb[36].mxu0 }
 0x37c   : >> { %v4214_v17 = vadd.f32 %v4213_v50, %v2550_v54  ;;  %v2117_v57 = vpop.f32.mrb[41].mxu1  ;;  %v2552_v58 = vpop.f32.mrb[37].mxu0  ;;  %2749 = vrot.lane.b32.xlu1 %v2668_v51, %s4482_s19  ;;  %v4217_v32 = vadd.f32 %v5486_v60, %v2115_v53 }
 0x37e   : >> { %v2669_v20 = vmax.f32 %v4214_v17, 0.0 }
 0x37f   : >> { %v2120_v45 = vpop.f32.mrb[42].mxu1  ;;  %v2555_v61 = vpop.f32.mrb[38].mxu0 }
 0x380   : >> { %v4216_v27 = vadd.f32 %v4215_v59, %v2555_v61  ;;  %v2122_v62 = vpop.f32.mrb[43].mxu1  ;;  %v2557_v0 = vpop.f32.mrb[39].mxu0  ;;  %2751 = vrot.lane.b32.xlu0 %v2669_v20, %s4482_s19  ;;  %v4219_v55 = vadd.f32 %v5486_v60, %v2120_v45 }
 0x382   : >> { %v2670_v3 = vmax.f32 %v4216_v27, 0.0 }
 0x383   : >> { %v2125_v40 = vpop.f32.mrb[44].mxu1  ;;  %v2560_v30 = vpop.f32.mrb[40].mxu0 }
 0x384   : >> { %v4218_v6 = vadd.f32 %v4217_v32, %v2560_v30  ;;  %v2127_v49 = vpop.f32.mrb[45].mxu1  ;;  %v2562_v10 = vpop.f32.mrb[41].mxu0  ;;  %2753 = vrot.lane.b32.xlu1 %v2670_v3, %s4482_s19  ;;  %v4221_v15 = vadd.f32 %v5486_v60, %v2125_v40 }
 0x386   : >> { %v2671_v2 = vmax.f32 %v4218_v6, 0.0 }
 0x387   : >> { %v2130_v11 = vpop.f32.mrb[46].mxu1  ;;  %v2565_v14 = vpop.f32.mrb[42].mxu0 }
 0x388   : >> { %v4220_v63 = vadd.f32 %v4219_v55, %v2565_v14  ;;  %v2132_v4 = vpop.f32.mrb[47].mxu1  ;;  %v2567_v38 = vpop.f32.mrb[43].mxu0  ;;  %2755 = vrot.lane.b32.xlu0 %v2671_v2, %s4482_s19  ;;  %v4223_v13 = vadd.f32 %v5486_v60, %v2130_v11 }
 0x38a   : >> { %v2672_v16 = vmax.f32 %v4220_v63, 0.0 }
 0x38b   : >> { %v2135_v7 = vpop.f32.mrb[48].mxu1  ;;  %v2570_v37 = vpop.f32.mrb[44].mxu0 }
 0x38c   : >> { %v4222_v5 = vadd.f32 %v4221_v15, %v2570_v37  ;;  %v2137_v22 = vpop.f32.mrb[49].mxu1  ;;  %v2572_v19 = vpop.f32.mrb[45].mxu0  ;;  %2757 = vrot.lane.b32.xlu1 %v2672_v16, %s4482_s19  ;;  %v4225_v8 = vadd.f32 %v5486_v60, %v2135_v7 }
 0x38e   : >> { %v2673_v18 = vmax.f32 %v4222_v5, 0.0 }
 0x38f   : >> { %v2140_v35 = vpop.f32.mrb[50].mxu1  ;;  %v2575_v34 = vpop.f32.mrb[46].mxu0 }
 0x390   : >> { %v4224_v24 = vadd.f32 %v4223_v13, %v2575_v34  ;;  %v2142_v21 = vpop.f32.mrb[51].mxu1  ;;  %v2577_v25 = vpop.f32.mrb[47].mxu0  ;;  %2759 = vrot.lane.b32.xlu0 %v2673_v18, %s4482_s19  ;;  %v4227_v52 = vadd.f32 %v5486_v60, %v2140_v35 }
 0x392   : >> { %v2674_v26 = vmax.f32 %v4224_v24, 0.0 }
 0x393   : >> { %v2145_v28 = vpop.f32.mrb[52].mxu1  ;;  %v2580_v56 = vpop.f32.mrb[48].mxu0 }
 0x394   : >> { %v4226_v29 = vadd.f32 %v4225_v8, %v2580_v56  ;;  %v2147_v1 = vpop.f32.mrb[53].mxu1  ;;  %v2582_v44 = vpop.f32.mrb[49].mxu0  ;;  %2761 = vrot.lane.b32.xlu1 %v2674_v26, %s4482_s19  ;;  %v4229_v9 = vadd.f32 %v5486_v60, %v2145_v28 }
 0x396   : >> { %v2675_v31 = vmax.f32 %v4226_v29, 0.0 }
 0x397   : >> { %v2150_v33 = vpop.f32.mrb[54].mxu1  ;;  %v2585_v36 = vpop.f32.mrb[50].mxu0 }
 0x398   : >> { %v4228_v12 = vadd.f32 %v4227_v52, %v2585_v36  ;;  %v2152_v39 = vpop.f32.mrb[55].mxu1  ;;  %v2587_v23 = vpop.f32.mrb[51].mxu0  ;;  %2763 = vrot.lane.b32.xlu0 %v2675_v31, %s4482_s19  ;;  %v4231_v50 = vadd.f32 %v5486_v60, %v2150_v33 }
 0x39a   : >> { %v2676_v41 = vmax.f32 %v4228_v12, 0.0 }
 0x39b   : >> { %v2155_v42 = vpop.f32.mrb[56].mxu1  ;;  %v2590_v43 = vpop.f32.mrb[52].mxu0 }
 0x39c   : >> { %v4230_v46 = vadd.f32 %v4229_v9, %v2590_v43  ;;  %v2157_v48 = vpop.f32.mrb[57].mxu1  ;;  %v2592_v47 = vpop.f32.mrb[53].mxu0  ;;  %2765 = vrot.lane.b32.xlu1 %v2676_v41, %s4482_s19  ;;  %v4233_v59 = vadd.f32 %v5486_v60, %v2155_v42 }
 0x39e   : >> { %v2677_v51 = vmax.f32 %v4230_v46, 0.0 }
 0x39f   : >> { %v2160_v53 = vpop.f32.mrb[58].mxu1  ;;  %v2595_v54 = vpop.f32.mrb[54].mxu0 }
 0x3a0   : >> { %v4232_v17 = vadd.f32 %v4231_v50, %v2595_v54  ;;  %v2162_v57 = vpop.f32.mrb[59].mxu1  ;;  %v2597_v58 = vpop.f32.mrb[55].mxu0  ;;  %2767 = vrot.lane.b32.xlu0 %v2677_v51, %s4482_s19  ;;  %v4235_v32 = vadd.f32 %v5486_v60, %v2160_v53 }
 0x3a2   : >> { %v2678_v20 = vmax.f32 %v4232_v17, 0.0 }
 0x3a3   : >> { %v2165_v45 = vpop.f32.mrb[60].mxu1  ;;  %v2600_v61 = vpop.f32.mrb[56].mxu0 }
 0x3a4   : >> { %v4234_v27 = vadd.f32 %v4233_v59, %v2600_v61  ;;  %v2167_v62 = vpop.f32.mrb[61].mxu1  ;;  %v2602_v0 = vpop.f32.mrb[57].mxu0  ;;  %2769 = vrot.lane.b32.xlu1 %v2678_v20, %s4482_s19  ;;  %v4237_v55 = vadd.f32 %v5486_v60, %v2165_v45  ;;  %v2875_v20 = vld [vmem:[%s5791_s5] sm:$0xff] (%p887_p4)  ;;  %v2876_v45 = vld [vmem:[%s5791_s5 + $0x8] sm:$0xff] (%p887_p4)  ;;  %v2877_v61 = vld [vmem:[%s5791_s5 + $0x10] sm:$0xff] (%p887_p4) }
 0x3a5   : > { %v4135_v62 = vpack.c.bf16 (%p887_p4), %v2876_v45, %v2875_v20 }
 0x3a6   : >> { %v2679_v3 = vmax.f32 %v4234_v27, 0.0  ;;  %v2878_v27 = vld [vmem:[%s5791_s5 + $0x18] sm:$0xff] (%p887_p4) }
 0x3a7   : >> { %v2170_v40 = vpop.f32.mrb[62].mxu1  ;;  %v2605_v30 = vpop.f32.mrb[58].mxu0  ;;  %v4139_v0 = vpack.c.bf16 (%p887_p4), %v2878_v27, %v2877_v61  ;;  %4136 = vmatprep.subr.bf16.mxu0 (%p887_p4), %v4135_v62  ;;  %4305 = vmatprep.subr.bf16.mxu1 (%p887_p4), %v4135_v62 }
 0x3a8   : >> { %v4236_v6 = vadd.f32 %v4235_v32, %v2605_v30  ;;  %v2172_v49 = vpop.f32.mrb[63].mxu1  ;;  %v2607_v10 = vpop.f32.mrb[59].mxu0  ;;  %2771 = vrot.lane.b32.xlu0 %v2679_v3, %s4482_s19  ;;  %v4239_v38 = vadd.f32 %v5486_v60, %v2170_v40  ;;  %v2879_v32 = vld [vmem:[%s5791_s5 + $0x20] sm:$0xff] (%p887_p4)  ;;  %v2880_v3 = vld [vmem:[%s5791_s5 + $0x28] sm:$0xff] (%p887_p4)  ;;  %4138 = vmatpush3.bf16.msra.mxu0 (%p887_p4), %v4135_v62 }
 0x3a9   : > { %4309 = vmatpush3.bf16.msra.mxu1 (%p887_p4), %v4135_v62  ;;  %4140 = vmatprep.subr.bf16.mxu0 (%p887_p4), %v4139_v0  ;;  %v2881_v49 = vld [vmem:[%s5791_s5 + $0x30] sm:$0xff] (%p887_p4)  ;;  %v2882_v10 = vld [vmem:[%s5791_s5 + $0x38] sm:$0xff] (%p887_p4)  ;;  %v5685_v62 = vld [vmem:[#allocation3] ss:$0 sm:$0xff] (%p887_p4) }
 0x3aa   : >> { %v2680_v2 = vmax.f32 %v4236_v6, 0.0  ;;  %v2716_v11 = vpop.permute.xlu0 %2715  ;;  %4306 = vmatprep.subr.bf16.mxu1 (%p887_p4), %v4139_v0  ;;  %v4143_v6 = vpack.c.bf16 (%p887_p4), %v2880_v3, %v2879_v32 }
 0x3ab   : >> { %2811 = vst.msk [vmem:[#allocation2 + $0x20] sm:$0xff] %vm852_vm6, %v2716_v11  ;;  %v2610_v14 = vpop.f32.mrb[60].mxu0  ;;  %v4147_v11 = vpack.c.bf16 (%p887_p4), %v2882_v10, %v2881_v49 }
 0x3ac   : >> { %v4238_v63 = vadd.f32 %v4237_v55, %v2610_v14  ;;  %v2612_v4 = vpop.f32.mrb[61].mxu0  ;;  %2773 = vrot.lane.b32.xlu1 %v2680_v2, %s4482_s19  ;;  %4142 = vmatpush3.bf16.msra.mxu0 (%p887_p4), %v4139_v0 }
 0x3ad   : > { %4310 = vmatpush3.bf16.msra.mxu1 (%p887_p4), %v4139_v0  ;;  %4144 = vmatprep.subr.bf16.mxu0 (%p887_p4), %v4143_v6 }
 0x3ae   : >> { %v2681_v15 = vmax.f32 %v4238_v63, 0.0  ;;  %v2718_v16 = vpop.permute.xlu1 %2717  ;;  %4307 = vmatprep.subr.bf16.mxu1 (%p887_p4), %v4143_v6 }
 0x3af   : >> { %2812 = vst.msk [vmem:[#allocation2 + $0x30] sm:$0xff] %vm852_vm6, %v2718_v16  ;;  %v2615_v7 = vpop.f32.mrb[62].mxu0 }
 0x3b0   : >> { %v4240_v37 = vadd.f32 %v4239_v38, %v2615_v7  ;;  %v2617_v5 = vpop.f32.mrb[63].mxu0  ;;  %2775 = vrot.lane.b32.xlu0 %v2681_v15, %s4482_s19  ;;  %4146 = vmatpush3.bf16.msra.mxu0 (%p887_p4), %v4143_v6 }
 0x3b1   : > { %4311 = vmatpush3.bf16.msra.mxu1 (%p887_p4), %v4143_v6  ;;  %4148 = vmatprep.subr.bf16.mxu0 (%p887_p4), %v4147_v11 }
 0x3b2   : >> { %v2682_v22 = vmax.f32 %v4240_v37, 0.0  ;;  %v2720_v19 = vpop.permute.xlu0 %2719  ;;  %v2843_v51 = vld [vmem:[#allocation2 + $0x20] sm:$0xff] (%p887_p4)  ;;  %4308 = vmatprep.subr.bf16.mxu1 (%p887_p4), %v4147_v11 }
 0x3b3   : >> { %2813 = vst.msk [vmem:[#allocation2 + $0x40] sm:$0xff] %vm852_vm6, %v2720_v19 }
 0x3b4   : >> { %2777 = vrot.lane.b32.xlu1 %v2682_v22, %s4482_s19  ;;  %2922 = vrot.lane.b32.xlu0 (%p887_p4), %v2843_v51, %s4480_s17 }
 0x3b5   : > { %4150 = vmatpush3.bf16.msra.mxu0 (%p887_p4), %v4147_v11  ;;  %4312 = vmatpush3.bf16.msra.mxu1 (%p887_p4), %v4147_v11 }
 0x3b6   : >> { %v2722_v13 = vpop.permute.xlu1 %2721  ;;  %v2844_v50 = vld [vmem:[#allocation2 + $0x30] sm:$0xff] (%p887_p4) }
 0x3b7   : >> { %2814 = vst.msk [vmem:[#allocation2 + $0x50] sm:$0xff] %vm852_vm6, %v2722_v13 }
 0x3b8   : > { %2924 = vrot.lane.b32.xlu1 (%p887_p4), %v2844_v50, %s4480_s17 }
 0x3ba   : >> { %v2724_v18 = vpop.permute.xlu0 %2723  ;;  %v2845_v57 = vld [vmem:[#allocation2 + $0x40] sm:$0xff] (%p887_p4) }
 0x3bb   : >> { %2815 = vst.msk [vmem:[#allocation2 + $0x60] sm:$0xff] %vm852_vm6, %v2724_v18 }
 0x3be   : >> { %v2726_v60 = vpop.permute.xlu1 %2725  ;;  %v2846_v59 = vld [vmem:[#allocation2 + $0x50] sm:$0xff] (%p887_p4) }
 0x3bf   : >> { %2816 = vst.msk [vmem:[#allocation2 + $0x70] sm:$0xff] %vm852_vm6, %v2726_v60 }
 0x3c2   : >> { %v2728_v35 = vpop.permute.xlu0 %2727  ;;  %v2847_v30 = vld [vmem:[#allocation2 + $0x60] sm:$0xff] (%p887_p4) }
 0x3c3   : >> { %2817 = vst.msk [vmem:[#allocation2 + $0x80] sm:$0xff] %vm852_vm6, %v2728_v35 }
 0x3c6   : >> { %v2730_v34 = vpop.permute.xlu1 %2729  ;;  %v2848_v2 = vld [vmem:[#allocation2 + $0x70] sm:$0xff] (%p887_p4) }
 0x3c7   : >> { %2818 = vst.msk [vmem:[#allocation2 + $0x90] sm:$0xff] %vm852_vm6, %v2730_v34 }
 0x3ca   : >> { %v2732_v24 = vpop.permute.xlu0 %2731  ;;  %v2849_v63 = vld [vmem:[#allocation2 + $0x80] sm:$0xff] (%p887_p4) }
 0x3cb   : >> { %2819 = vst.msk [vmem:[#allocation2 + $0xa0] sm:$0xff] %vm852_vm6, %v2732_v24 }
 0x3ce   : >> { %v2734_v21 = vpop.permute.xlu1 %2733  ;;  %v2850_v38 = vld [vmem:[#allocation2 + $0x90] sm:$0xff] (%p887_p4) }
 0x3cf   : >> { %2820 = vst.msk [vmem:[#allocation2 + $0xb0] sm:$0xff] %vm852_vm6, %v2734_v21 }
 0x3d2   : >> { %v2736_v25 = vpop.permute.xlu0 %2735  ;;  %v2851_v16 = vld [vmem:[#allocation2 + $0xa0] sm:$0xff] (%p887_p4) }
 0x3d3   : >> { %2821 = vst.msk [vmem:[#allocation2 + $0xc0] sm:$0xff] %vm852_vm6, %v2736_v25 }
 0x3d6   : >> { %v2738_v8 = vpop.permute.xlu1 %2737  ;;  %v2852_v37 = vld [vmem:[#allocation2 + $0xb0] sm:$0xff] (%p887_p4) }
 0x3d7   : >> { %2822 = vst.msk [vmem:[#allocation2 + $0xd0] sm:$0xff] %vm852_vm6, %v2738_v8 }
 0x3da   : >> { %v2740_v26 = vpop.permute.xlu0 %2739  ;;  %v2853_v22 = vld [vmem:[#allocation2 + $0xc0] sm:$0xff] (%p887_p4) }
 0x3db   : >> { %2823 = vst.msk [vmem:[#allocation2 + $0xe0] sm:$0xff] %vm852_vm6, %v2740_v26 }
 0x3de   : >> { %v2742_v28 = vpop.permute.xlu1 %2741  ;;  %v2854_v13 = vld [vmem:[#allocation2 + $0xd0] sm:$0xff] (%p887_p4) }
 0x3df   : >> { %2824 = vst.msk [vmem:[#allocation2 + $0xf0] sm:$0xff] %vm852_vm6, %v2742_v28 }
 0x3e2   : >> { %v2744_v56 = vpop.permute.xlu0 %2743  ;;  %v2855_v60 = vld [vmem:[#allocation2 + $0xe0] sm:$0xff] (%p887_p4) }
 0x3e3   : >> { %2825 = vst.msk [vmem:[#allocation2 + $0x100] sm:$0xff] %vm852_vm6, %v2744_v56 }
 0x3e6   : >> { %v2746_v29 = vpop.permute.xlu1 %2745  ;;  %v2856_v34 = vld [vmem:[#allocation2 + $0xf0] sm:$0xff] (%p887_p4) }
 0x3e7   : >> { %2826 = vst.msk [vmem:[#allocation2 + $0x110] sm:$0xff] %vm852_vm6, %v2746_v29 }
 0x3ea   : >> { %v2748_v1 = vpop.permute.xlu0 %2747  ;;  %v2857_v21 = vld [vmem:[#allocation2 + $0x100] sm:$0xff] (%p887_p4) }
 0x3eb   : >> { %2827 = vst.msk [vmem:[#allocation2 + $0x120] sm:$0xff] %vm852_vm6, %v2748_v1 }
 0x3ee   : >> { %v2750_v44 = vpop.permute.xlu1 %2749  ;;  %v2858_v8 = vld [vmem:[#allocation2 + $0x110] sm:$0xff] (%p887_p4) }
 0x3ef   : >> { %2828 = vst.msk [vmem:[#allocation2 + $0x130] sm:$0xff] %vm852_vm6, %v2750_v44 }
 0x3f2   : >> { %v2752_v52 = vpop.permute.xlu0 %2751  ;;  %v2859_v54 = vld [vmem:[#allocation2 + $0x120] sm:$0xff] (%p887_p4) }
 0x3f3   : >> { %2829 = vst.msk [vmem:[#allocation2 + $0x140] sm:$0xff] %vm852_vm6, %v2752_v52  ;;  %2954 = vrot.lane.b32.xlu0 (%p887_p4), %v2859_v54, %s4480_s17 }
 0x3f6   : >> { %v2754_v31 = vpop.permute.xlu1 %2753  ;;  %v2860_v53 = vld [vmem:[#allocation2 + $0x130] sm:$0xff] (%p887_p4) }
 0x3f7   : >> { %2830 = vst.msk [vmem:[#allocation2 + $0x150] sm:$0xff] %vm852_vm6, %v2754_v31  ;;  %2956 = vrot.lane.b32.xlu1 (%p887_p4), %v2860_v53, %s4480_s17  ;;  %2926 = vrot.lane.b32.xlu0 (%p887_p4), %v2845_v57, %s4480_s17 }
 0x3fa   : >> { %v2756_v33 = vpop.permute.xlu0 %2755  ;;  %v2861_v17 = vld [vmem:[#allocation2 + $0x140] sm:$0xff] (%p887_p4) }
 0x3fb   : >> { %2831 = vst.msk [vmem:[#allocation2 + $0x160] sm:$0xff] %vm852_vm6, %v2756_v33  ;;  %2958 = vrot.lane.b32.xlu1 (%p887_p4), %v2861_v17, %s4480_s17  ;;  %2928 = vrot.lane.b32.xlu0 (%p887_p4), %v2846_v59, %s4480_s17 }
 0x3fe   : >> { %v2758_v36 = vpop.permute.xlu1 %2757  ;;  %v2862_v58 = vld [vmem:[#allocation2 + $0x150] sm:$0xff] (%p887_p4) }
 0x3ff   : >> { %2832 = vst.msk [vmem:[#allocation2 + $0x170] sm:$0xff] %vm852_vm6, %v2758_v36  ;;  %2960 = vrot.lane.b32.xlu1 (%p887_p4), %v2862_v58, %s4480_s17  ;;  %2930 = vrot.lane.b32.xlu0 (%p887_p4), %v2847_v30, %s4480_s17 }
 0x402   : >> { %v2760_v12 = vpop.permute.xlu0 %2759  ;;  %v2863_v40 = vld [vmem:[#allocation2 + $0x160] sm:$0xff] (%p887_p4) }
 0x403   : >> { %2833 = vst.msk [vmem:[#allocation2 + $0x180] sm:$0xff] %vm852_vm6, %v2760_v12  ;;  %2962 = vrot.lane.b32.xlu1 (%p887_p4), %v2863_v40, %s4480_s17  ;;  %2932 = vrot.lane.b32.xlu0 (%p887_p4), %v2848_v2, %s4480_s17 }
 0x406   : >> { %v2762_v39 = vpop.permute.xlu1 %2761  ;;  %v2864_v55 = vld [vmem:[#allocation2 + $0x170] sm:$0xff] (%p887_p4) }
 0x407   : >> { %2834 = vst.msk [vmem:[#allocation2 + $0x190] sm:$0xff] %vm852_vm6, %v2762_v39  ;;  %2964 = vrot.lane.b32.xlu1 (%p887_p4), %v2864_v55, %s4480_s17  ;;  %2934 = vrot.lane.b32.xlu0 (%p887_p4), %v2849_v63, %s4480_s17 }
 0x40a   : >> { %v2764_v23 = vpop.permute.xlu0 %2763  ;;  %v2865_v14 = vld [vmem:[#allocation2 + $0x180] sm:$0xff] (%p887_p4) }
 0x40b   : >> { %2835 = vst.msk [vmem:[#allocation2 + $0x1a0] sm:$0xff] %vm852_vm6, %v2764_v23  ;;  %2966 = vrot.lane.b32.xlu1 (%p887_p4), %v2865_v14, %s4480_s17  ;;  %2936 = vrot.lane.b32.xlu0 (%p887_p4), %v2850_v38, %s4480_s17 }
 0x40e   : >> { %v2766_v9 = vpop.permute.xlu1 %2765  ;;  %v2866_v4 = vld [vmem:[#allocation2 + $0x190] sm:$0xff] (%p887_p4) }
 0x40f   : >> { %2836 = vst.msk [vmem:[#allocation2 + $0x1b0] sm:$0xff] %vm852_vm6, %v2766_v9  ;;  %2968 = vrot.lane.b32.xlu1 (%p887_p4), %v2866_v4, %s4480_s17  ;;  %2938 = vrot.lane.b32.xlu0 (%p887_p4), %v2851_v16, %s4480_s17 }
 0x412   : >> { %v2768_v41 = vpop.permute.xlu0 %2767  ;;  %v2867_v15 = vld [vmem:[#allocation2 + $0x1a0] sm:$0xff] (%p887_p4) }
 0x413   : >> { %2837 = vst.msk [vmem:[#allocation2 + $0x1c0] sm:$0xff] %vm852_vm6, %v2768_v41  ;;  %2970 = vrot.lane.b32.xlu1 (%p887_p4), %v2867_v15, %s4480_s17  ;;  %2940 = vrot.lane.b32.xlu0 (%p887_p4), %v2852_v37, %s4480_s17 }
 0x416   : >> { %v2770_v42 = vpop.permute.xlu1 %2769  ;;  %v2868_v7 = vld [vmem:[#allocation2 + $0x1b0] sm:$0xff] (%p887_p4) }
 0x417   : >> { %2838 = vst.msk [vmem:[#allocation2 + $0x1d0] sm:$0xff] %vm852_vm6, %v2770_v42  ;;  %2972 = vrot.lane.b32.xlu1 (%p887_p4), %v2868_v7, %s4480_s17  ;;  %2942 = vrot.lane.b32.xlu0 (%p887_p4), %v2853_v22, %s4480_s17 }
 0x41a   : >> { %v2772_v43 = vpop.permute.xlu0 %2771  ;;  %v2869_v5 = vld [vmem:[#allocation2 + $0x1c0] sm:$0xff] (%p887_p4) }
 0x41b   : >> { %2839 = vst.msk [vmem:[#allocation2 + $0x1e0] sm:$0xff] %vm852_vm6, %v2772_v43  ;;  %2974 = vrot.lane.b32.xlu1 (%p887_p4), %v2869_v5, %s4480_s17  ;;  %2944 = vrot.lane.b32.xlu0 (%p887_p4), %v2854_v13, %s4480_s17 }
 0x41e   : >> { %v2774_v46 = vpop.permute.xlu1 %2773  ;;  %v2870_v19 = vld [vmem:[#allocation2 + $0x1d0] sm:$0xff] (%p887_p4) }
 0x41f   : >> { %2840 = vst.msk [vmem:[#allocation2 + $0x1f0] sm:$0xff] %vm852_vm6, %v2774_v46  ;;  %2976 = vrot.lane.b32.xlu1 (%p887_p4), %v2870_v19, %s4480_s17  ;;  %2946 = vrot.lane.b32.xlu0 (%p887_p4), %v2855_v60, %s4480_s17 }
 0x421   : > { %889 = sbr.rel (!%p887_p4) target bundleno = 413 (0x19d), region = 92 }
 0x422   : >> { %v2776_v48 = vpop.permute.xlu0 %2775  ;;  %v2871_v18 = vld [vmem:[#allocation2 + $0x1e0] sm:$0xff] (%p887_p4) }
 0x423   : >> { %2841 = vst.msk [vmem:[#allocation2 + $0x200] sm:$0xff] %vm852_vm6, %v2776_v48  ;;  %2978 = vrot.lane.b32.xlu1 (%p887_p4), %v2871_v18, %s4480_s17  ;;  %2948 = vrot.lane.b32.xlu0 (%p887_p4), %v2856_v34, %s4480_s17 }
 0x426   : >> { %v2778_v47 = vpop.permute.xlu1 %2777  ;;  %v2872_v35 = vld [vmem:[#allocation2 + $0x1f0] sm:$0xff] (%p887_p4)  ;;  %v2923_v28 = vpop.permute.xlu0 (%p887_p4), %2922 }
 0x427   : >> { %2842 = vst.msk [vmem:[#allocation2 + $0x210] sm:$0xff] %vm852_vm6, %v2778_v47  ;;  %2980 = vrot.lane.b32.xlu1 (%p887_p4), %v2872_v35, %s4480_s17  ;;  %2950 = vrot.lane.b32.xlu0 (%p887_p4), %v2857_v21, %s4480_s17 }
 0x428   : > { %3973 = vmatprep.mubr.msk.f32.mxu0 %vm282_vm5, %v2923_v28 }
 0x42a   : > { %v2873_v24 = vld [vmem:[#allocation2 + $0x200] sm:$0xff]  ;;  %v2925_v26 = vpop.permute.xlu1 %2924 }
 0x42b   : > { %2982 = vrot.lane.b32.xlu1 %v2873_v24, %s4480_s17  ;;  %2952 = vrot.lane.b32.xlu0 %v2858_v8, %s4480_s17 }
 0x42c   : > { %3974 = vmatmul.mubr.msk.f32.vlgmr.msra.gmra.mrb[0].mxu0 %vm282_vm5, %v2925_v26 }
 0x42e   : > { %v2874_v25 = vld [vmem:[#allocation2 + $0x210] sm:$0xff] }
 0x42f   : > { %2984 = vrot.lane.b32.xlu1 %v2874_v25, %s4480_s17 }
 0x465   : > { %v2955_v29 = vpop.permute.xlu0 %2954 }
 0x466   : > { %3997 = vmatprep.mubr.msk.f32.mxu1 %vm282_vm5, %v2955_v29 }
 0x469   : > { %v2957_v56 = vpop.permute.xlu1 %2956  ;;  %v2927_v44 = vpop.permute.xlu0 %2926 }
 0x46a   : > { %3998 = vmatmul.mubr.msk.f32.vlgmr.msra.gmra.mrb[0].mxu1 %vm282_vm5, %v2957_v56  ;;  %3976 = vmatprep.mubr.msk.f32.mxu0 %vm282_vm5, %v2927_v44 }
 0x46d   : > { %v2959_v1 = vpop.permute.xlu1 %2958  ;;  %v2929_v31 = vpop.permute.xlu0 %2928 }
 0x46e   : > { %4000 = vmatprep.mubr.msk.f32.mxu1 %vm282_vm5, %v2959_v1  ;;  %3977 = vmatmul.mubr.msk.f32.gmra.mrb[2].mxu0 %vm282_vm5, %v2929_v31 }
 0x471   : > { %v2961_v52 = vpop.permute.xlu1 %2960  ;;  %v2931_v36 = vpop.permute.xlu0 %2930 }
 0x472   : > { %4001 = vmatmul.mubr.msk.f32.gmra.mrb[2].mxu1 %vm282_vm5, %v2961_v52  ;;  %3979 = vmatprep.mubr.msk.f32.mxu0 %vm282_vm5, %v2931_v36 }
 0x475   : > { %v2963_v33 = vpop.permute.xlu1 %2962  ;;  %v2933_v39 = vpop.permute.xlu0 %2932 }
 0x476   : > { %4003 = vmatprep.mubr.msk.f32.mxu1 %vm282_vm5, %v2963_v33  ;;  %3980 = vmatmul.mubr.msk.f32.gmra.mrb[4].mxu0 %vm282_vm5, %v2933_v39 }
 0x479   : > { %v2965_v12 = vpop.permute.xlu1 %2964  ;;  %v2935_v9 = vpop.permute.xlu0 %2934 }
 0x47a   : > { %4004 = vmatmul.mubr.msk.f32.gmra.mrb[4].mxu1 %vm282_vm5, %v2965_v12  ;;  %3982 = vmatprep.mubr.msk.f32.mxu0 %vm282_vm5, %v2935_v9 }
 0x47d   : > { %v2967_v23 = vpop.permute.xlu1 %2966  ;;  %v2937_v42 = vpop.permute.xlu0 %2936 }
 0x47e   : > { %4006 = vmatprep.mubr.msk.f32.mxu1 %vm282_vm5, %v2967_v23  ;;  %3983 = vmatmul.mubr.msk.f32.gmra.mrb[6].mxu0 %vm282_vm5, %v2937_v42 }
 0x481   : > { %v2969_v41 = vpop.permute.xlu1 %2968  ;;  %v2939_v46 = vpop.permute.xlu0 %2938 }
 0x482   : > { %4007 = vmatmul.mubr.msk.f32.gmra.mrb[6].mxu1 %vm282_vm5, %v2969_v41  ;;  %3985 = vmatprep.mubr.msk.f32.mxu0 %vm282_vm5, %v2939_v46 }
 0x485   : > { %v2971_v43 = vpop.permute.xlu1 %2970  ;;  %v2941_v47 = vpop.permute.xlu0 %2940 }
 0x486   : > { %4009 = vmatprep.mubr.msk.f32.mxu1 %vm282_vm5, %v2971_v43  ;;  %3986 = vmatmul.mubr.msk.f32.gmra.mrb[8].mxu0 %vm282_vm5, %v2941_v47 }
 0x489   : > { %v2973_v48 = vpop.permute.xlu1 %2972  ;;  %v2943_v51 = vpop.permute.xlu0 %2942 }
 0x48a   : > { %4010 = vmatmul.mubr.msk.f32.gmra.mrb[8].mxu1 %vm282_vm5, %v2973_v48  ;;  %3988 = vmatprep.mubr.msk.f32.mxu0 %vm282_vm5, %v2943_v51 }
 0x48d   : > { %v2975_v50 = vpop.permute.xlu1 %2974  ;;  %v2945_v54 = vpop.permute.xlu0 %2944 }
 0x48e   : > { %4012 = vmatprep.mubr.msk.f32.mxu1 %vm282_vm5, %v2975_v50  ;;  %3989 = vmatmul.mubr.msk.f32.gmra.mrb[10].mxu0 %vm282_vm5, %v2945_v54 }
 0x491   : > { %v2977_v53 = vpop.permute.xlu1 %2976  ;;  %v2947_v57 = vpop.permute.xlu0 %2946 }
 0x492   : > { %4013 = vmatmul.mubr.msk.f32.gmra.mrb[10].mxu1 %vm282_vm5, %v2977_v53  ;;  %3991 = vmatprep.mubr.msk.f32.mxu0 %vm282_vm5, %v2947_v57 }
 0x495   : > { %v2979_v17 = vpop.permute.xlu1 %2978  ;;  %v2949_v59 = vpop.permute.xlu0 %2948 }
 0x496   : > { %4015 = vmatprep.mubr.msk.f32.mxu1 %vm282_vm5, %v2979_v17  ;;  %3992 = vmatmul.mubr.msk.f32.gmra.mrb[12].mxu0 %vm282_vm5, %v2949_v59 }
 0x499   : > { %v2981_v58 = vpop.permute.xlu1 %2980  ;;  %v2951_v45 = vpop.permute.xlu0 %2950 }
 0x49a   : > { %4016 = vmatmul.mubr.msk.f32.gmra.mrb[12].mxu1 %vm282_vm5, %v2981_v58  ;;  %3994 = vmatprep.mubr.msk.f32.mxu0 %vm282_vm5, %v2951_v45 }
 0x49d   : > { %v2983_v20 = vpop.permute.xlu1 %2982  ;;  %v2953_v27 = vpop.permute.xlu0 %2952 }
 0x49e   : > { %4018 = vmatprep.mubr.msk.f32.mxu1 %vm282_vm5, %v2983_v20  ;;  %3995 = vmatmul.mubr.msk.f32.gmra.mrb[14].mxu0 %vm282_vm5, %v2953_v27 }
 0x4a1   : > { %v2985_v61 = vpop.permute.xlu1 %2984 }
 0x4a2   : > { %4019 = vmatmul.mubr.msk.f32.gmra.mrb[14].mxu1 %vm282_vm5, %v2985_v61 }
 0x4ff   : > { %v3975_v0 = vpop.f32.mrb[0].mxu0 }
 0x500   : > { %v3122_v32 = vadd.f32 %v3975_v0, %v5685_v62  ;;  %v3116_v3 = vpop.f32.mrb[1].mxu0 }
 0x501   : > { %v3117_v40 = vadd.f32 %v5685_v62, %v3116_v3 }
 0x502   : > { %v3796_v30 = vmul.f32 -1.442695, %v3122_v32 }
 0x503   : > { %v3795_v6 = vmul.f32 -1.442695, %v3117_v40 }
 0x504   : > { %4334 = vpow2.f32 %v3796_v30 }
 0x505   : > { %4336 = vpow2.f32 %v3795_v6 }
 0x50e   : > { %v4335_v13 = vpop.eup %4334 }
 0x50f   : > { %v4337_v18 = vpop.eup %4336  ;;  %v3372_v60 = vadd.f32 1.0, %v4335_v13 }
 0x510   : > { %v3371_v34 = vadd.f32 1.0, %v4337_v18 }
 0x53d   : > { %v3999_v49 = vpop.f32.mrb[0].mxu1 }
 0x53e   : > { %v3202_v10 = vadd.f32 %v3999_v49, %v5685_v62  ;;  %v3196_v55 = vpop.f32.mrb[1].mxu1 }
 0x53f   : > { %v3197_v2 = vadd.f32 %v5685_v62, %v3196_v55 }
 0x540   : > { %v3812_v11 = vmul.f32 -1.442695, %v3202_v10 }
 0x541   : > { %v3811_v14 = vmul.f32 -1.442695, %v3197_v2  ;;  %v3978_v63 = vpop.f32.mrb[2].mxu0 }
 0x542   : > { %4338 = vpow2.f32 %v3812_v11  ;;  %v3132_v38 = vadd.f32 %v3978_v63, %v5685_v62  ;;  %v3126_v16 = vpop.f32.mrb[3].mxu0 }
 0x543   : > { %4340 = vpow2.f32 %v3811_v14  ;;  %v3127_v37 = vadd.f32 %v5685_v62, %v3126_v16 }
 0x544   : > { %v3798_v22 = vmul.f32 -1.442695, %v3132_v38 }
 0x545   : > { %v4002_v4 = vpop.f32.mrb[2].mxu1  ;;  %v3797_v35 = vmul.f32 -1.442695, %v3127_v37 }
 0x546   : > { %v3212_v15 = vadd.f32 %v4002_v4, %v5685_v62  ;;  %v3206_v7 = vpop.f32.mrb[3].mxu1  ;;  %4342 = vpow2.f32 %v3798_v22 }
 0x547   : > { %v3207_v5 = vadd.f32 %v5685_v62, %v3206_v7 }
 0x548   : > { %v3814_v19 = vmul.f32 -1.442695, %v3212_v15 }
 0x549   : > { %v3813_v24 = vmul.f32 -1.442695, %v3207_v5  ;;  %v3981_v25 = vpop.f32.mrb[4].mxu0 }
 0x54a   : > { %4344 = vpow2.f32 %v3814_v19  ;;  %v3142_v56 = vadd.f32 %v3981_v25, %v5685_v62  ;;  %v3136_v1 = vpop.f32.mrb[5].mxu0 }
 0x54b   : > { %4346 = vrcp.f32 %v3372_v60  ;;  %v3137_v31 = vadd.f32 %v5685_v62, %v3136_v1 }
 0x54c   : > { %v4339_v21 = vpop.eup %4338  ;;  %4348 = vrcp.f32 %v3371_v34  ;;  %v3800_v36 = vmul.f32 -1.442695, %v3142_v56 }
 0x54d   : > { %v4005_v8 = vpop.f32.mrb[4].mxu1  ;;  %v4341_v26 = vpop.eup %4340  ;;  %v3388_v28 = vadd.f32 1.0, %v4339_v21  ;;  %4350 = vpow2.f32 %v3797_v35  ;;  %v3799_v39 = vmul.f32 -1.442695, %v3137_v31 }
 0x54e   : > { %v3222_v29 = vadd.f32 %v4005_v8, %v5685_v62  ;;  %v3216_v44 = vpop.f32.mrb[5].mxu1  ;;  %v3387_v52 = vadd.f32 1.0, %v4341_v26  ;;  %4352 = vpow2.f32 %v3813_v24 }
 0x54f   : > { %v3217_v33 = vadd.f32 %v5685_v62, %v3216_v44  ;;  %4354 = vrcp.f32 %v3388_v28 }
 0x550   : > { %v3816_v12 = vmul.f32 -1.442695, %v3222_v29  ;;  %4356 = vrcp.f32 %v3387_v52  ;;  %v4343_v9 = vpop.eup %4342 }
 0x551   : > { %v3815_v23 = vmul.f32 -1.442695, %v3217_v33  ;;  %4358 = vpow2.f32 %v3800_v36  ;;  %v3374_v42 = vadd.f32 1.0, %v4343_v9  ;;  %v3984_v43 = vpop.f32.mrb[6].mxu0 }
 0x552   : > { %4360 = vpow2.f32 %v3816_v12  ;;  %v3152_v50 = vadd.f32 %v3984_v43, %v5685_v62  ;;  %v3146_v53 = vpop.f32.mrb[7].mxu0 }
 0x553   : > { %4362 = vpow2.f32 %v3799_v39  ;;  %v3147_v57 = vadd.f32 %v5685_v62, %v3146_v53 }
 0x554   : > { %v4345_v41 = vpop.eup %4344  ;;  %4364 = vpow2.f32 %v3815_v23  ;;  %v3802_v59 = vmul.f32 -1.442695, %v3152_v50 }
 0x555   : > { %v4008_v46 = vpop.f32.mrb[6].mxu1  ;;  %v4347_v48 = vpop.eup %4346  ;;  %v3390_v47 = vadd.f32 1.0, %v4345_v41  ;;  %4366 = vrcp.f32 %v3374_v42  ;;  %v3801_v32 = vmul.f32 -1.442695, %v3147_v57 }
 0x556   : > { %v3232_v51 = vadd.f32 %v4008_v46, %v5685_v62  ;;  %v3226_v54 = vpop.f32.mrb[7].mxu1  ;;  %v4349_v17 = vpop.eup %4348  ;;  %3469 = vst.msk [vmem:[%s4549_s14 + $0x8] sm:$0xff] %vm3467_vm10, %v4347_v48 }
 0x557   : > { %v4351_v58 = vpop.eup %4350  ;;  %3468 = vst.msk [vmem:[%s4549_s14] sm:$0xff] %vm3467_vm10, %v4349_v17  ;;  %4368 = vrcp.f32 %v3390_v47  ;;  %v3227_v40 = vadd.f32 %v5685_v62, %v3226_v54 }
 0x558   : > { %v4353_v20 = vpop.eup %4352  ;;  %v3373_v45 = vadd.f32 1.0, %v4351_v58  ;;  %v3818_v61 = vmul.f32 -1.442695, %v3232_v51  ;;  %4370 = vpow2.f32 %v3802_v59 }
 0x559   : > { %v4355_v27 = vpop.eup %4354  ;;  %v3389_v0 = vadd.f32 1.0, %v4353_v20  ;;  %v3987_v10 = vpop.f32.mrb[8].mxu0  ;;  %v3817_v7 = vmul.f32 -1.442695, %v3227_v40 }
 0x55a   : > { %v4357_v3 = vpop.eup %4356  ;;  %3485 = vst.msk [vmem:[%s4549_s14 + $0x88] sm:$0xff] %vm3467_vm10, %v4355_v27  ;;  %4372 = vrcp.f32 %v3373_v45  ;;  %v3162_v14 = vadd.f32 %v3987_v10, %v5685_v62  ;;  %v3156_v4 = vpop.f32.mrb[9].mxu0 }
 0x55b   : > { %v4359_v30 = vpop.eup %4358  ;;  %3484 = vst.msk [vmem:[%s4549_s14 + $0x80] sm:$0xff] %vm3467_vm10, %v4357_v3  ;;  %4374 = vrcp.f32 %v3389_v0  ;;  %v3157_v37 = vadd.f32 %v5685_v62, %v3156_v4 }
 0x55c   : > { %v4361_v6 = vpop.eup %4360  ;;  %v3376_v49 = vadd.f32 1.0, %v4359_v30  ;;  %4376 = vpow2.f32 %v3818_v61  ;;  %v3804_v22 = vmul.f32 -1.442695, %v3162_v14 }
 0x55d   : > { %v4011_v55 = vpop.f32.mrb[8].mxu1  ;;  %v4363_v2 = vpop.eup %4362  ;;  %v3392_v11 = vadd.f32 1.0, %v4361_v6  ;;  %4378 = vpow2.f32 %v3801_v32  ;;  %v3803_v35 = vmul.f32 -1.442695, %v3157_v37 }
 0x55e   : > { %v3242_v63 = vadd.f32 %v4011_v55, %v5685_v62  ;;  %v3236_v38 = vpop.f32.mrb[9].mxu1  ;;  %v4365_v15 = vpop.eup %4364  ;;  %4380 = vrcp.f32 %v3376_v49  ;;  %v3375_v16 = vadd.f32 1.0, %v4363_v2 }
 0x55f   : > { %4382 = vrcp.f32 %v3392_v11  ;;  %v3391_v5 = vadd.f32 1.0, %v4365_v15  ;;  %v3237_v19 = vadd.f32 %v5685_v62, %v3236_v38  ;;  %v4367_v13 = vpop.eup %4366 }
 0x560   : > { %4384 = vrcp.f32 %v3375_v16  ;;  %v3820_v18 = vmul.f32 -1.442695, %v3242_v63  ;;  %3471 = vst.msk [vmem:[%s4549_s14 + $0x18] sm:$0xff] %vm3467_vm10, %v4367_v13 }
 0x561   : > { %v4369_v60 = vpop.eup %4368  ;;  %4386 = vrcp.f32 %v3391_v5  ;;  %v3819_v24 = vmul.f32 -1.442695, %v3237_v19  ;;  %v3990_v8 = vpop.f32.mrb[10].mxu0 }
 0x562   : > { %3487 = vst.msk [vmem:[%s4549_s14 + $0x98] sm:$0xff] %vm3467_vm10, %v4369_v60  ;;  %4388 = vpow2.f32 %v3817_v7  ;;  %v4371_v34 = vpop.eup %4370  ;;  %v3172_v56 = vadd.f32 %v3990_v8, %v5685_v62  ;;  %v3166_v1 = vpop.f32.mrb[11].mxu0 }
 0x563   : > { %4390 = vpow2.f32 %v3804_v22  ;;  %v3378_v25 = vadd.f32 1.0, %v4371_v34  ;;  %v3167_v31 = vadd.f32 %v5685_v62, %v3166_v1 }
 0x564   : > { %v4373_v21 = vpop.eup %4372  ;;  %4392 = vpow2.f32 %v3820_v18  ;;  %v3806_v39 = vmul.f32 -1.442695, %v3172_v56 }
 0x565   : > { %v4014_v26 = vpop.f32.mrb[10].mxu1  ;;  %v4375_v28 = vpop.eup %4374  ;;  %3470 = vst.msk [vmem:[%s4549_s14 + $0x10] sm:$0xff] %vm3467_vm10, %v4373_v21  ;;  %4394 = vpow2.f32 %v3803_v35  ;;  %v3805_v43 = vmul.f32 -1.442695, %v3167_v31 }
 0x566   : > { %v3252_v29 = vadd.f32 %v4014_v26, %v5685_v62  ;;  %v3246_v44 = vpop.f32.mrb[11].mxu1  ;;  %v4377_v52 = vpop.eup %4376  ;;  %3486 = vst.msk [vmem:[%s4549_s14 + $0x90] sm:$0xff] %vm3467_vm10, %v4375_v28  ;;  %4396 = vrcp.f32 %v3378_v25 }
 0x567   : > { %v3247_v33 = vadd.f32 %v5685_v62, %v3246_v44  ;;  %v4379_v36 = vpop.eup %4378  ;;  %v3394_v12 = vadd.f32 1.0, %v4377_v52  ;;  %4398 = vpow2.f32 %v3819_v24 }
 0x568   : > { %v4381_v23 = vpop.eup %4380  ;;  %v3377_v9 = vadd.f32 1.0, %v4379_v36  ;;  %v3822_v41 = vmul.f32 -1.442695, %v3252_v29 }
 0x569   : > { %v4383_v42 = vpop.eup %4382  ;;  %3473 = vst.msk [vmem:[%s4549_s14 + $0x28] sm:$0xff] %vm3467_vm10, %v4381_v23  ;;  %4400 = vrcp.f32 %v3394_v12  ;;  %v3821_v48 = vmul.f32 -1.442695, %v3247_v33  ;;  %v3993_v51 = vpop.f32.mrb[12].mxu0 }
 0x56a   : > { %v4385_v46 = vpop.eup %4384  ;;  %3489 = vst.msk [vmem:[%s4549_s14 + $0xa8] sm:$0xff] %vm3467_vm10, %v4383_v42  ;;  %4402 = vrcp.f32 %v3377_v9  ;;  %v3182_v57 = vadd.f32 %v3993_v51, %v5685_v62  ;;  %v3176_v59 = vpop.f32.mrb[13].mxu0 }
 0x56b   : > { %v4387_v47 = vpop.eup %4386  ;;  %3472 = vst.msk [vmem:[%s4549_s14 + $0x20] sm:$0xff] %vm3467_vm10, %v4385_v46  ;;  %4404 = vpow2.f32 %v3806_v39  ;;  %v3177_v27 = vadd.f32 %v5685_v62, %v3176_v59 }
 0x56c   : > { %v4389_v50 = vpop.eup %4388  ;;  %3488 = vst.msk [vmem:[%s4549_s14 + $0xa0] sm:$0xff] %vm3467_vm10, %v4387_v47  ;;  %4406 = vpow2.f32 %v3822_v41  ;;  %v3808_v3 = vmul.f32 -1.442695, %v3182_v57 }
 0x56d   : > { %v4017_v53 = vpop.f32.mrb[12].mxu1  ;;  %v4391_v54 = vpop.eup %4390  ;;  %v3393_v17 = vadd.f32 1.0, %v4389_v50  ;;  %4408 = vpow2.f32 %v3805_v43  ;;  %v3807_v2 = vmul.f32 -1.442695, %v3177_v27 }
 0x56e   : > { %v3262_v58 = vadd.f32 %v4017_v53, %v5685_v62  ;;  %v3256_v20 = vpop.f32.mrb[13].mxu1  ;;  %v4393_v45 = vpop.eup %4392  ;;  %v3380_v61 = vadd.f32 1.0, %v4391_v54  ;;  %4410 = vpow2.f32 %v3821_v48 }
 0x56f   : > { %v4395_v0 = vpop.eup %4394  ;;  %4412 = vrcp.f32 %v3393_v17  ;;  %v3396_v32 = vadd.f32 1.0, %v4393_v45  ;;  %v3257_v40 = vadd.f32 %v5685_v62, %v3256_v20 }
 0x570   : > { %v4397_v30 = vpop.eup %4396  ;;  %4414 = vrcp.f32 %v3380_v61  ;;  %v3379_v6 = vadd.f32 1.0, %v4395_v0  ;;  %v3824_v10 = vmul.f32 -1.442695, %v3262_v58 }
 0x571   : > { %v4399_v49 = vpop.eup %4398  ;;  %3475 = vst.msk [vmem:[%s4549_s14 + $0x38] sm:$0xff] %vm3467_vm10, %v4397_v30  ;;  %4416 = vrcp.f32 %v3396_v32  ;;  %v3823_v14 = vmul.f32 -1.442695, %v3257_v40  ;;  %v3996_v4 = vpop.f32.mrb[14].mxu0 }
 0x572   : > { %4418 = vrcp.f32 %v3379_v6  ;;  %v3395_v55 = vadd.f32 1.0, %v4399_v49  ;;  %v3192_v16 = vadd.f32 %v3996_v4, %v5685_v62  ;;  %v3186_v37 = vpop.f32.mrb[15].mxu0 }
 0x573   : > { %v4401_v11 = vpop.eup %4400  ;;  %4420 = vpow2.f32 %v3808_v3  ;;  %v3187_v13 = vadd.f32 %v5685_v62, %v3186_v37 }
 0x574   : > { %v4403_v63 = vpop.eup %4402  ;;  %3491 = vst.msk [vmem:[%s4549_s14 + $0xb8] sm:$0xff] %vm3467_vm10, %v4401_v11  ;;  %4422 = vrcp.f32 %v3395_v55  ;;  %v3810_v21 = vmul.f32 -1.442695, %v3192_v16 }
 0x575   : > { %v4020_v38 = vpop.f32.mrb[14].mxu1  ;;  %v4405_v15 = vpop.eup %4404  ;;  %3474 = vst.msk [vmem:[%s4549_s14 + $0x30] sm:$0xff] %vm3467_vm10, %v4403_v63  ;;  %4424 = vpow2.f32 %v3824_v10 }
 0x576   : > { %v3272_v7 = vadd.f32 %v4020_v38, %v5685_v62  ;;  %v3266_v5 = vpop.f32.mrb[15].mxu1  ;;  %v4407_v22 = vpop.eup %4406  ;;  %v3382_v19 = vadd.f32 1.0, %v4405_v15  ;;  %4426 = vpow2.f32 %v3807_v2 }
 0x577   : > { %v3267_v18 = vadd.f32 %v5685_v62, %v3266_v5  ;;  %v4409_v60 = vpop.eup %4408  ;;  %v3398_v35 = vadd.f32 1.0, %v4407_v22  ;;  %4428 = vpow2.f32 %v3823_v14  ;;  %v3809_v62 = vmul.f32 -1.442695, %v3187_v13 }
 0x578   : > { %v4411_v34 = vpop.eup %4410  ;;  %4430 = vrcp.f32 %v3382_v19  ;;  %v3381_v24 = vadd.f32 1.0, %v4409_v60  ;;  %v3826_v26 = vmul.f32 -1.442695, %v3272_v7 }
 0x579   : > { %v4413_v25 = vpop.eup %4412  ;;  %4432 = vrcp.f32 %v3398_v35  ;;  %v3397_v8 = vadd.f32 1.0, %v4411_v34  ;;  %v3825_v29 = vmul.f32 -1.442695, %v3267_v18 }
 0x57a   : > { %v4415_v28 = vpop.eup %4414  ;;  %3490 = vst.msk [vmem:[%s4549_s14 + $0xb0] sm:$0xff] %vm3467_vm10, %v4413_v25  ;;  %4434 = vrcp.f32 %v3381_v24 }
 0x57b   : > { %v4417_v56 = vpop.eup %4416  ;;  %3477 = vst.msk [vmem:[%s4549_s14 + $0x48] sm:$0xff] %vm3467_vm10, %v4415_v28  ;;  %4436 = vrcp.f32 %v3397_v8 }
 0x57c   : > { %v4419_v1 = vpop.eup %4418  ;;  %3493 = vst.msk [vmem:[%s4549_s14 + $0xc8] sm:$0xff] %vm3467_vm10, %v4417_v56  ;;  %4438 = vpow2.f32 %v3810_v21 }
 0x57d   : > { %v4421_v44 = vpop.eup %4420  ;;  %3476 = vst.msk [vmem:[%s4549_s14 + $0x40] sm:$0xff] %vm3467_vm10, %v4419_v1  ;;  %4440 = vpow2.f32 %v3826_v26 }
 0x57e   : > { %v4423_v52 = vpop.eup %4422  ;;  %v3384_v31 = vadd.f32 1.0, %v4421_v44  ;;  %4442 = vpow2.f32 %v3809_v62 }
 0x57f   : > { %v4425_v33 = vpop.eup %4424  ;;  %3492 = vst.msk [vmem:[%s4549_s14 + $0xc0] sm:$0xff] %vm3467_vm10, %v4423_v52  ;;  %4444 = vpow2.f32 %v3825_v29 }
 0x580   : > { %v4427_v36 = vpop.eup %4426  ;;  %4446 = vrcp.f32 %v3384_v31  ;;  %v3400_v12 = vadd.f32 1.0, %v4425_v33 }
 0x581   : > { %v4429_v39 = vpop.eup %4428  ;;  %v3383_v23 = vadd.f32 1.0, %v4427_v36 }
 0x582   : > { %v4431_v9 = vpop.eup %4430  ;;  %4448 = vrcp.f32 %v3400_v12  ;;  %v3399_v41 = vadd.f32 1.0, %v4429_v39 }
 0x583   : > { %v4433_v42 = vpop.eup %4432  ;;  %3479 = vst.msk [vmem:[%s4549_s14 + $0x58] sm:$0xff] %vm3467_vm10, %v4431_v9  ;;  %4450 = vrcp.f32 %v3383_v23 }
 0x584   : > { %v4435_v43 = vpop.eup %4434  ;;  %3495 = vst.msk [vmem:[%s4549_s14 + $0xd8] sm:$0xff] %vm3467_vm10, %v4433_v42  ;;  %4452 = vrcp.f32 %v3399_v41 }
 0x585   : > { %v4437_v46 = vpop.eup %4436  ;;  %3478 = vst.msk [vmem:[%s4549_s14 + $0x50] sm:$0xff] %vm3467_vm10, %v4435_v43 }
 0x586   : > { %v4439_v48 = vpop.eup %4438  ;;  %3494 = vst.msk [vmem:[%s4549_s14 + $0xd0] sm:$0xff] %vm3467_vm10, %v4437_v46 }
 0x587   : > { %v4441_v47 = vpop.eup %4440  ;;  %v3386_v50 = vadd.f32 1.0, %v4439_v48 }
 0x588   : > { %v4443_v51 = vpop.eup %4442  ;;  %v3402_v53 = vadd.f32 1.0, %v4441_v47 }
 0x589   : > { %v4445_v54 = vpop.eup %4444  ;;  %4454 = vrcp.f32 %v3386_v50  ;;  %v3385_v17 = vadd.f32 1.0, %v4443_v51 }
 0x58a   : > { %v4447_v57 = vpop.eup %4446  ;;  %4456 = vrcp.f32 %v3402_v53  ;;  %v3401_v58 = vadd.f32 1.0, %v4445_v54 }
 0x58b   : > { %3481 = vst.msk [vmem:[%s4549_s14 + $0x68] sm:$0xff] %vm3467_vm10, %v4447_v57  ;;  %4458 = vrcp.f32 %v3385_v17 }
 0x58c   : > { %v4449_v59 = vpop.eup %4448  ;;  %4460 = vrcp.f32 %v3401_v58 }
 0x58d   : > { %v4451_v20 = vpop.eup %4450  ;;  %3497 = vst.msk [vmem:[%s4549_s14 + $0xe8] sm:$0xff] %vm3467_vm10, %v4449_v59 }
 0x58e   : > { %v4453_v45 = vpop.eup %4452  ;;  %3480 = vst.msk [vmem:[%s4549_s14 + $0x60] sm:$0xff] %vm3467_vm10, %v4451_v20 }
 0x58f   : > { %3496 = vst.msk [vmem:[%s4549_s14 + $0xe0] sm:$0xff] %vm3467_vm10, %v4453_v45 }
 0x593   : > { %v4455_v61 = vpop.eup %4454 }
 0x594   : > { %v4457_v27 = vpop.eup %4456  ;;  %3483 = vst.msk [vmem:[%s4549_s14 + $0x78] sm:$0xff] %vm3467_vm10, %v4455_v61 }
 0x595   : > { %v4459_v0 = vpop.eup %4458  ;;  %3499 = vst.msk [vmem:[%s4549_s14 + $0xf8] sm:$0xff] %vm3467_vm10, %v4457_v27 }
 0x596   : > { %v4461_v32 = vpop.eup %4460  ;;  %3482 = vst.msk [vmem:[%s4549_s14 + $0x70] sm:$0xff] %vm3467_vm10, %v4459_v0 }
 0x597   : > { %3498 = vst.msk [vmem:[%s4549_s14 + $0xf0] sm:$0xff] %vm3467_vm10, %v4461_v32 }
 0x598 PF: > { %s19_s26 = sadd.s32 1, %s4472_s26  }
 0x599   : > { %p16_p5 = scmp.ge.s32.totalorder %s19_s26, 4  }
 0x59b   :  { %18 = sbr.rel (!%p16_p5) target bundleno = 3 (0x3), region = 103 }

</bundles_post_ra>
